<compile_context>
chip_gen: v5e
topology: v5e:2x2
jax: 0.10.0
libtpu: 0.0.40
codegen_flags: <defaults>
</compile_context>

<pallas_src>
import functools

import jax
import jax.numpy as jnp
from jax.experimental import pallas as pl
from jax.experimental.pallas import tpu as pltpu

EPS = 1e-5
C1, C2 = 24, 48                       # conv channel counts
BRANCH_DEFS = ((2, 1, 1), (3, 1, 1), (4, 1, 2))   # (kernel, pad_layer1, pad_layer2)


def _vmem_spec():
    return pl.BlockSpec(memory_space=pltpu.MemorySpace.VMEM)


# --------------------------- static branch planning --------------------------
def make_branch_plan(k, pad1, pad2, feature_size):
    """Precompute (static Python) geometry of one conv branch."""
    Lc1 = feature_size + 2 * pad1 - k + 1      # conv-1 output length
    Lp1 = Lc1 // 2                             # after MaxPool1d(2)
    E = (Lp1 + 1) // 2                         # even pooled positions
    O = Lp1 // 2                               # odd pooled positions
    Lc2 = Lp1 + 2 * pad2 - k + 1
    Lp2 = Lc2 // 2
    assert Lp2 == feature_size // 4            # matches the .view(...) contract

    tap_src = {}
    padE = [0, 0]
    padO = [0, 0]
    for pi in range(2):                        # parity of the conv-2 position
        for j in range(k):                     # conv-2 tap
            c = pi + j - pad2                  # h1 position read = 2t + c
            v0 = c // 2                        # floor division (c may be < 0)
            if c % 2 == 0:
                padE[0] = max(padE[0], -v0)
                padE[1] = max(padE[1], v0 + Lp2 - E)
                tap_src[(pi, j)] = ("E", v0)
            else:
                padO[0] = max(padO[0], -v0)
                padO[1] = max(padO[1], v0 + Lp2 - O)
                tap_src[(pi, j)] = ("O", v0)
    return dict(k=k, pad2=pad2, Lc1=Lc1, Lp1=Lp1, E=E, O=O, Lp2=Lp2,
                tap_src=tap_src, padE=tuple(padE), padO=tuple(padO))


# ------------------------------ Pallas kernels -------------------------------
def _branches_kernel(*refs, plans, batch):
    """All three conv branches fused.  refs = 10 inputs per branch, then the
    single output, then 2 VMEM scratch buffers per branch."""
    n_in = 10 * len(plans)
    out_ref = refs[n_in]
    scratch = refs[n_in + 1:]
    lp2 = plans[0]["Lp2"]
    n_pos = len(plans) * lp2                   # rows per batch element in out

    for br, plan in enumerate(plans):
        (pg0, pg1, pg2, pg3, w1_ref, s1_ref, b1_ref,
         w2_ref, s2_ref, b2_ref) = refs[10 * br:10 * br + 10]
        h_even, h_odd = scratch[2 * br], scratch[2 * br + 1]
        k = plan["k"]
        w1 = w1_ref[...]                       # (k, 24) f32
        s1 = s1_ref[...]                       # (1, 24)
        b1 = b1_ref[...]

        # ---- conv1 (VPU shifted multiply-adds) + folded BN + ReLU ----------
        def conv1(p_ref):
            pv = p_ref[...]                    # (B, cnt, k) im2col patches
            acc = pv[:, :, 0:1] * w1[0:1, :]
            for j in range(1, k):
                acc = acc + pv[:, :, j:j + 1] * w1[j:j + 1, :]
            return jnp.maximum(acc * s1 + b1, 0.0)        # (B, cnt, 24)

        # MaxPool1d(2): even pooled positions <- conv pos {4v, 4v+1},
        #               odd  pooled positions <- conv pos {4v+2, 4v+3}.
        hE = jnp.maximum(conv1(pg0), conv1(pg1))          # (B, E, 24)
        hO = jnp.maximum(conv1(pg2), conv1(pg3))          # (B, O, 24)

        # Stage into zero-padded VMEM scratch (padding = conv-2 boundary zeros).
        eL = plan["padE"][0]
        oL = plan["padO"][0]
        h_even[...] = jnp.zeros(h_even.shape, jnp.float32)
        h_odd[...] = jnp.zeros(h_odd.shape, jnp.float32)
        h_even[:, eL:eL + plan["E"], :] = hE
        h_odd[:, oL:oL + plan["O"], :] = hO

        # ---- conv2 (MXU) + folded BN + ReLU + MaxPool1d(2) ------------------
        # One matmul per tap with M = 2*B*Lp2 (even/odd pooling positions and
        # the whole batch merged into one M=64 push); accumulate over taps.
        y2 = None
        for j in range(k):
            pieces = []
            for b in range(batch):
                for pi in range(2):
                    src, v0 = plan["tap_src"][(pi, j)]
                    if src == "E":
                        start = v0 + eL
                        pieces.append(h_even[b, start:start + lp2, :])
                    else:
                        start = v0 + oL
                        pieces.append(h_odd[b, start:start + lp2, :])
            stack = jnp.concatenate(pieces, axis=0)       # (2*B*Lp2, 24) f32
            wj = w2_ref[j]                                # (24, 48) bf16
            contrib = jnp.dot(stack.astype(jnp.bfloat16), wj,
                              preferred_element_type=jnp.float32)
            y2 = contrib if y2 is None else y2 + contrib
        z2 = jnp.maximum(y2 * s2_ref[...] + b2_ref[...], 0.0)   # (2*B*Lp2, 48)

        # pool over the conv-2 position parity and write the natural-order rows
        for b in range(batch):
            blk = z2[2 * lp2 * b:2 * lp2 * (b + 1), :]
            pooled = jnp.maximum(blk[0:lp2, :], blk[lp2:2 * lp2, :])
            row0 = b * n_pos + br * lp2
            out_ref[row0:row0 + lp2, :] = pooled


def _linear_head_kernel(x_ref, w1_ref, s1_ref, b1_ref, w2_ref, s2_ref, b2_ref,
                        o_ref):
    """Linear + (Dropout=id) + BN + ReLU, then Linear + (Dropout=id) + BN +
    Softmax(dim=1)."""
    x = x_ref[...].astype(jnp.bfloat16)                   # (B, flat)
    h = jnp.dot(x, w1_ref[...], preferred_element_type=jnp.float32)
    h = jnp.maximum(h * s1_ref[...] + b1_ref[...], 0.0)   # (B, 128) f32
    z = jnp.dot(h, w2_ref[...], preferred_element_type=jnp.float32)
    z = z * s2_ref[...] + b2_ref[...]                     # (B, 2) f32
    m = jnp.max(z, axis=-1, keepdims=True)
    e = jnp.exp(z - m)
    denom = jnp.sum(e, axis=-1, keepdims=True)
    o_ref[...] = e * pl.reciprocal(denom, approx=True)


# --------------------------------- wrappers ----------------------------------
def _prep_layer1_patches(xp, plan):
    """Layer-1 im2col from static strided slices (no gather), grouped by conv
    position mod 4.  Returns four (B, count, k) arrays."""
    k = plan["k"]

    def group(r, count):
        cols = [xp[:, r + j: r + j + 4 * (count - 1) + 1: 4] for j in range(k)]
        return jnp.stack(cols, axis=-1)

    return (group(0, plan["E"]), group(1, plan["E"]),
            group(2, plan["O"]), group(3, plan["O"]))


def conv_branches(x, params, plans):
    B, fs = x.shape
    lp2 = fs // 4
    xp = jnp.pad(x, ((0, 0), (1, 1)))        # layer-1 padding = 1 on all branches
    inputs = []
    scratch = []
    for lp, plan in zip(params["branches"], plans):
        inputs.extend(_prep_layer1_patches(xp, plan))
        inputs.extend([lp["w1"], lp["s1"], lp["b1"],
                       lp["w2"], lp["s2"], lp["b2"]])
        scratch.append(pltpu.VMEM(
            (B, plan["E"] + plan["padE"][0] + plan["padE"][1], C1), jnp.float32))
        scratch.append(pltpu.VMEM(
            (B, plan["O"] + plan["padO"][0] + plan["padO"][1], C1), jnp.float32))
    kernel = functools.partial(_branches_kernel, plans=plans, batch=B)
    # Whole problem fits in VMEM (<1 MiB) -> single ungridded call, no tiling.
    return pl.pallas_call(
        kernel,
        out_shape=jax.ShapeDtypeStruct((B * 3 * lp2, C2), jnp.float32),
        in_specs=[_vmem_spec()] * len(inputs),
        out_specs=_vmem_spec(),
        scratch_shapes=scratch,
    )(*inputs)                                # rows: b*(3*lp2) + branch*lp2 + pos


def linear_head(feat, params):
    B = feat.shape[0]
    lin1, lin2 = params["lin1"], params["lin2"]
    return pl.pallas_call(
        _linear_head_kernel,
        out_shape=jax.ShapeDtypeStruct((B, 2), jnp.float32),
        in_specs=[_vmem_spec()] * 7,
        out_specs=_vmem_spec(),
    )(feat, lin1["w"], lin1["s"], lin1["b"], lin2["w"], lin2["s"], lin2["b"])


def text_cnn_forward(x, params, plans):
    B = x.shape[0]
    conv_out = conv_branches(x, params, plans)            # (B*3*Lp2, 48)
    # Pure row-major reshape (free): the PyTorch NCL/channel-major .view order
    # is absorbed into the linear1 weight permutation done once at init.
    feat = conv_out.reshape(B, -1)
    return linear_head(feat, params)


# -------------------------------- parameters ---------------------------------
def fold_bn(bias, gamma, beta, mean, var):
    """Fold (z + bias) -> BatchNorm(eval) into a single affine scale/shift."""
    scale = gamma / jnp.sqrt(var + EPS)
    shift = beta - mean * scale + bias * scale
    return scale, shift


def init_params(key, feature_size, plans):
    keys = iter(jax.random.split(key, 64))

    def bn(c):
        gamma = 1.0 + 0.1 * jax.random.normal(next(keys), (c,), jnp.float32)
        beta = 0.1 * jax.random.normal(next(keys), (c,), jnp.float32)
        mean = 0.1 * jax.random.normal(next(keys), (c,), jnp.float32)
        var = 1.0 + 0.1 * jax.random.uniform(next(keys), (c,), jnp.float32)
        return gamma, beta, mean, var

    branches = []
    for plan in plans:
        k = plan["k"]
        # conv1: PyTorch weight (24, 1, k) -> kernel layout (k, 24)
        w1_t = 0.1 * jax.random.normal(next(keys), (C1, 1, k), jnp.float32)
        b1 = 0.1 * jax.random.normal(next(keys), (C1,), jnp.float32)
        s1, sh1 = fold_bn(b1, *bn(C1))
        # conv2: PyTorch weight (48, 24, k) -> per-tap layout (k, 24, 48), bf16
        w2_t = 0.1 * jax.random.normal(next(keys), (C2, C1, k), jnp.float32)
        b2 = 0.1 * jax.random.normal(next(keys), (C2,), jnp.float32)
        s2, sh2 = fold_bn(b2, *bn(C2))
        branches.append(dict(
            w1=jnp.transpose(w1_t[:, 0, :], (1, 0)),                 # (k, 24)
            s1=s1.reshape(1, C1), b1=sh1.reshape(1, C1),
            w2=jnp.transpose(w2_t, (2, 1, 0)).astype(jnp.bfloat16),  # (k, 24, 48)
            s2=s2.reshape(1, C2), b2=sh2.reshape(1, C2),
        ))

    lp2 = feature_size // 4
    flat = C2 * lp2 * 3
    # linear1: PyTorch weight (128, flat), column order ch*(3*lp2) + r
    # (r = branch*lp2 + pos, NCL flatten).  Permute once to the kernel's
    # natural order r*48 + ch and pre-transpose to (flat, 128) bf16.
    w1_t = 0.1 * jax.random.normal(next(keys), (128, flat), jnp.float32)
    b1 = 0.1 * jax.random.normal(next(keys), (128,), jnp.float32)
    s1, sh1 = fold_bn(b1, *bn(128))
    w1_nat = jnp.transpose(w1_t.reshape(128, C2, 3 * lp2), (2, 1, 0)).reshape(flat, 128)
    # linear2: (2, 128) -> (128, 2), kept f32 (2-class logits feed softmax)
    w2_t = 0.1 * jax.random.normal(next(keys), (2, 128), jnp.float32)
    b2 = 0.1 * jax.random.normal(next(keys), (2,), jnp.float32)
    s2, sh2 = fold_bn(b2, *bn(2))
    return dict(
        branches=branches,
        lin1=dict(w=w1_nat.astype(jnp.bfloat16),
                  s=s1.reshape(1, 128), b=sh1.reshape(1, 128)),
        lin2=dict(w=jnp.transpose(w2_t, (1, 0)),
                  s=s2.reshape(1, 2), b=sh2.reshape(1, 2)),
    )


# ------------------------------------ main ------------------------------------
if __name__ == "__main__":
    feature_size = 32          # must be divisible by 4 (as the .view implies)
    batch = 4                  # small batch: ungridded call (no megacore split)
    plans = [make_branch_plan(k, p1, p2, feature_size)
             for (k, p1, p2) in BRANCH_DEFS]

    key = jax.random.PRNGKey(0)
    kx, kp = jax.random.split(key)
    x = jax.random.normal(kx, (batch, feature_size), jnp.float32)
    params = init_params(kp, feature_size, plans)

    fwd = jax.jit(lambda inp: text_cnn_forward(inp, params, plans))
    out = jax.block_until_ready(fwd(x))

    assert out.shape == (batch, 2), out.shape
    assert bool(jnp.all(jnp.isfinite(out)))
    # approx reciprocal in the softmax -> slightly loose tolerance on the sum
    assert bool(jnp.allclose(jnp.sum(out, axis=1), 1.0, atol=5e-3))
    print("KERNEL_OK")
</pallas_src>

<mosaic_0001>
module attributes {stable_mosaic.version = 11 : i64} {
  func.func @_linear_head_kernel(%arg0: memref<4x1152xf32, #tpu.memory_space<vmem>>, %arg1: memref<1152x128xbf16, #tpu.memory_space<vmem>>, %arg2: memref<1x128xf32, #tpu.memory_space<vmem>>, %arg3: memref<1x128xf32, #tpu.memory_space<vmem>>, %arg4: memref<128x2xf32, #tpu.memory_space<vmem>>, %arg5: memref<1x2xf32, #tpu.memory_space<vmem>>, %arg6: memref<1x2xf32, #tpu.memory_space<vmem>>, %arg7: memref<4x2xf32, #tpu.memory_space<vmem>>) attributes {dimension_semantics = [], scalar_prefetch = 0 : i64, scratch_operands = 0 : i64, tpu.core_type = #tpu.core_type<tc>} {
    %c0 = arith.constant 0 : index
    %c0_0 = arith.constant 0 : index
    %0 = vector.load %arg0[%c0, %c0_0] : memref<4x1152xf32, #tpu.memory_space<vmem>>, vector<4x1152xf32>
    %1 = arith.truncf %0 : vector<4x1152xf32> to vector<4x1152xbf16>
    %c0_1 = arith.constant 0 : index
    %c0_2 = arith.constant 0 : index
    %2 = vector.load %arg1[%c0_1, %c0_2] : memref<1152x128xbf16, #tpu.memory_space<vmem>>, vector<1152x128xbf16>
    %cst = arith.constant dense<0.000000e+00> : vector<4x128xf32>
    %3 = tpu.matmul %1, %2, %cst {dimension_numbers = #tpu.dot_dimension_numbers<[1], [0], [0], [1], [0, 0, 1, 1], [], []>} : vector<4x1152xbf16>, vector<1152x128xbf16>, vector<4x128xf32> -> vector<4x128xf32>
    %c0_3 = arith.constant 0 : index
    %c0_4 = arith.constant 0 : index
    %4 = vector.load %arg2[%c0_3, %c0_4] : memref<1x128xf32, #tpu.memory_space<vmem>>, vector<1x128xf32>
    %5 = vector.broadcast %4 : vector<1x128xf32> to vector<4x128xf32>
    %6 = arith.mulf %3, %5 : vector<4x128xf32>
    %c0_5 = arith.constant 0 : index
    %c0_6 = arith.constant 0 : index
    %7 = vector.load %arg3[%c0_5, %c0_6] : memref<1x128xf32, #tpu.memory_space<vmem>>, vector<1x128xf32>
    %8 = vector.broadcast %7 : vector<1x128xf32> to vector<4x128xf32>
    %9 = arith.addf %6, %8 : vector<4x128xf32>
    %cst_7 = arith.constant 0.000000e+00 : f32
    %10 = vector.broadcast %cst_7 : f32 to vector<4x128xf32>
    %11 = arith.maximumf %9, %10 : vector<4x128xf32>
    %c0_8 = arith.constant 0 : index
    %c0_9 = arith.constant 0 : index
    %12 = vector.load %arg4[%c0_8, %c0_9] : memref<128x2xf32, #tpu.memory_space<vmem>>, vector<128x2xf32>
    %cst_10 = arith.constant dense<0.000000e+00> : vector<4x2xf32>
    %13 = tpu.matmul %11, %12, %cst_10 {dimension_numbers = #tpu.dot_dimension_numbers<[1], [0], [0], [1], [0, 0, 1, 1], [], []>} : vector<4x128xf32>, vector<128x2xf32>, vector<4x2xf32> -> vector<4x2xf32>
    %c0_11 = arith.constant 0 : index
    %c0_12 = arith.constant 0 : index
    %14 = vector.load %arg5[%c0_11, %c0_12] : memref<1x2xf32, #tpu.memory_space<vmem>>, vector<1x2xf32>
    %15 = vector.broadcast %14 : vector<1x2xf32> to vector<4x2xf32>
    %16 = arith.mulf %13, %15 : vector<4x2xf32>
    %c0_13 = arith.constant 0 : index
    %c0_14 = arith.constant 0 : index
    %17 = vector.load %arg6[%c0_13, %c0_14] : memref<1x2xf32, #tpu.memory_space<vmem>>, vector<1x2xf32>
    %18 = vector.broadcast %17 : vector<1x2xf32> to vector<4x2xf32>
    %19 = arith.addf %16, %18 : vector<4x2xf32>
    %cst_15 = arith.constant dense<0xFF800000> : vector<4xf32>
    %20 = vector.multi_reduction <maximumf>, %19, %cst_15 [1] : vector<4x2xf32> to vector<4xf32>
    %21 = vector.shape_cast %20 : vector<4xf32> to vector<4x1xf32>
    %22 = vector.broadcast %21 : vector<4x1xf32> to vector<4x2xf32>
    %23 = arith.subf %19, %22 : vector<4x2xf32>
    %24 = math.exp %23 : vector<4x2xf32>
    %cst_16 = arith.constant dense<0.000000e+00> : vector<4xf32>
    %25 = vector.multi_reduction <add>, %24, %cst_16 [1] : vector<4x2xf32> to vector<4xf32>
    %26 = vector.shape_cast %25 : vector<4xf32> to vector<4x1xf32>
    %27 = tpu.reciprocal %26 {approx = true} : vector<4x1xf32> -> vector<4x1xf32>
    %28 = vector.broadcast %27 : vector<4x1xf32> to vector<4x2xf32>
    %29 = arith.mulf %24, %28 : vector<4x2xf32>
    %c0_17 = arith.constant 0 : index
    %c0_18 = arith.constant 0 : index
    %30 = vector.load %arg7[%c0_17, %c0_18] : memref<4x2xf32, #tpu.memory_space<vmem>>, vector<4x2xf32>
    tpu.vector_store %arg7[%c0_17, %c0_18], %29 {strides = array<i32>} : memref<4x2xf32, #tpu.memory_space<vmem>>, vector<4x2xf32>,
    return
  }
}

module attributes {stable_mosaic.version = 11 : i64} {
  func.func @_branches_kernel(%arg0: memref<4x8x2xf32, #tpu.memory_space<vmem>>, %arg1: memref<4x8x2xf32, #tpu.memory_space<vmem>>, %arg2: memref<4x8x2xf32, #tpu.memory_space<vmem>>, %arg3: memref<4x8x2xf32, #tpu.memory_space<vmem>>, %arg4: memref<2x24xf32, #tpu.memory_space<vmem>>, %arg5: memref<1x24xf32, #tpu.memory_space<vmem>>, %arg6: memref<1x24xf32, #tpu.memory_space<vmem>>, %arg7: memref<2x24x48xbf16, #tpu.memory_space<vmem>>, %arg8: memref<1x48xf32, #tpu.memory_space<vmem>>, %arg9: memref<1x48xf32, #tpu.memory_space<vmem>>, %arg10: memref<4x8x3xf32, #tpu.memory_space<vmem>>, %arg11: memref<4x8x3xf32, #tpu.memory_space<vmem>>, %arg12: memref<4x8x3xf32, #tpu.memory_space<vmem>>, %arg13: memref<4x8x3xf32, #tpu.memory_space<vmem>>, %arg14: memref<3x24xf32, #tpu.memory_space<vmem>>, %arg15: memref<1x24xf32, #tpu.memory_space<vmem>>, %arg16: memref<1x24xf32, #tpu.memory_space<vmem>>, %arg17: memref<3x24x48xbf16, #tpu.memory_space<vmem>>, %arg18: memref<1x48xf32, #tpu.memory_space<vmem>>, %arg19: memref<1x48xf32, #tpu.memory_space<vmem>>, %arg20: memref<4x8x4xf32, #tpu.memory_space<vmem>>, %arg21: memref<4x8x4xf32, #tpu.memory_space<vmem>>, %arg22: memref<4x7x4xf32, #tpu.memory_space<vmem>>, %arg23: memref<4x7x4xf32, #tpu.memory_space<vmem>>, %arg24: memref<4x24xf32, #tpu.memory_space<vmem>>, %arg25: memref<1x24xf32, #tpu.memory_space<vmem>>, %arg26: memref<1x24xf32, #tpu.memory_space<vmem>>, %arg27: memref<4x24x48xbf16, #tpu.memory_space<vmem>>, %arg28: memref<1x48xf32, #tpu.memory_space<vmem>>, %arg29: memref<1x48xf32, #tpu.memory_space<vmem>>, %arg30: memref<96x48xf32, #tpu.memory_space<vmem>>, %arg31: memref<4x8x24xf32, #tpu.memory_space<vmem>>, %arg32: memref<4x9x24xf32, #tpu.memory_space<vmem>>, %arg33: memref<4x9x24xf32, #tpu.memory_space<vmem>>, %arg34: memref<4x9x24xf32, #tpu.memory_space<vmem>>, %arg35: memref<4x10x24xf32, #tpu.memory_space<vmem>>, %arg36: memref<4x9x24xf32, #tpu.memory_space<vmem>>) attributes {dimension_semantics = [], scalar_prefetch = 0 : i64, scratch_operands = 6 : i64, tpu.core_type = #tpu.core_type<tc>} {
    %c0 = arith.constant 0 : index
    %c0_0 = arith.constant 0 : index
    %0 = vector.load %arg4[%c0, %c0_0] : memref<2x24xf32, #tpu.memory_space<vmem>>, vector<2x24xf32>
    %c0_1 = arith.constant 0 : index
    %c0_2 = arith.constant 0 : index
    %1 = vector.load %arg5[%c0_1, %c0_2] : memref<1x24xf32, #tpu.memory_space<vmem>>, vector<1x24xf32>
    %c0_3 = arith.constant 0 : index
    %c0_4 = arith.constant 0 : index
    %2 = vector.load %arg6[%c0_3, %c0_4] : memref<1x24xf32, #tpu.memory_space<vmem>>, vector<1x24xf32>
    %c0_5 = arith.constant 0 : index
    %c0_6 = arith.constant 0 : index
    %c0_7 = arith.constant 0 : index
    %3 = vector.load %arg0[%c0_5, %c0_6, %c0_7] : memref<4x8x2xf32, #tpu.memory_space<vmem>>, vector<4x8x2xf32>
    %4 = vector.extract_strided_slice %3 {offsets = [0, 0, 0], sizes = [4, 8, 1], strides = [1, 1, 1]} : vector<4x8x2xf32> to vector<4x8x1xf32>
    %5 = vector.extract_strided_slice %0 {offsets = [0, 0], sizes = [1, 24], strides = [1, 1]} : vector<2x24xf32> to vector<1x24xf32>
    %6 = vector.shape_cast %5 : vector<1x24xf32> to vector<1x1x24xf32>
    %7 = vector.broadcast %4 : vector<4x8x1xf32> to vector<4x8x24xf32>
    %8 = vector.broadcast %6 : vector<1x1x24xf32> to vector<4x8x24xf32>
    %9 = arith.mulf %7, %8 : vector<4x8x24xf32>
    %10 = vector.extract_strided_slice %3 {offsets = [0, 0, 1], sizes = [4, 8, 1], strides = [1, 1, 1]} : vector<4x8x2xf32> to vector<4x8x1xf32>
    %11 = vector.extract_strided_slice %0 {offsets = [1, 0], sizes = [1, 24], strides = [1, 1]} : vector<2x24xf32> to vector<1x24xf32>
    %12 = vector.shape_cast %11 : vector<1x24xf32> to vector<1x1x24xf32>
    %13 = vector.broadcast %10 : vector<4x8x1xf32> to vector<4x8x24xf32>
    %14 = vector.broadcast %12 : vector<1x1x24xf32> to vector<4x8x24xf32>
    %15 = arith.mulf %13, %14 : vector<4x8x24xf32>
    %16 = arith.addf %9, %15 : vector<4x8x24xf32>
    %17 = vector.shape_cast %1 : vector<1x24xf32> to vector<1x1x24xf32>
    %18 = vector.broadcast %17 : vector<1x1x24xf32> to vector<4x8x24xf32>
    %19 = arith.mulf %16, %18 : vector<4x8x24xf32>
    %20 = vector.shape_cast %2 : vector<1x24xf32> to vector<1x1x24xf32>
    %21 = vector.broadcast %20 : vector<1x1x24xf32> to vector<4x8x24xf32>
    %22 = arith.addf %19, %21 : vector<4x8x24xf32>
    %cst = arith.constant 0.000000e+00 : f32
    %23 = vector.broadcast %cst : f32 to vector<4x8x24xf32>
    %24 = arith.maximumf %22, %23 : vector<4x8x24xf32>
    %c0_8 = arith.constant 0 : index
    %c0_9 = arith.constant 0 : index
    %c0_10 = arith.constant 0 : index
    %25 = vector.load %arg1[%c0_8, %c0_9, %c0_10] : memref<4x8x2xf32, #tpu.memory_space<vmem>>, vector<4x8x2xf32>
    %26 = vector.extract_strided_slice %25 {offsets = [0, 0, 0], sizes = [4, 8, 1], strides = [1, 1, 1]} : vector<4x8x2xf32> to vector<4x8x1xf32>
    %27 = vector.extract_strided_slice %0 {offsets = [0, 0], sizes = [1, 24], strides = [1, 1]} : vector<2x24xf32> to vector<1x24xf32>
    %28 = vector.shape_cast %27 : vector<1x24xf32> to vector<1x1x24xf32>
    %29 = vector.broadcast %26 : vector<4x8x1xf32> to vector<4x8x24xf32>
    %30 = vector.broadcast %28 : vector<1x1x24xf32> to vector<4x8x24xf32>
    %31 = arith.mulf %29, %30 : vector<4x8x24xf32>
    %32 = vector.extract_strided_slice %25 {offsets = [0, 0, 1], sizes = [4, 8, 1], strides = [1, 1, 1]} : vector<4x8x2xf32> to vector<4x8x1xf32>
    %33 = vector.extract_strided_slice %0 {offsets = [1, 0], sizes = [1, 24], strides = [1, 1]} : vector<2x24xf32> to vector<1x24xf32>
    %34 = vector.shape_cast %33 : vector<1x24xf32> to vector<1x1x24xf32>
    %35 = vector.broadcast %32 : vector<4x8x1xf32> to vector<4x8x24xf32>
    %36 = vector.broadcast %34 : vector<1x1x24xf32> to vector<4x8x24xf32>
    %37 = arith.mulf %35, %36 : vector<4x8x24xf32>
    %38 = arith.addf %31, %37 : vector<4x8x24xf32>
    %39 = vector.shape_cast %1 : vector<1x24xf32> to vector<1x1x24xf32>
    %40 = vector.broadcast %39 : vector<1x1x24xf32> to vector<4x8x24xf32>
    %41 = arith.mulf %38, %40 : vector<4x8x24xf32>
    %42 = vector.shape_cast %2 : vector<1x24xf32> to vector<1x1x24xf32>
    %43 = vector.broadcast %42 : vector<1x1x24xf32> to vector<4x8x24xf32>
    %44 = arith.addf %41, %43 : vector<4x8x24xf32>
    %cst_11 = arith.constant 0.000000e+00 : f32
    %45 = vector.broadcast %cst_11 : f32 to vector<4x8x24xf32>
    %46 = arith.maximumf %44, %45 : vector<4x8x24xf32>
    %47 = arith.maximumf %24, %46 : vector<4x8x24xf32>
    %c0_12 = arith.constant 0 : index
    %c0_13 = arith.constant 0 : index
    %c0_14 = arith.constant 0 : index
    %48 = vector.load %arg2[%c0_12, %c0_13, %c0_14] : memref<4x8x2xf32, #tpu.memory_space<vmem>>, vector<4x8x2xf32>
    %49 = vector.extract_strided_slice %48 {offsets = [0, 0, 0], sizes = [4, 8, 1], strides = [1, 1, 1]} : vector<4x8x2xf32> to vector<4x8x1xf32>
    %50 = vector.extract_strided_slice %0 {offsets = [0, 0], sizes = [1, 24], strides = [1, 1]} : vector<2x24xf32> to vector<1x24xf32>
    %51 = vector.shape_cast %50 : vector<1x24xf32> to vector<1x1x24xf32>
    %52 = vector.broadcast %49 : vector<4x8x1xf32> to vector<4x8x24xf32>
    %53 = vector.broadcast %51 : vector<1x1x24xf32> to vector<4x8x24xf32>
    %54 = arith.mulf %52, %53 : vector<4x8x24xf32>
    %55 = vector.extract_strided_slice %48 {offsets = [0, 0, 1], sizes = [4, 8, 1], strides = [1, 1, 1]} : vector<4x8x2xf32> to vector<4x8x1xf32>
    %56 = vector.extract_strided_slice %0 {offsets = [1, 0], sizes = [1, 24], strides = [1, 1]} : vector<2x24xf32> to vector<1x24xf32>
    %57 = vector.shape_cast %56 : vector<1x24xf32> to vector<1x1x24xf32>
    %58 = vector.broadcast %55 : vector<4x8x1xf32> to vector<4x8x24xf32>
    %59 = vector.broadcast %57 : vector<1x1x24xf32> to vector<4x8x24xf32>
    %60 = arith.mulf %58, %59 : vector<4x8x24xf32>
    %61 = arith.addf %54, %60 : vector<4x8x24xf32>
    %62 = vector.shape_cast %1 : vector<1x24xf32> to vector<1x1x24xf32>
    %63 = vector.broadcast %62 : vector<1x1x24xf32> to vector<4x8x24xf32>
    %64 = arith.mulf %61, %63 : vector<4x8x24xf32>
    %65 = vector.shape_cast %2 : vector<1x24xf32> to vector<1x1x24xf32>
    %66 = vector.broadcast %65 : vector<1x1x24xf32> to vector<4x8x24xf32>
    %67 = arith.addf %64, %66 : vector<4x8x24xf32>
    %cst_15 = arith.constant 0.000000e+00 : f32
    %68 = vector.broadcast %cst_15 : f32 to vector<4x8x24xf32>
    %69 = arith.maximumf %67, %68 : vector<4x8x24xf32>
    %c0_16 = arith.constant 0 : index
    %c0_17 = arith.constant 0 : index
    %c0_18 = arith.constant 0 : index
    %70 = vector.load %arg3[%c0_16, %c0_17, %c0_18] : memref<4x8x2xf32, #tpu.memory_space<vmem>>, vector<4x8x2xf32>
    %71 = vector.extract_strided_slice %70 {offsets = [0, 0, 0], sizes = [4, 8, 1], strides = [1, 1, 1]} : vector<4x8x2xf32> to vector<4x8x1xf32>
    %72 = vector.extract_strided_slice %0 {offsets = [0, 0], sizes = [1, 24], strides = [1, 1]} : vector<2x24xf32> to vector<1x24xf32>
    %73 = vector.shape_cast %72 : vector<1x24xf32> to vector<1x1x24xf32>
    %74 = vector.broadcast %71 : vector<4x8x1xf32> to vector<4x8x24xf32>
    %75 = vector.broadcast %73 : vector<1x1x24xf32> to vector<4x8x24xf32>
    %76 = arith.mulf %74, %75 : vector<4x8x24xf32>
    %77 = vector.extract_strided_slice %70 {offsets = [0, 0, 1], sizes = [4, 8, 1], strides = [1, 1, 1]} : vector<4x8x2xf32> to vector<4x8x1xf32>
    %78 = vector.extract_strided_slice %0 {offsets = [1, 0], sizes = [1, 24], strides = [1, 1]} : vector<2x24xf32> to vector<1x24xf32>
    %79 = vector.shape_cast %78 : vector<1x24xf32> to vector<1x1x24xf32>
    %80 = vector.broadcast %77 : vector<4x8x1xf32> to vector<4x8x24xf32>
    %81 = vector.broadcast %79 : vector<1x1x24xf32> to vector<4x8x24xf32>
    %82 = arith.mulf %80, %81 : vector<4x8x24xf32>
    %83 = arith.addf %76, %82 : vector<4x8x24xf32>
    %84 = vector.shape_cast %1 : vector<1x24xf32> to vector<1x1x24xf32>
    %85 = vector.broadcast %84 : vector<1x1x24xf32> to vector<4x8x24xf32>
    %86 = arith.mulf %83, %85 : vector<4x8x24xf32>
    %87 = vector.shape_cast %2 : vector<1x24xf32> to vector<1x1x24xf32>
    %88 = vector.broadcast %87 : vector<1x1x24xf32> to vector<4x8x24xf32>
    %89 = arith.addf %86, %88 : vector<4x8x24xf32>
    %cst_19 = arith.constant 0.000000e+00 : f32
    %90 = vector.broadcast %cst_19 : f32 to vector<4x8x24xf32>
    %91 = arith.maximumf %89, %90 : vector<4x8x24xf32>
    %92 = arith.maximumf %69, %91 : vector<4x8x24xf32>
    %cst_20 = arith.constant 0.000000e+00 : f32
    %93 = vector.broadcast %cst_20 : f32 to vector<4x8x24xf32>
    %c0_21 = arith.constant 0 : index
    %c0_22 = arith.constant 0 : index
    %c0_23 = arith.constant 0 : index
    %94 = vector.load %arg31[%c0_21, %c0_22, %c0_23] : memref<4x8x24xf32, #tpu.memory_space<vmem>>, vector<4x8x24xf32>
    tpu.vector_store %arg31[%c0_21, %c0_22, %c0_23], %93 {strides = array<i32>} : memref<4x8x24xf32, #tpu.memory_space<vmem>>, vector<4x8x24xf32>,
    %cst_24 = arith.constant 0.000000e+00 : f32
    %95 = vector.broadcast %cst_24 : f32 to vector<4x9x24xf32>
    %c0_25 = arith.constant 0 : index
    %c0_26 = arith.constant 0 : index
    %c0_27 = arith.constant 0 : index
    %96 = vector.load %arg32[%c0_25, %c0_26, %c0_27] : memref<4x9x24xf32, #tpu.memory_space<vmem>>, vector<4x9x24xf32>
    tpu.vector_store %arg32[%c0_25, %c0_26, %c0_27], %95 {strides = array<i32>} : memref<4x9x24xf32, #tpu.memory_space<vmem>>, vector<4x9x24xf32>,
    %c0_28 = arith.constant 0 : index
    %c0_29 = arith.constant 0 : index
    %c0_30 = arith.constant 0 : index
    %97 = vector.load %arg31[%c0_28, %c0_29, %c0_30] : memref<4x8x24xf32, #tpu.memory_space<vmem>>, vector<4x8x24xf32>
    tpu.vector_store %arg31[%c0_28, %c0_29, %c0_30], %47 {strides = array<i32>} : memref<4x8x24xf32, #tpu.memory_space<vmem>>, vector<4x8x24xf32>,
    %c0_31 = arith.constant 0 : index
    %c1 = arith.constant 1 : index
    %c0_32 = arith.constant 0 : index
    %98 = vector.load %arg32[%c0_31, %c1, %c0_32] : memref<4x9x24xf32, #tpu.memory_space<vmem>>, vector<4x8x24xf32>
    tpu.vector_store %arg32[%c0_31, %c1, %c0_32], %92 {strides = array<i32>} : memref<4x9x24xf32, #tpu.memory_space<vmem>>, vector<4x8x24xf32>,
    %c0_33 = arith.constant 0 : index
    %c0_34 = arith.constant 0 : index
    %c0_35 = arith.constant 0 : index
    %99 = vector.load %arg32[%c0_33, %c0_34, %c0_35] : memref<4x9x24xf32, #tpu.memory_space<vmem>>, vector<1x8x24xf32>
    %100 = vector.shape_cast %99 : vector<1x8x24xf32> to vector<8x24xf32>
    %c0_36 = arith.constant 0 : index
    %c0_37 = arith.constant 0 : index
    %c0_38 = arith.constant 0 : index
    %101 = vector.load %arg31[%c0_36, %c0_37, %c0_38] : memref<4x8x24xf32, #tpu.memory_space<vmem>>, vector<1x8x24xf32>
    %102 = vector.shape_cast %101 : vector<1x8x24xf32> to vector<8x24xf32>
    %c1_39 = arith.constant 1 : index
    %c0_40 = arith.constant 0 : index
    %c0_41 = arith.constant 0 : index
    %103 = vector.load %arg32[%c1_39, %c0_40, %c0_41] : memref<4x9x24xf32, #tpu.memory_space<vmem>>, vector<1x8x24xf32>
    %104 = vector.shape_cast %103 : vector<1x8x24xf32> to vector<8x24xf32>
    %c1_42 = arith.constant 1 : index
    %c0_43 = arith.constant 0 : index
    %c0_44 = arith.constant 0 : index
    %105 = vector.load %arg31[%c1_42, %c0_43, %c0_44] : memref<4x8x24xf32, #tpu.memory_space<vmem>>, vector<1x8x24xf32>
    %106 = vector.shape_cast %105 : vector<1x8x24xf32> to vector<8x24xf32>
    %c2 = arith.constant 2 : index
    %c0_45 = arith.constant 0 : index
    %c0_46 = arith.constant 0 : index
    %107 = vector.load %arg32[%c2, %c0_45, %c0_46] : memref<4x9x24xf32, #tpu.memory_space<vmem>>, vector<1x8x24xf32>
    %108 = vector.shape_cast %107 : vector<1x8x24xf32> to vector<8x24xf32>
    %c2_47 = arith.constant 2 : index
    %c0_48 = arith.constant 0 : index
    %c0_49 = arith.constant 0 : index
    %109 = vector.load %arg31[%c2_47, %c0_48, %c0_49] : memref<4x8x24xf32, #tpu.memory_space<vmem>>, vector<1x8x24xf32>
    %110 = vector.shape_cast %109 : vector<1x8x24xf32> to vector<8x24xf32>
    %c3 = arith.constant 3 : index
    %c0_50 = arith.constant 0 : index
    %c0_51 = arith.constant 0 : index
    %111 = vector.load %arg32[%c3, %c0_50, %c0_51] : memref<4x9x24xf32, #tpu.memory_space<vmem>>, vector<1x8x24xf32>
    %112 = vector.shape_cast %111 : vector<1x8x24xf32> to vector<8x24xf32>
    %c3_52 = arith.constant 3 : index
    %c0_53 = arith.constant 0 : index
    %c0_54 = arith.constant 0 : index
    %113 = vector.load %arg31[%c3_52, %c0_53, %c0_54] : memref<4x8x24xf32, #tpu.memory_space<vmem>>, vector<1x8x24xf32>
    %114 = vector.shape_cast %113 : vector<1x8x24xf32> to vector<8x24xf32>
    %115 = tpu.concatenate %100, %102, %104, %106, %108, %110, %112, %114 in 0 : vector<8x24xf32>, vector<8x24xf32>, vector<8x24xf32>, vector<8x24xf32>, vector<8x24xf32>, vector<8x24xf32>, vector<8x24xf32>, vector<8x24xf32> -> vector<64x24xf32>
    %c0_55 = arith.constant 0 : index
    %c0_56 = arith.constant 0 : index
    %c0_57 = arith.constant 0 : index
    %116 = vector.load %arg7[%c0_55, %c0_56, %c0_57] : memref<2x24x48xbf16, #tpu.memory_space<vmem>>, vector<1x24x48xbf16>
    %117 = vector.shape_cast %116 : vector<1x24x48xbf16> to vector<24x48xbf16>
    %118 = arith.truncf %115 : vector<64x24xf32> to vector<64x24xbf16>
    %cst_58 = arith.constant dense<0.000000e+00> : vector<64x48xf32>
    %119 = tpu.matmul %118, %117, %cst_58 {dimension_numbers = #tpu.dot_dimension_numbers<[1], [0], [0], [1], [0, 0, 1, 1], [], []>} : vector<64x24xbf16>, vector<24x48xbf16>, vector<64x48xf32> -> vector<64x48xf32>
    %c0_59 = arith.constant 0 : index
    %c0_60 = arith.constant 0 : index
    %c0_61 = arith.constant 0 : index
    %120 = vector.load %arg31[%c0_59, %c0_60, %c0_61] : memref<4x8x24xf32, #tpu.memory_space<vmem>>, vector<1x8x24xf32>
    %121 = vector.shape_cast %120 : vector<1x8x24xf32> to vector<8x24xf32>
    %c0_62 = arith.constant 0 : index
    %c1_63 = arith.constant 1 : index
    %c0_64 = arith.constant 0 : index
    %122 = vector.load %arg32[%c0_62, %c1_63, %c0_64] : memref<4x9x24xf32, #tpu.memory_space<vmem>>, vector<1x8x24xf32>
    %123 = vector.shape_cast %122 : vector<1x8x24xf32> to vector<8x24xf32>
    %c1_65 = arith.constant 1 : index
    %c0_66 = arith.constant 0 : index
    %c0_67 = arith.constant 0 : index
    %124 = vector.load %arg31[%c1_65, %c0_66, %c0_67] : memref<4x8x24xf32, #tpu.memory_space<vmem>>, vector<1x8x24xf32>
    %125 = vector.shape_cast %124 : vector<1x8x24xf32> to vector<8x24xf32>
    %c1_68 = arith.constant 1 : index
    %c1_69 = arith.constant 1 : index
    %c0_70 = arith.constant 0 : index
    %126 = vector.load %arg32[%c1_68, %c1_69, %c0_70] : memref<4x9x24xf32, #tpu.memory_space<vmem>>, vector<1x8x24xf32>
    %127 = vector.shape_cast %126 : vector<1x8x24xf32> to vector<8x24xf32>
    %c2_71 = arith.constant 2 : index
    %c0_72 = arith.constant 0 : index
    %c0_73 = arith.constant 0 : index
    %128 = vector.load %arg31[%c2_71, %c0_72, %c0_73] : memref<4x8x24xf32, #tpu.memory_space<vmem>>, vector<1x8x24xf32>
    %129 = vector.shape_cast %128 : vector<1x8x24xf32> to vector<8x24xf32>
    %c2_74 = arith.constant 2 : index
    %c1_75 = arith.constant 1 : index
    %c0_76 = arith.constant 0 : index
    %130 = vector.load %arg32[%c2_74, %c1_75, %c0_76] : memref<4x9x24xf32, #tpu.memory_space<vmem>>, vector<1x8x24xf32>
    %131 = vector.shape_cast %130 : vector<1x8x24xf32> to vector<8x24xf32>
    %c3_77 = arith.constant 3 : index
    %c0_78 = arith.constant 0 : index
    %c0_79 = arith.constant 0 : index
    %132 = vector.load %arg31[%c3_77, %c0_78, %c0_79] : memref<4x8x24xf32, #tpu.memory_space<vmem>>, vector<1x8x24xf32>
    %133 = vector.shape_cast %132 : vector<1x8x24xf32> to vector<8x24xf32>
    %c3_80 = arith.constant 3 : index
    %c1_81 = arith.constant 1 : index
    %c0_82 = arith.constant 0 : index
    %134 = vector.load %arg32[%c3_80, %c1_81, %c0_82] : memref<4x9x24xf32, #tpu.memory_space<vmem>>, vector<1x8x24xf32>
    %135 = vector.shape_cast %134 : vector<1x8x24xf32> to vector<8x24xf32>
    %136 = tpu.concatenate %121, %123, %125, %127, %129, %131, %133, %135 in 0 : vector<8x24xf32>, vector<8x24xf32>, vector<8x24xf32>, vector<8x24xf32>, vector<8x24xf32>, vector<8x24xf32>, vector<8x24xf32>, vector<8x24xf32> -> vector<64x24xf32>
    %c1_83 = arith.constant 1 : index
    %c0_84 = arith.constant 0 : index
    %c0_85 = arith.constant 0 : index
    %137 = vector.load %arg7[%c1_83, %c0_84, %c0_85] : memref<2x24x48xbf16, #tpu.memory_space<vmem>>, vector<1x24x48xbf16>
    %138 = vector.shape_cast %137 : vector<1x24x48xbf16> to vector<24x48xbf16>
    %139 = arith.truncf %136 : vector<64x24xf32> to vector<64x24xbf16>
    %cst_86 = arith.constant dense<0.000000e+00> : vector<64x48xf32>
    %140 = tpu.matmul %139, %138, %cst_86 {dimension_numbers = #tpu.dot_dimension_numbers<[1], [0], [0], [1], [0, 0, 1, 1], [], []>} : vector<64x24xbf16>, vector<24x48xbf16>, vector<64x48xf32> -> vector<64x48xf32>
    %141 = arith.addf %119, %140 : vector<64x48xf32>
    %c0_87 = arith.constant 0 : index
    %c0_88 = arith.constant 0 : index
    %142 = vector.load %arg8[%c0_87, %c0_88] : memref<1x48xf32, #tpu.memory_space<vmem>>, vector<1x48xf32>
    %143 = vector.broadcast %142 : vector<1x48xf32> to vector<64x48xf32>
    %144 = arith.mulf %141, %143 : vector<64x48xf32>
    %c0_89 = arith.constant 0 : index
    %c0_90 = arith.constant 0 : index
    %145 = vector.load %arg9[%c0_89, %c0_90] : memref<1x48xf32, #tpu.memory_space<vmem>>, vector<1x48xf32>
    %146 = vector.broadcast %145 : vector<1x48xf32> to vector<64x48xf32>
    %147 = arith.addf %144, %146 : vector<64x48xf32>
    %cst_91 = arith.constant 0.000000e+00 : f32
    %148 = vector.broadcast %cst_91 : f32 to vector<64x48xf32>
    %149 = arith.maximumf %147, %148 : vector<64x48xf32>
    %150 = vector.extract_strided_slice %149 {offsets = [0, 0], sizes = [16, 48], strides = [1, 1]} : vector<64x48xf32> to vector<16x48xf32>
    %151 = vector.extract_strided_slice %150 {offsets = [0, 0], sizes = [8, 48], strides = [1, 1]} : vector<16x48xf32> to vector<8x48xf32>
    %152 = vector.extract_strided_slice %150 {offsets = [8, 0], sizes = [8, 48], strides = [1, 1]} : vector<16x48xf32> to vector<8x48xf32>
    %153 = arith.maximumf %151, %152 : vector<8x48xf32>
    %c0_92 = arith.constant 0 : index
    %c0_93 = arith.constant 0 : index
    %154 = vector.load %arg30[%c0_92, %c0_93] : memref<96x48xf32, #tpu.memory_space<vmem>>, vector<8x48xf32>
    tpu.vector_store %arg30[%c0_92, %c0_93], %153 {strides = array<i32>} : memref<96x48xf32, #tpu.memory_space<vmem>>, vector<8x48xf32>,
    %155 = vector.extract_strided_slice %149 {offsets = [16, 0], sizes = [16, 48], strides = [1, 1]} : vector<64x48xf32> to vector<16x48xf32>
    %156 = vector.extract_strided_slice %155 {offsets = [0, 0], sizes = [8, 48], strides = [1, 1]} : vector<16x48xf32> to vector<8x48xf32>
    %157 = vector.extract_strided_slice %155 {offsets = [8, 0], sizes = [8, 48], strides = [1, 1]} : vector<16x48xf32> to vector<8x48xf32>
    %158 = arith.maximumf %156, %157 : vector<8x48xf32>
    %c24 = arith.constant 24 : index
    %c0_94 = arith.constant 0 : index
    %159 = vector.load %arg30[%c24, %c0_94] : memref<96x48xf32, #tpu.memory_space<vmem>>, vector<8x48xf32>
    tpu.vector_store %arg30[%c24, %c0_94], %158 {strides = array<i32>} : memref<96x48xf32, #tpu.memory_space<vmem>>, vector<8x48xf32>,
    %160 = vector.extract_strided_slice %149 {offsets = [32, 0], sizes = [16, 48], strides = [1, 1]} : vector<64x48xf32> to vector<16x48xf32>
    %161 = vector.extract_strided_slice %160 {offsets = [0, 0], sizes = [8, 48], strides = [1, 1]} : vector<16x48xf32> to vector<8x48xf32>
    %162 = vector.extract_strided_slice %160 {offsets = [8, 0], sizes = [8, 48], strides = [1, 1]} : vector<16x48xf32> to vector<8x48xf32>
    %163 = arith.maximumf %161, %162 : vector<8x48xf32>
    %c48 = arith.constant 48 : index
    %c0_95 = arith.constant 0 : index
    %164 = vector.load %arg30[%c48, %c0_95] : memref<96x48xf32, #tpu.memory_space<vmem>>, vector<8x48xf32>
    tpu.vector_store %arg30[%c48, %c0_95], %163 {strides = array<i32>} : memref<96x48xf32, #tpu.memory_space<vmem>>, vector<8x48xf32>,
    %165 = vector.extract_strided_slice %149 {offsets = [48, 0], sizes = [16, 48], strides = [1, 1]} : vector<64x48xf32> to vector<16x48xf32>
    %166 = vector.extract_strided_slice %165 {offsets = [0, 0], sizes = [8, 48], strides = [1, 1]} : vector<16x48xf32> to vector<8x48xf32>
    %167 = vector.extract_strided_slice %165 {offsets = [8, 0], sizes = [8, 48], strides = [1, 1]} : vector<16x48xf32> to vector<8x48xf32>
    %168 = arith.maximumf %166, %167 : vector<8x48xf32>
    %c72 = arith.constant 72 : index
    %c0_96 = arith.constant 0 : index
    %169 = vector.load %arg30[%c72, %c0_96] : memref<96x48xf32, #tpu.memory_space<vmem>>, vector<8x48xf32>
    tpu.vector_store %arg30[%c72, %c0_96], %168 {strides = array<i32>} : memref<96x48xf32, #tpu.memory_space<vmem>>, vector<8x48xf32>,
    %c0_97 = arith.constant 0 : index
    %c0_98 = arith.constant 0 : index
    %170 = vector.load %arg14[%c0_97, %c0_98] : memref<3x24xf32, #tpu.memory_space<vmem>>, vector<3x24xf32>
    %c0_99 = arith.constant 0 : index
    %c0_100 = arith.constant 0 : index
    %171 = vector.load %arg15[%c0_99, %c0_100] : memref<1x24xf32, #tpu.memory_space<vmem>>, vector<1x24xf32>
    %c0_101 = arith.constant 0 : index
    %c0_102 = arith.constant 0 : index
    %172 = vector.load %arg16[%c0_101, %c0_102] : memref<1x24xf32, #tpu.memory_space<vmem>>, vector<1x24xf32>
    %c0_103 = arith.constant 0 : index
    %c0_104 = arith.constant 0 : index
    %c0_105 = arith.constant 0 : index
    %173 = vector.load %arg10[%c0_103, %c0_104, %c0_105] : memref<4x8x3xf32, #tpu.memory_space<vmem>>, vector<4x8x3xf32>
    %174 = vector.extract_strided_slice %173 {offsets = [0, 0, 0], sizes = [4, 8, 1], strides = [1, 1, 1]} : vector<4x8x3xf32> to vector<4x8x1xf32>
    %175 = vector.extract_strided_slice %170 {offsets = [0, 0], sizes = [1, 24], strides = [1, 1]} : vector<3x24xf32> to vector<1x24xf32>
    %176 = vector.shape_cast %175 : vector<1x24xf32> to vector<1x1x24xf32>
    %177 = vector.broadcast %174 : vector<4x8x1xf32> to vector<4x8x24xf32>
    %178 = vector.broadcast %176 : vector<1x1x24xf32> to vector<4x8x24xf32>
    %179 = arith.mulf %177, %178 : vector<4x8x24xf32>
    %180 = vector.extract_strided_slice %173 {offsets = [0, 0, 1], sizes = [4, 8, 1], strides = [1, 1, 1]} : vector<4x8x3xf32> to vector<4x8x1xf32>
    %181 = vector.extract_strided_slice %170 {offsets = [1, 0], sizes = [1, 24], strides = [1, 1]} : vector<3x24xf32> to vector<1x24xf32>
    %182 = vector.shape_cast %181 : vector<1x24xf32> to vector<1x1x24xf32>
    %183 = vector.broadcast %180 : vector<4x8x1xf32> to vector<4x8x24xf32>
    %184 = vector.broadcast %182 : vector<1x1x24xf32> to vector<4x8x24xf32>
    %185 = arith.mulf %183, %184 : vector<4x8x24xf32>
    %186 = arith.addf %179, %185 : vector<4x8x24xf32>
    %187 = vector.extract_strided_slice %173 {offsets = [0, 0, 2], sizes = [4, 8, 1], strides = [1, 1, 1]} : vector<4x8x3xf32> to vector<4x8x1xf32>
    %188 = vector.extract_strided_slice %170 {offsets = [2, 0], sizes = [1, 24], strides = [1, 1]} : vector<3x24xf32> to vector<1x24xf32>
    %189 = vector.shape_cast %188 : vector<1x24xf32> to vector<1x1x24xf32>
    %190 = vector.broadcast %187 : vector<4x8x1xf32> to vector<4x8x24xf32>
    %191 = vector.broadcast %189 : vector<1x1x24xf32> to vector<4x8x24xf32>
    %192 = arith.mulf %190, %191 : vector<4x8x24xf32>
    %193 = arith.addf %186, %192 : vector<4x8x24xf32>
    %194 = vector.shape_cast %171 : vector<1x24xf32> to vector<1x1x24xf32>
    %195 = vector.broadcast %194 : vector<1x1x24xf32> to vector<4x8x24xf32>
    %196 = arith.mulf %193, %195 : vector<4x8x24xf32>
    %197 = vector.shape_cast %172 : vector<1x24xf32> to vector<1x1x24xf32>
    %198 = vector.broadcast %197 : vector<1x1x24xf32> to vector<4x8x24xf32>
    %199 = arith.addf %196, %198 : vector<4x8x24xf32>
    %cst_106 = arith.constant 0.000000e+00 : f32
    %200 = vector.broadcast %cst_106 : f32 to vector<4x8x24xf32>
    %201 = arith.maximumf %199, %200 : vector<4x8x24xf32>
    %c0_107 = arith.constant 0 : index
    %c0_108 = arith.constant 0 : index
    %c0_109 = arith.constant 0 : index
    %202 = vector.load %arg11[%c0_107, %c0_108, %c0_109] : memref<4x8x3xf32, #tpu.memory_space<vmem>>, vector<4x8x3xf32>
    %203 = vector.extract_strided_slice %202 {offsets = [0, 0, 0], sizes = [4, 8, 1], strides = [1, 1, 1]} : vector<4x8x3xf32> to vector<4x8x1xf32>
    %204 = vector.extract_strided_slice %170 {offsets = [0, 0], sizes = [1, 24], strides = [1, 1]} : vector<3x24xf32> to vector<1x24xf32>
    %205 = vector.shape_cast %204 : vector<1x24xf32> to vector<1x1x24xf32>
    %206 = vector.broadcast %203 : vector<4x8x1xf32> to vector<4x8x24xf32>
    %207 = vector.broadcast %205 : vector<1x1x24xf32> to vector<4x8x24xf32>
    %208 = arith.mulf %206, %207 : vector<4x8x24xf32>
    %209 = vector.extract_strided_slice %202 {offsets = [0, 0, 1], sizes = [4, 8, 1], strides = [1, 1, 1]} : vector<4x8x3xf32> to vector<4x8x1xf32>
    %210 = vector.extract_strided_slice %170 {offsets = [1, 0], sizes = [1, 24], strides = [1, 1]} : vector<3x24xf32> to vector<1x24xf32>
    %211 = vector.shape_cast %210 : vector<1x24xf32> to vector<1x1x24xf32>
    %212 = vector.broadcast %209 : vector<4x8x1xf32> to vector<4x8x24xf32>
    %213 = vector.broadcast %211 : vector<1x1x24xf32> to vector<4x8x24xf32>
    %214 = arith.mulf %212, %213 : vector<4x8x24xf32>
    %215 = arith.addf %208, %214 : vector<4x8x24xf32>
    %216 = vector.extract_strided_slice %202 {offsets = [0, 0, 2], sizes = [4, 8, 1], strides = [1, 1, 1]} : vector<4x8x3xf32> to vector<4x8x1xf32>
    %217 = vector.extract_strided_slice %170 {offsets = [2, 0], sizes = [1, 24], strides = [1, 1]} : vector<3x24xf32> to vector<1x24xf32>
    %218 = vector.shape_cast %217 : vector<1x24xf32> to vector<1x1x24xf32>
    %219 = vector.broadcast %216 : vector<4x8x1xf32> to vector<4x8x24xf32>
    %220 = vector.broadcast %218 : vector<1x1x24xf32> to vector<4x8x24xf32>
    %221 = arith.mulf %219, %220 : vector<4x8x24xf32>
    %222 = arith.addf %215, %221 : vector<4x8x24xf32>
    %223 = vector.shape_cast %171 : vector<1x24xf32> to vector<1x1x24xf32>
    %224 = vector.broadcast %223 : vector<1x1x24xf32> to vector<4x8x24xf32>
    %225 = arith.mulf %222, %224 : vector<4x8x24xf32>
    %226 = vector.shape_cast %172 : vector<1x24xf32> to vector<1x1x24xf32>
    %227 = vector.broadcast %226 : vector<1x1x24xf32> to vector<4x8x24xf32>
    %228 = arith.addf %225, %227 : vector<4x8x24xf32>
    %cst_110 = arith.constant 0.000000e+00 : f32
    %229 = vector.broadcast %cst_110 : f32 to vector<4x8x24xf32>
    %230 = arith.maximumf %228, %229 : vector<4x8x24xf32>
    %231 = arith.maximumf %201, %230 : vector<4x8x24xf32>
    %c0_111 = arith.constant 0 : index
    %c0_112 = arith.constant 0 : index
    %c0_113 = arith.constant 0 : index
    %232 = vector.load %arg12[%c0_111, %c0_112, %c0_113] : memref<4x8x3xf32, #tpu.memory_space<vmem>>, vector<4x8x3xf32>
    %233 = vector.extract_strided_slice %232 {offsets = [0, 0, 0], sizes = [4, 8, 1], strides = [1, 1, 1]} : vector<4x8x3xf32> to vector<4x8x1xf32>
    %234 = vector.extract_strided_slice %170 {offsets = [0, 0], sizes = [1, 24], strides = [1, 1]} : vector<3x24xf32> to vector<1x24xf32>
    %235 = vector.shape_cast %234 : vector<1x24xf32> to vector<1x1x24xf32>
    %236 = vector.broadcast %233 : vector<4x8x1xf32> to vector<4x8x24xf32>
    %237 = vector.broadcast %235 : vector<1x1x24xf32> to vector<4x8x24xf32>
    %238 = arith.mulf %236, %237 : vector<4x8x24xf32>
    %239 = vector.extract_strided_slice %232 {offsets = [0, 0, 1], sizes = [4, 8, 1], strides = [1, 1, 1]} : vector<4x8x3xf32> to vector<4x8x1xf32>
    %240 = vector.extract_strided_slice %170 {offsets = [1, 0], sizes = [1, 24], strides = [1, 1]} : vector<3x24xf32> to vector<1x24xf32>
    %241 = vector.shape_cast %240 : vector<1x24xf32> to vector<1x1x24xf32>
    %242 = vector.broadcast %239 : vector<4x8x1xf32> to vector<4x8x24xf32>
    %243 = vector.broadcast %241 : vector<1x1x24xf32> to vector<4x8x24xf32>
    %244 = arith.mulf %242, %243 : vector<4x8x24xf32>
    %245 = arith.addf %238, %244 : vector<4x8x24xf32>
    %246 = vector.extract_strided_slice %232 {offsets = [0, 0, 2], sizes = [4, 8, 1], strides = [1, 1, 1]} : vector<4x8x3xf32> to vector<4x8x1xf32>
    %247 = vector.extract_strided_slice %170 {offsets = [2, 0], sizes = [1, 24], strides = [1, 1]} : vector<3x24xf32> to vector<1x24xf32>
    %248 = vector.shape_cast %247 : vector<1x24xf32> to vector<1x1x24xf32>
    %249 = vector.broadcast %246 : vector<4x8x1xf32> to vector<4x8x24xf32>
    %250 = vector.broadcast %248 : vector<1x1x24xf32> to vector<4x8x24xf32>
    %251 = arith.mulf %249, %250 : vector<4x8x24xf32>
    %252 = arith.addf %245, %251 : vector<4x8x24xf32>
    %253 = vector.shape_cast %171 : vector<1x24xf32> to vector<1x1x24xf32>
    %254 = vector.broadcast %253 : vector<1x1x24xf32> to vector<4x8x24xf32>
    %255 = arith.mulf %252, %254 : vector<4x8x24xf32>
    %256 = vector.shape_cast %172 : vector<1x24xf32> to vector<1x1x24xf32>
    %257 = vector.broadcast %256 : vector<1x1x24xf32> to vector<4x8x24xf32>
    %258 = arith.addf %255, %257 : vector<4x8x24xf32>
    %cst_114 = arith.constant 0.000000e+00 : f32
    %259 = vector.broadcast %cst_114 : f32 to vector<4x8x24xf32>
    %260 = arith.maximumf %258, %259 : vector<4x8x24xf32>
    %c0_115 = arith.constant 0 : index
    %c0_116 = arith.constant 0 : index
    %c0_117 = arith.constant 0 : index
    %261 = vector.load %arg13[%c0_115, %c0_116, %c0_117] : memref<4x8x3xf32, #tpu.memory_space<vmem>>, vector<4x8x3xf32>
    %262 = vector.extract_strided_slice %261 {offsets = [0, 0, 0], sizes = [4, 8, 1], strides = [1, 1, 1]} : vector<4x8x3xf32> to vector<4x8x1xf32>
    %263 = vector.extract_strided_slice %170 {offsets = [0, 0], sizes = [1, 24], strides = [1, 1]} : vector<3x24xf32> to vector<1x24xf32>
    %264 = vector.shape_cast %263 : vector<1x24xf32> to vector<1x1x24xf32>
    %265 = vector.broadcast %262 : vector<4x8x1xf32> to vector<4x8x24xf32>
    %266 = vector.broadcast %264 : vector<1x1x24xf32> to vector<4x8x24xf32>
    %267 = arith.mulf %265, %266 : vector<4x8x24xf32>
    %268 = vector.extract_strided_slice %261 {offsets = [0, 0, 1], sizes = [4, 8, 1], strides = [1, 1, 1]} : vector<4x8x3xf32> to vector<4x8x1xf32>
    %269 = vector.extract_strided_slice %170 {offsets = [1, 0], sizes = [1, 24], strides = [1, 1]} : vector<3x24xf32> to vector<1x24xf32>
    %270 = vector.shape_cast %269 : vector<1x24xf32> to vector<1x1x24xf32>
    %271 = vector.broadcast %268 : vector<4x8x1xf32> to vector<4x8x24xf32>
    %272 = vector.broadcast %270 : vector<1x1x24xf32> to vector<4x8x24xf32>
    %273 = arith.mulf %271, %272 : vector<4x8x24xf32>
    %274 = arith.addf %267, %273 : vector<4x8x24xf32>
    %275 = vector.extract_strided_slice %261 {offsets = [0, 0, 2], sizes = [4, 8, 1], strides = [1, 1, 1]} : vector<4x8x3xf32> to vector<4x8x1xf32>
    %276 = vector.extract_strided_slice %170 {offsets = [2, 0], sizes = [1, 24], strides = [1, 1]} : vector<3x24xf32> to vector<1x24xf32>
    %277 = vector.shape_cast %276 : vector<1x24xf32> to vector<1x1x24xf32>
    %278 = vector.broadcast %275 : vector<4x8x1xf32> to vector<4x8x24xf32>
    %279 = vector.broadcast %277 : vector<1x1x24xf32> to vector<4x8x24xf32>
    %280 = arith.mulf %278, %279 : vector<4x8x24xf32>
    %281 = arith.addf %274, %280 : vector<4x8x24xf32>
    %282 = vector.shape_cast %171 : vector<1x24xf32> to vector<1x1x24xf32>
    %283 = vector.broadcast %282 : vector<1x1x24xf32> to vector<4x8x24xf32>
    %284 = arith.mulf %281, %283 : vector<4x8x24xf32>
    %285 = vector.shape_cast %172 : vector<1x24xf32> to vector<1x1x24xf32>
    %286 = vector.broadcast %285 : vector<1x1x24xf32> to vector<4x8x24xf32>
    %287 = arith.addf %284, %286 : vector<4x8x24xf32>
    %cst_118 = arith.constant 0.000000e+00 : f32
    %288 = vector.broadcast %cst_118 : f32 to vector<4x8x24xf32>
    %289 = arith.maximumf %287, %288 : vector<4x8x24xf32>
    %290 = arith.maximumf %260, %289 : vector<4x8x24xf32>
    %cst_119 = arith.constant 0.000000e+00 : f32
    %291 = vector.broadcast %cst_119 : f32 to vector<4x9x24xf32>
    %c0_120 = arith.constant 0 : index
    %c0_121 = arith.constant 0 : index
    %c0_122 = arith.constant 0 : index
    %292 = vector.load %arg33[%c0_120, %c0_121, %c0_122] : memref<4x9x24xf32, #tpu.memory_space<vmem>>, vector<4x9x24xf32>
    tpu.vector_store %arg33[%c0_120, %c0_121, %c0_122], %291 {strides = array<i32>} : memref<4x9x24xf32, #tpu.memory_space<vmem>>, vector<4x9x24xf32>,
    %cst_123 = arith.constant 0.000000e+00 : f32
    %293 = vector.broadcast %cst_123 : f32 to vector<4x9x24xf32>
    %c0_124 = arith.constant 0 : index
    %c0_125 = arith.constant 0 : index
    %c0_126 = arith.constant 0 : index
    %294 = vector.load %arg34[%c0_124, %c0_125, %c0_126] : memref<4x9x24xf32, #tpu.memory_space<vmem>>, vector<4x9x24xf32>
    tpu.vector_store %arg34[%c0_124, %c0_125, %c0_126], %293 {strides = array<i32>} : memref<4x9x24xf32, #tpu.memory_space<vmem>>, vector<4x9x24xf32>,
    %c0_127 = arith.constant 0 : index
    %c0_128 = arith.constant 0 : index
    %c0_129 = arith.constant 0 : index
    %295 = vector.load %arg33[%c0_127, %c0_128, %c0_129] : memref<4x9x24xf32, #tpu.memory_space<vmem>>, vector<4x8x24xf32>
    tpu.vector_store %arg33[%c0_127, %c0_128, %c0_129], %231 {strides = array<i32>} : memref<4x9x24xf32, #tpu.memory_space<vmem>>, vector<4x8x24xf32>,
    %c0_130 = arith.constant 0 : index
    %c1_131 = arith.constant 1 : index
    %c0_132 = arith.constant 0 : index
    %296 = vector.load %arg34[%c0_130, %c1_131, %c0_132] : memref<4x9x24xf32, #tpu.memory_space<vmem>>, vector<4x8x24xf32>
    tpu.vector_store %arg34[%c0_130, %c1_131, %c0_132], %290 {strides = array<i32>} : memref<4x9x24xf32, #tpu.memory_space<vmem>>, vector<4x8x24xf32>,
    %c0_133 = arith.constant 0 : index
    %c0_134 = arith.constant 0 : index
    %c0_135 = arith.constant 0 : index
    %297 = vector.load %arg34[%c0_133, %c0_134, %c0_135] : memref<4x9x24xf32, #tpu.memory_space<vmem>>, vector<1x8x24xf32>
    %298 = vector.shape_cast %297 : vector<1x8x24xf32> to vector<8x24xf32>
    %c0_136 = arith.constant 0 : index
    %c0_137 = arith.constant 0 : index
    %c0_138 = arith.constant 0 : index
    %299 = vector.load %arg33[%c0_136, %c0_137, %c0_138] : memref<4x9x24xf32, #tpu.memory_space<vmem>>, vector<1x8x24xf32>
    %300 = vector.shape_cast %299 : vector<1x8x24xf32> to vector<8x24xf32>
    %c1_139 = arith.constant 1 : index
    %c0_140 = arith.constant 0 : index
    %c0_141 = arith.constant 0 : index
    %301 = vector.load %arg34[%c1_139, %c0_140, %c0_141] : memref<4x9x24xf32, #tpu.memory_space<vmem>>, vector<1x8x24xf32>
    %302 = vector.shape_cast %301 : vector<1x8x24xf32> to vector<8x24xf32>
    %c1_142 = arith.constant 1 : index
    %c0_143 = arith.constant 0 : index
    %c0_144 = arith.constant 0 : index
    %303 = vector.load %arg33[%c1_142, %c0_143, %c0_144] : memref<4x9x24xf32, #tpu.memory_space<vmem>>, vector<1x8x24xf32>
    %304 = vector.shape_cast %303 : vector<1x8x24xf32> to vector<8x24xf32>
    %c2_145 = arith.constant 2 : index
    %c0_146 = arith.constant 0 : index
    %c0_147 = arith.constant 0 : index
    %305 = vector.load %arg34[%c2_145, %c0_146, %c0_147] : memref<4x9x24xf32, #tpu.memory_space<vmem>>, vector<1x8x24xf32>
    %306 = vector.shape_cast %305 : vector<1x8x24xf32> to vector<8x24xf32>
    %c2_148 = arith.constant 2 : index
    %c0_149 = arith.constant 0 : index
    %c0_150 = arith.constant 0 : index
    %307 = vector.load %arg33[%c2_148, %c0_149, %c0_150] : memref<4x9x24xf32, #tpu.memory_space<vmem>>, vector<1x8x24xf32>
    %308 = vector.shape_cast %307 : vector<1x8x24xf32> to vector<8x24xf32>
    %c3_151 = arith.constant 3 : index
    %c0_152 = arith.constant 0 : index
    %c0_153 = arith.constant 0 : index
    %309 = vector.load %arg34[%c3_151, %c0_152, %c0_153] : memref<4x9x24xf32, #tpu.memory_space<vmem>>, vector<1x8x24xf32>
    %310 = vector.shape_cast %309 : vector<1x8x24xf32> to vector<8x24xf32>
    %c3_154 = arith.constant 3 : index
    %c0_155 = arith.constant 0 : index
    %c0_156 = arith.constant 0 : index
    %311 = vector.load %arg33[%c3_154, %c0_155, %c0_156] : memref<4x9x24xf32, #tpu.memory_space<vmem>>, vector<1x8x24xf32>
    %312 = vector.shape_cast %311 : vector<1x8x24xf32> to vector<8x24xf32>
    %313 = tpu.concatenate %298, %300, %302, %304, %306, %308, %310, %312 in 0 : vector<8x24xf32>, vector<8x24xf32>, vector<8x24xf32>, vector<8x24xf32>, vector<8x24xf32>, vector<8x24xf32>, vector<8x24xf32>, vector<8x24xf32> -> vector<64x24xf32>
    %c0_157 = arith.constant 0 : index
    %c0_158 = arith.constant 0 : index
    %c0_159 = arith.constant 0 : index
    %314 = vector.load %arg17[%c0_157, %c0_158, %c0_159] : memref<3x24x48xbf16, #tpu.memory_space<vmem>>, vector<1x24x48xbf16>
    %315 = vector.shape_cast %314 : vector<1x24x48xbf16> to vector<24x48xbf16>
    %316 = arith.truncf %313 : vector<64x24xf32> to vector<64x24xbf16>
    %cst_160 = arith.constant dense<0.000000e+00> : vector<64x48xf32>
    %317 = tpu.matmul %316, %315, %cst_160 {dimension_numbers = #tpu.dot_dimension_numbers<[1], [0], [0], [1], [0, 0, 1, 1], [], []>} : vector<64x24xbf16>, vector<24x48xbf16>, vector<64x48xf32> -> vector<64x48xf32>
    %c0_161 = arith.constant 0 : index
    %c0_162 = arith.constant 0 : index
    %c0_163 = arith.constant 0 : index
    %318 = vector.load %arg33[%c0_161, %c0_162, %c0_163] : memref<4x9x24xf32, #tpu.memory_space<vmem>>, vector<1x8x24xf32>
    %319 = vector.shape_cast %318 : vector<1x8x24xf32> to vector<8x24xf32>
    %c0_164 = arith.constant 0 : index
    %c1_165 = arith.constant 1 : index
    %c0_166 = arith.constant 0 : index
    %320 = vector.load %arg34[%c0_164, %c1_165, %c0_166] : memref<4x9x24xf32, #tpu.memory_space<vmem>>, vector<1x8x24xf32>
    %321 = vector.shape_cast %320 : vector<1x8x24xf32> to vector<8x24xf32>
    %c1_167 = arith.constant 1 : index
    %c0_168 = arith.constant 0 : index
    %c0_169 = arith.constant 0 : index
    %322 = vector.load %arg33[%c1_167, %c0_168, %c0_169] : memref<4x9x24xf32, #tpu.memory_space<vmem>>, vector<1x8x24xf32>
    %323 = vector.shape_cast %322 : vector<1x8x24xf32> to vector<8x24xf32>
    %c1_170 = arith.constant 1 : index
    %c1_171 = arith.constant 1 : index
    %c0_172 = arith.constant 0 : index
    %324 = vector.load %arg34[%c1_170, %c1_171, %c0_172] : memref<4x9x24xf32, #tpu.memory_space<vmem>>, vector<1x8x24xf32>
    %325 = vector.shape_cast %324 : vector<1x8x24xf32> to vector<8x24xf32>
    %c2_173 = arith.constant 2 : index
    %c0_174 = arith.constant 0 : index
    %c0_175 = arith.constant 0 : index
    %326 = vector.load %arg33[%c2_173, %c0_174, %c0_175] : memref<4x9x24xf32, #tpu.memory_space<vmem>>, vector<1x8x24xf32>
    %327 = vector.shape_cast %326 : vector<1x8x24xf32> to vector<8x24xf32>
    %c2_176 = arith.constant 2 : index
    %c1_177 = arith.constant 1 : index
    %c0_178 = arith.constant 0 : index
    %328 = vector.load %arg34[%c2_176, %c1_177, %c0_178] : memref<4x9x24xf32, #tpu.memory_space<vmem>>, vector<1x8x24xf32>
    %329 = vector.shape_cast %328 : vector<1x8x24xf32> to vector<8x24xf32>
    %c3_179 = arith.constant 3 : index
    %c0_180 = arith.constant 0 : index
    %c0_181 = arith.constant 0 : index
    %330 = vector.load %arg33[%c3_179, %c0_180, %c0_181] : memref<4x9x24xf32, #tpu.memory_space<vmem>>, vector<1x8x24xf32>
    %331 = vector.shape_cast %330 : vector<1x8x24xf32> to vector<8x24xf32>
    %c3_182 = arith.constant 3 : index
    %c1_183 = arith.constant 1 : index
    %c0_184 = arith.constant 0 : index
    %332 = vector.load %arg34[%c3_182, %c1_183, %c0_184] : memref<4x9x24xf32, #tpu.memory_space<vmem>>, vector<1x8x24xf32>
    %333 = vector.shape_cast %332 : vector<1x8x24xf32> to vector<8x24xf32>
    %334 = tpu.concatenate %319, %321, %323, %325, %327, %329, %331, %333 in 0 : vector<8x24xf32>, vector<8x24xf32>, vector<8x24xf32>, vector<8x24xf32>, vector<8x24xf32>, vector<8x24xf32>, vector<8x24xf32>, vector<8x24xf32> -> vector<64x24xf32>
    %c1_185 = arith.constant 1 : index
    %c0_186 = arith.constant 0 : index
    %c0_187 = arith.constant 0 : index
    %335 = vector.load %arg17[%c1_185, %c0_186, %c0_187] : memref<3x24x48xbf16, #tpu.memory_space<vmem>>, vector<1x24x48xbf16>
    %336 = vector.shape_cast %335 : vector<1x24x48xbf16> to vector<24x48xbf16>
    %337 = arith.truncf %334 : vector<64x24xf32> to vector<64x24xbf16>
    %cst_188 = arith.constant dense<0.000000e+00> : vector<64x48xf32>
    %338 = tpu.matmul %337, %336, %cst_188 {dimension_numbers = #tpu.dot_dimension_numbers<[1], [0], [0], [1], [0, 0, 1, 1], [], []>} : vector<64x24xbf16>, vector<24x48xbf16>, vector<64x48xf32> -> vector<64x48xf32>
    %339 = arith.addf %317, %338 : vector<64x48xf32>
    %c0_189 = arith.constant 0 : index
    %c1_190 = arith.constant 1 : index
    %c0_191 = arith.constant 0 : index
    %340 = vector.load %arg34[%c0_189, %c1_190, %c0_191] : memref<4x9x24xf32, #tpu.memory_space<vmem>>, vector<1x8x24xf32>
    %341 = vector.shape_cast %340 : vector<1x8x24xf32> to vector<8x24xf32>
    %c0_192 = arith.constant 0 : index
    %c1_193 = arith.constant 1 : index
    %c0_194 = arith.constant 0 : index
    %342 = vector.load %arg33[%c0_192, %c1_193, %c0_194] : memref<4x9x24xf32, #tpu.memory_space<vmem>>, vector<1x8x24xf32>
    %343 = vector.shape_cast %342 : vector<1x8x24xf32> to vector<8x24xf32>
    %c1_195 = arith.constant 1 : index
    %c1_196 = arith.constant 1 : index
    %c0_197 = arith.constant 0 : index
    %344 = vector.load %arg34[%c1_195, %c1_196, %c0_197] : memref<4x9x24xf32, #tpu.memory_space<vmem>>, vector<1x8x24xf32>
    %345 = vector.shape_cast %344 : vector<1x8x24xf32> to vector<8x24xf32>
    %c1_198 = arith.constant 1 : index
    %c1_199 = arith.constant 1 : index
    %c0_200 = arith.constant 0 : index
    %346 = vector.load %arg33[%c1_198, %c1_199, %c0_200] : memref<4x9x24xf32, #tpu.memory_space<vmem>>, vector<1x8x24xf32>
    %347 = vector.shape_cast %346 : vector<1x8x24xf32> to vector<8x24xf32>
    %c2_201 = arith.constant 2 : index
    %c1_202 = arith.constant 1 : index
    %c0_203 = arith.constant 0 : index
    %348 = vector.load %arg34[%c2_201, %c1_202, %c0_203] : memref<4x9x24xf32, #tpu.memory_space<vmem>>, vector<1x8x24xf32>
    %349 = vector.shape_cast %348 : vector<1x8x24xf32> to vector<8x24xf32>
    %c2_204 = arith.constant 2 : index
    %c1_205 = arith.constant 1 : index
    %c0_206 = arith.constant 0 : index
    %350 = vector.load %arg33[%c2_204, %c1_205, %c0_206] : memref<4x9x24xf32, #tpu.memory_space<vmem>>, vector<1x8x24xf32>
    %351 = vector.shape_cast %350 : vector<1x8x24xf32> to vector<8x24xf32>
    %c3_207 = arith.constant 3 : index
    %c1_208 = arith.constant 1 : index
    %c0_209 = arith.constant 0 : index
    %352 = vector.load %arg34[%c3_207, %c1_208, %c0_209] : memref<4x9x24xf32, #tpu.memory_space<vmem>>, vector<1x8x24xf32>
    %353 = vector.shape_cast %352 : vector<1x8x24xf32> to vector<8x24xf32>
    %c3_210 = arith.constant 3 : index
    %c1_211 = arith.constant 1 : index
    %c0_212 = arith.constant 0 : index
    %354 = vector.load %arg33[%c3_210, %c1_211, %c0_212] : memref<4x9x24xf32, #tpu.memory_space<vmem>>, vector<1x8x24xf32>
    %355 = vector.shape_cast %354 : vector<1x8x24xf32> to vector<8x24xf32>
    %356 = tpu.concatenate %341, %343, %345, %347, %349, %351, %353, %355 in 0 : vector<8x24xf32>, vector<8x24xf32>, vector<8x24xf32>, vector<8x24xf32>, vector<8x24xf32>, vector<8x24xf32>, vector<8x24xf32>, vector<8x24xf32> -> vector<64x24xf32>
    %c2_213 = arith.constant 2 : index
    %c0_214 = arith.constant 0 : index
    %c0_215 = arith.constant 0 : index
    %357 = vector.load %arg17[%c2_213, %c0_214, %c0_215] : memref<3x24x48xbf16, #tpu.memory_space<vmem>>, vector<1x24x48xbf16>
    %358 = vector.shape_cast %357 : vector<1x24x48xbf16> to vector<24x48xbf16>
    %359 = arith.truncf %356 : vector<64x24xf32> to vector<64x24xbf16>
    %cst_216 = arith.constant dense<0.000000e+00> : vector<64x48xf32>
    %360 = tpu.matmul %359, %358, %cst_216 {dimension_numbers = #tpu.dot_dimension_numbers<[1], [0], [0], [1], [0, 0, 1, 1], [], []>} : vector<64x24xbf16>, vector<24x48xbf16>, vector<64x48xf32> -> vector<64x48xf32>
    %361 = arith.addf %339, %360 : vector<64x48xf32>
    %c0_217 = arith.constant 0 : index
    %c0_218 = arith.constant 0 : index
    %362 = vector.load %arg18[%c0_217, %c0_218] : memref<1x48xf32, #tpu.memory_space<vmem>>, vector<1x48xf32>
    %363 = vector.broadcast %362 : vector<1x48xf32> to vector<64x48xf32>
    %364 = arith.mulf %361, %363 : vector<64x48xf32>
    %c0_219 = arith.constant 0 : index
    %c0_220 = arith.constant 0 : index
    %365 = vector.load %arg19[%c0_219, %c0_220] : memref<1x48xf32, #tpu.memory_space<vmem>>, vector<1x48xf32>
    %366 = vector.broadcast %365 : vector<1x48xf32> to vector<64x48xf32>
    %367 = arith.addf %364, %366 : vector<64x48xf32>
    %cst_221 = arith.constant 0.000000e+00 : f32
    %368 = vector.broadcast %cst_221 : f32 to vector<64x48xf32>
    %369 = arith.maximumf %367, %368 : vector<64x48xf32>
    %370 = vector.extract_strided_slice %369 {offsets = [0, 0], sizes = [16, 48], strides = [1, 1]} : vector<64x48xf32> to vector<16x48xf32>
    %371 = vector.extract_strided_slice %370 {offsets = [0, 0], sizes = [8, 48], strides = [1, 1]} : vector<16x48xf32> to vector<8x48xf32>
    %372 = vector.extract_strided_slice %370 {offsets = [8, 0], sizes = [8, 48], strides = [1, 1]} : vector<16x48xf32> to vector<8x48xf32>
    %373 = arith.maximumf %371, %372 : vector<8x48xf32>
    %c8 = arith.constant 8 : index
    %c0_222 = arith.constant 0 : index
    %374 = vector.load %arg30[%c8, %c0_222] : memref<96x48xf32, #tpu.memory_space<vmem>>, vector<8x48xf32>
    tpu.vector_store %arg30[%c8, %c0_222], %373 {strides = array<i32>} : memref<96x48xf32, #tpu.memory_space<vmem>>, vector<8x48xf32>,
    %375 = vector.extract_strided_slice %369 {offsets = [16, 0], sizes = [16, 48], strides = [1, 1]} : vector<64x48xf32> to vector<16x48xf32>
    %376 = vector.extract_strided_slice %375 {offsets = [0, 0], sizes = [8, 48], strides = [1, 1]} : vector<16x48xf32> to vector<8x48xf32>
    %377 = vector.extract_strided_slice %375 {offsets = [8, 0], sizes = [8, 48], strides = [1, 1]} : vector<16x48xf32> to vector<8x48xf32>
    %378 = arith.maximumf %376, %377 : vector<8x48xf32>
    %c32 = arith.constant 32 : index
    %c0_223 = arith.constant 0 : index
    %379 = vector.load %arg30[%c32, %c0_223] : memref<96x48xf32, #tpu.memory_space<vmem>>, vector<8x48xf32>
    tpu.vector_store %arg30[%c32, %c0_223], %378 {strides = array<i32>} : memref<96x48xf32, #tpu.memory_space<vmem>>, vector<8x48xf32>,
    %380 = vector.extract_strided_slice %369 {offsets = [32, 0], sizes = [16, 48], strides = [1, 1]} : vector<64x48xf32> to vector<16x48xf32>
    %381 = vector.extract_strided_slice %380 {offsets = [0, 0], sizes = [8, 48], strides = [1, 1]} : vector<16x48xf32> to vector<8x48xf32>
    %382 = vector.extract_strided_slice %380 {offsets = [8, 0], sizes = [8, 48], strides = [1, 1]} : vector<16x48xf32> to vector<8x48xf32>
    %383 = arith.maximumf %381, %382 : vector<8x48xf32>
    %c56 = arith.constant 56 : index
    %c0_224 = arith.constant 0 : index
    %384 = vector.load %arg30[%c56, %c0_224] : memref<96x48xf32, #tpu.memory_space<vmem>>, vector<8x48xf32>
    tpu.vector_store %arg30[%c56, %c0_224], %383 {strides = array<i32>} : memref<96x48xf32, #tpu.memory_space<vmem>>, vector<8x48xf32>,
    %385 = vector.extract_strided_slice %369 {offsets = [48, 0], sizes = [16, 48], strides = [1, 1]} : vector<64x48xf32> to vector<16x48xf32>
    %386 = vector.extract_strided_slice %385 {offsets = [0, 0], sizes = [8, 48], strides = [1, 1]} : vector<16x48xf32> to vector<8x48xf32>
    %387 = vector.extract_strided_slice %385 {offsets = [8, 0], sizes = [8, 48], strides = [1, 1]} : vector<16x48xf32> to vector<8x48xf32>
    %388 = arith.maximumf %386, %387 : vector<8x48xf32>
    %c80 = arith.constant 80 : index
    %c0_225 = arith.constant 0 : index
    %389 = vector.load %arg30[%c80, %c0_225] : memref<96x48xf32, #tpu.memory_space<vmem>>, vector<8x48xf32>
    tpu.vector_store %arg30[%c80, %c0_225], %388 {strides = array<i32>} : memref<96x48xf32, #tpu.memory_space<vmem>>, vector<8x48xf32>,
    %c0_226 = arith.constant 0 : index
    %c0_227 = arith.constant 0 : index
    %390 = vector.load %arg24[%c0_226, %c0_227] : memref<4x24xf32, #tpu.memory_space<vmem>>, vector<4x24xf32>
    %c0_228 = arith.constant 0 : index
    %c0_229 = arith.constant 0 : index
    %391 = vector.load %arg25[%c0_228, %c0_229] : memref<1x24xf32, #tpu.memory_space<vmem>>, vector<1x24xf32>
    %c0_230 = arith.constant 0 : index
    %c0_231 = arith.constant 0 : index
    %392 = vector.load %arg26[%c0_230, %c0_231] : memref<1x24xf32, #tpu.memory_space<vmem>>, vector<1x24xf32>
    %c0_232 = arith.constant 0 : index
    %c0_233 = arith.constant 0 : index
    %c0_234 = arith.constant 0 : index
    %393 = vector.load %arg20[%c0_232, %c0_233, %c0_234] : memref<4x8x4xf32, #tpu.memory_space<vmem>>, vector<4x8x4xf32>
    %394 = vector.extract_strided_slice %393 {offsets = [0, 0, 0], sizes = [4, 8, 1], strides = [1, 1, 1]} : vector<4x8x4xf32> to vector<4x8x1xf32>
    %395 = vector.extract_strided_slice %390 {offsets = [0, 0], sizes = [1, 24], strides = [1, 1]} : vector<4x24xf32> to vector<1x24xf32>
    %396 = vector.shape_cast %395 : vector<1x24xf32> to vector<1x1x24xf32>
    %397 = vector.broadcast %394 : vector<4x8x1xf32> to vector<4x8x24xf32>
    %398 = vector.broadcast %396 : vector<1x1x24xf32> to vector<4x8x24xf32>
    %399 = arith.mulf %397, %398 : vector<4x8x24xf32>
    %400 = vector.extract_strided_slice %393 {offsets = [0, 0, 1], sizes = [4, 8, 1], strides = [1, 1, 1]} : vector<4x8x4xf32> to vector<4x8x1xf32>
    %401 = vector.extract_strided_slice %390 {offsets = [1, 0], sizes = [1, 24], strides = [1, 1]} : vector<4x24xf32> to vector<1x24xf32>
    %402 = vector.shape_cast %401 : vector<1x24xf32> to vector<1x1x24xf32>
    %403 = vector.broadcast %400 : vector<4x8x1xf32> to vector<4x8x24xf32>
    %404 = vector.broadcast %402 : vector<1x1x24xf32> to vector<4x8x24xf32>
    %405 = arith.mulf %403, %404 : vector<4x8x24xf32>
    %406 = arith.addf %399, %405 : vector<4x8x24xf32>
    %407 = vector.extract_strided_slice %393 {offsets = [0, 0, 2], sizes = [4, 8, 1], strides = [1, 1, 1]} : vector<4x8x4xf32> to vector<4x8x1xf32>
    %408 = vector.extract_strided_slice %390 {offsets = [2, 0], sizes = [1, 24], strides = [1, 1]} : vector<4x24xf32> to vector<1x24xf32>
    %409 = vector.shape_cast %408 : vector<1x24xf32> to vector<1x1x24xf32>
    %410 = vector.broadcast %407 : vector<4x8x1xf32> to vector<4x8x24xf32>
    %411 = vector.broadcast %409 : vector<1x1x24xf32> to vector<4x8x24xf32>
    %412 = arith.mulf %410, %411 : vector<4x8x24xf32>
    %413 = arith.addf %406, %412 : vector<4x8x24xf32>
    %414 = vector.extract_strided_slice %393 {offsets = [0, 0, 3], sizes = [4, 8, 1], strides = [1, 1, 1]} : vector<4x8x4xf32> to vector<4x8x1xf32>
    %415 = vector.extract_strided_slice %390 {offsets = [3, 0], sizes = [1, 24], strides = [1, 1]} : vector<4x24xf32> to vector<1x24xf32>
    %416 = vector.shape_cast %415 : vector<1x24xf32> to vector<1x1x24xf32>
    %417 = vector.broadcast %414 : vector<4x8x1xf32> to vector<4x8x24xf32>
    %418 = vector.broadcast %416 : vector<1x1x24xf32> to vector<4x8x24xf32>
    %419 = arith.mulf %417, %418 : vector<4x8x24xf32>
    %420 = arith.addf %413, %419 : vector<4x8x24xf32>
    %421 = vector.shape_cast %391 : vector<1x24xf32> to vector<1x1x24xf32>
    %422 = vector.broadcast %421 : vector<1x1x24xf32> to vector<4x8x24xf32>
    %423 = arith.mulf %420, %422 : vector<4x8x24xf32>
    %424 = vector.shape_cast %392 : vector<1x24xf32> to vector<1x1x24xf32>
    %425 = vector.broadcast %424 : vector<1x1x24xf32> to vector<4x8x24xf32>
    %426 = arith.addf %423, %425 : vector<4x8x24xf32>
    %cst_235 = arith.constant 0.000000e+00 : f32
    %427 = vector.broadcast %cst_235 : f32 to vector<4x8x24xf32>
    %428 = arith.maximumf %426, %427 : vector<4x8x24xf32>
    %c0_236 = arith.constant 0 : index
    %c0_237 = arith.constant 0 : index
    %c0_238 = arith.constant 0 : index
    %429 = vector.load %arg21[%c0_236, %c0_237, %c0_238] : memref<4x8x4xf32, #tpu.memory_space<vmem>>, vector<4x8x4xf32>
    %430 = vector.extract_strided_slice %429 {offsets = [0, 0, 0], sizes = [4, 8, 1], strides = [1, 1, 1]} : vector<4x8x4xf32> to vector<4x8x1xf32>
    %431 = vector.extract_strided_slice %390 {offsets = [0, 0], sizes = [1, 24], strides = [1, 1]} : vector<4x24xf32> to vector<1x24xf32>
    %432 = vector.shape_cast %431 : vector<1x24xf32> to vector<1x1x24xf32>
    %433 = vector.broadcast %430 : vector<4x8x1xf32> to vector<4x8x24xf32>
    %434 = vector.broadcast %432 : vector<1x1x24xf32> to vector<4x8x24xf32>
    %435 = arith.mulf %433, %434 : vector<4x8x24xf32>
    %436 = vector.extract_strided_slice %429 {offsets = [0, 0, 1], sizes = [4, 8, 1], strides = [1, 1, 1]} : vector<4x8x4xf32> to vector<4x8x1xf32>
    %437 = vector.extract_strided_slice %390 {offsets = [1, 0], sizes = [1, 24], strides = [1, 1]} : vector<4x24xf32> to vector<1x24xf32>
    %438 = vector.shape_cast %437 : vector<1x24xf32> to vector<1x1x24xf32>
    %439 = vector.broadcast %436 : vector<4x8x1xf32> to vector<4x8x24xf32>
    %440 = vector.broadcast %438 : vector<1x1x24xf32> to vector<4x8x24xf32>
    %441 = arith.mulf %439, %440 : vector<4x8x24xf32>
    %442 = arith.addf %435, %441 : vector<4x8x24xf32>
    %443 = vector.extract_strided_slice %429 {offsets = [0, 0, 2], sizes = [4, 8, 1], strides = [1, 1, 1]} : vector<4x8x4xf32> to vector<4x8x1xf32>
    %444 = vector.extract_strided_slice %390 {offsets = [2, 0], sizes = [1, 24], strides = [1, 1]} : vector<4x24xf32> to vector<1x24xf32>
    %445 = vector.shape_cast %444 : vector<1x24xf32> to vector<1x1x24xf32>
    %446 = vector.broadcast %443 : vector<4x8x1xf32> to vector<4x8x24xf32>
    %447 = vector.broadcast %445 : vector<1x1x24xf32> to vector<4x8x24xf32>
    %448 = arith.mulf %446, %447 : vector<4x8x24xf32>
    %449 = arith.addf %442, %448 : vector<4x8x24xf32>
    %450 = vector.extract_strided_slice %429 {offsets = [0, 0, 3], sizes = [4, 8, 1], strides = [1, 1, 1]} : vector<4x8x4xf32> to vector<4x8x1xf32>
    %451 = vector.extract_strided_slice %390 {offsets = [3, 0], sizes = [1, 24], strides = [1, 1]} : vector<4x24xf32> to vector<1x24xf32>
    %452 = vector.shape_cast %451 : vector<1x24xf32> to vector<1x1x24xf32>
    %453 = vector.broadcast %450 : vector<4x8x1xf32> to vector<4x8x24xf32>
    %454 = vector.broadcast %452 : vector<1x1x24xf32> to vector<4x8x24xf32>
    %455 = arith.mulf %453, %454 : vector<4x8x24xf32>
    %456 = arith.addf %449, %455 : vector<4x8x24xf32>
    %457 = vector.shape_cast %391 : vector<1x24xf32> to vector<1x1x24xf32>
    %458 = vector.broadcast %457 : vector<1x1x24xf32> to vector<4x8x24xf32>
    %459 = arith.mulf %456, %458 : vector<4x8x24xf32>
    %460 = vector.shape_cast %392 : vector<1x24xf32> to vector<1x1x24xf32>
    %461 = vector.broadcast %460 : vector<1x1x24xf32> to vector<4x8x24xf32>
    %462 = arith.addf %459, %461 : vector<4x8x24xf32>
    %cst_239 = arith.constant 0.000000e+00 : f32
    %463 = vector.broadcast %cst_239 : f32 to vector<4x8x24xf32>
    %464 = arith.maximumf %462, %463 : vector<4x8x24xf32>
    %465 = arith.maximumf %428, %464 : vector<4x8x24xf32>
    %c0_240 = arith.constant 0 : index
    %c0_241 = arith.constant 0 : index
    %c0_242 = arith.constant 0 : index
    %466 = vector.load %arg22[%c0_240, %c0_241, %c0_242] : memref<4x7x4xf32, #tpu.memory_space<vmem>>, vector<4x7x4xf32>
    %467 = vector.extract_strided_slice %466 {offsets = [0, 0, 0], sizes = [4, 7, 1], strides = [1, 1, 1]} : vector<4x7x4xf32> to vector<4x7x1xf32>
    %468 = vector.extract_strided_slice %390 {offsets = [0, 0], sizes = [1, 24], strides = [1, 1]} : vector<4x24xf32> to vector<1x24xf32>
    %469 = vector.shape_cast %468 : vector<1x24xf32> to vector<1x1x24xf32>
    %470 = vector.broadcast %467 : vector<4x7x1xf32> to vector<4x7x24xf32>
    %471 = vector.broadcast %469 : vector<1x1x24xf32> to vector<4x7x24xf32>
    %472 = arith.mulf %470, %471 : vector<4x7x24xf32>
    %473 = vector.extract_strided_slice %466 {offsets = [0, 0, 1], sizes = [4, 7, 1], strides = [1, 1, 1]} : vector<4x7x4xf32> to vector<4x7x1xf32>
    %474 = vector.extract_strided_slice %390 {offsets = [1, 0], sizes = [1, 24], strides = [1, 1]} : vector<4x24xf32> to vector<1x24xf32>
    %475 = vector.shape_cast %474 : vector<1x24xf32> to vector<1x1x24xf32>
    %476 = vector.broadcast %473 : vector<4x7x1xf32> to vector<4x7x24xf32>
    %477 = vector.broadcast %475 : vector<1x1x24xf32> to vector<4x7x24xf32>
    %478 = arith.mulf %476, %477 : vector<4x7x24xf32>
    %479 = arith.addf %472, %478 : vector<4x7x24xf32>
    %480 = vector.extract_strided_slice %466 {offsets = [0, 0, 2], sizes = [4, 7, 1], strides = [1, 1, 1]} : vector<4x7x4xf32> to vector<4x7x1xf32>
    %481 = vector.extract_strided_slice %390 {offsets = [2, 0], sizes = [1, 24], strides = [1, 1]} : vector<4x24xf32> to vector<1x24xf32>
    %482 = vector.shape_cast %481 : vector<1x24xf32> to vector<1x1x24xf32>
    %483 = vector.broadcast %480 : vector<4x7x1xf32> to vector<4x7x24xf32>
    %484 = vector.broadcast %482 : vector<1x1x24xf32> to vector<4x7x24xf32>
    %485 = arith.mulf %483, %484 : vector<4x7x24xf32>
    %486 = arith.addf %479, %485 : vector<4x7x24xf32>
    %487 = vector.extract_strided_slice %466 {offsets = [0, 0, 3], sizes = [4, 7, 1], strides = [1, 1, 1]} : vector<4x7x4xf32> to vector<4x7x1xf32>
    %488 = vector.extract_strided_slice %390 {offsets = [3, 0], sizes = [1, 24], strides = [1, 1]} : vector<4x24xf32> to vector<1x24xf32>
    %489 = vector.shape_cast %488 : vector<1x24xf32> to vector<1x1x24xf32>
    %490 = vector.broadcast %487 : vector<4x7x1xf32> to vector<4x7x24xf32>
    %491 = vector.broadcast %489 : vector<1x1x24xf32> to vector<4x7x24xf32>
    %492 = arith.mulf %490, %491 : vector<4x7x24xf32>
    %493 = arith.addf %486, %492 : vector<4x7x24xf32>
    %494 = vector.shape_cast %391 : vector<1x24xf32> to vector<1x1x24xf32>
    %495 = vector.broadcast %494 : vector<1x1x24xf32> to vector<4x7x24xf32>
    %496 = arith.mulf %493, %495 : vector<4x7x24xf32>
    %497 = vector.shape_cast %392 : vector<1x24xf32> to vector<1x1x24xf32>
    %498 = vector.broadcast %497 : vector<1x1x24xf32> to vector<4x7x24xf32>
    %499 = arith.addf %496, %498 : vector<4x7x24xf32>
    %cst_243 = arith.constant 0.000000e+00 : f32
    %500 = vector.broadcast %cst_243 : f32 to vector<4x7x24xf32>
    %501 = arith.maximumf %499, %500 : vector<4x7x24xf32>
    %c0_244 = arith.constant 0 : index
    %c0_245 = arith.constant 0 : index
    %c0_246 = arith.constant 0 : index
    %502 = vector.load %arg23[%c0_244, %c0_245, %c0_246] : memref<4x7x4xf32, #tpu.memory_space<vmem>>, vector<4x7x4xf32>
    %503 = vector.extract_strided_slice %502 {offsets = [0, 0, 0], sizes = [4, 7, 1], strides = [1, 1, 1]} : vector<4x7x4xf32> to vector<4x7x1xf32>
    %504 = vector.extract_strided_slice %390 {offsets = [0, 0], sizes = [1, 24], strides = [1, 1]} : vector<4x24xf32> to vector<1x24xf32>
    %505 = vector.shape_cast %504 : vector<1x24xf32> to vector<1x1x24xf32>
    %506 = vector.broadcast %503 : vector<4x7x1xf32> to vector<4x7x24xf32>
    %507 = vector.broadcast %505 : vector<1x1x24xf32> to vector<4x7x24xf32>
    %508 = arith.mulf %506, %507 : vector<4x7x24xf32>
    %509 = vector.extract_strided_slice %502 {offsets = [0, 0, 1], sizes = [4, 7, 1], strides = [1, 1, 1]} : vector<4x7x4xf32> to vector<4x7x1xf32>
    %510 = vector.extract_strided_slice %390 {offsets = [1, 0], sizes = [1, 24], strides = [1, 1]} : vector<4x24xf32> to vector<1x24xf32>
    %511 = vector.shape_cast %510 : vector<1x24xf32> to vector<1x1x24xf32>
    %512 = vector.broadcast %509 : vector<4x7x1xf32> to vector<4x7x24xf32>
    %513 = vector.broadcast %511 : vector<1x1x24xf32> to vector<4x7x24xf32>
    %514 = arith.mulf %512, %513 : vector<4x7x24xf32>
    %515 = arith.addf %508, %514 : vector<4x7x24xf32>
    %516 = vector.extract_strided_slice %502 {offsets = [0, 0, 2], sizes = [4, 7, 1], strides = [1, 1, 1]} : vector<4x7x4xf32> to vector<4x7x1xf32>
    %517 = vector.extract_strided_slice %390 {offsets = [2, 0], sizes = [1, 24], strides = [1, 1]} : vector<4x24xf32> to vector<1x24xf32>
    %518 = vector.shape_cast %517 : vector<1x24xf32> to vector<1x1x24xf32>
    %519 = vector.broadcast %516 : vector<4x7x1xf32> to vector<4x7x24xf32>
    %520 = vector.broadcast %518 : vector<1x1x24xf32> to vector<4x7x24xf32>
    %521 = arith.mulf %519, %520 : vector<4x7x24xf32>
    %522 = arith.addf %515, %521 : vector<4x7x24xf32>
    %523 = vector.extract_strided_slice %502 {offsets = [0, 0, 3], sizes = [4, 7, 1], strides = [1, 1, 1]} : vector<4x7x4xf32> to vector<4x7x1xf32>
    %524 = vector.extract_strided_slice %390 {offsets = [3, 0], sizes = [1, 24], strides = [1, 1]} : vector<4x24xf32> to vector<1x24xf32>
    %525 = vector.shape_cast %524 : vector<1x24xf32> to vector<1x1x24xf32>
    %526 = vector.broadcast %523 : vector<4x7x1xf32> to vector<4x7x24xf32>
    %527 = vector.broadcast %525 : vector<1x1x24xf32> to vector<4x7x24xf32>
    %528 = arith.mulf %526, %527 : vector<4x7x24xf32>
    %529 = arith.addf %522, %528 : vector<4x7x24xf32>
    %530 = vector.shape_cast %391 : vector<1x24xf32> to vector<1x1x24xf32>
    %531 = vector.broadcast %530 : vector<1x1x24xf32> to vector<4x7x24xf32>
    %532 = arith.mulf %529, %531 : vector<4x7x24xf32>
    %533 = vector.shape_cast %392 : vector<1x24xf32> to vector<1x1x24xf32>
    %534 = vector.broadcast %533 : vector<1x1x24xf32> to vector<4x7x24xf32>
    %535 = arith.addf %532, %534 : vector<4x7x24xf32>
    %cst_247 = arith.constant 0.000000e+00 : f32
    %536 = vector.broadcast %cst_247 : f32 to vector<4x7x24xf32>
    %537 = arith.maximumf %535, %536 : vector<4x7x24xf32>
    %538 = arith.maximumf %501, %537 : vector<4x7x24xf32>
    %cst_248 = arith.constant 0.000000e+00 : f32
    %539 = vector.broadcast %cst_248 : f32 to vector<4x10x24xf32>
    %c0_249 = arith.constant 0 : index
    %c0_250 = arith.constant 0 : index
    %c0_251 = arith.constant 0 : index
    %540 = vector.load %arg35[%c0_249, %c0_250, %c0_251] : memref<4x10x24xf32, #tpu.memory_space<vmem>>, vector<4x10x24xf32>
    tpu.vector_store %arg35[%c0_249, %c0_250, %c0_251], %539 {strides = array<i32>} : memref<4x10x24xf32, #tpu.memory_space<vmem>>, vector<4x10x24xf32>,
    %cst_252 = arith.constant 0.000000e+00 : f32
    %541 = vector.broadcast %cst_252 : f32 to vector<4x9x24xf32>
    %c0_253 = arith.constant 0 : index
    %c0_254 = arith.constant 0 : index
    %c0_255 = arith.constant 0 : index
    %542 = vector.load %arg36[%c0_253, %c0_254, %c0_255] : memref<4x9x24xf32, #tpu.memory_space<vmem>>, vector<4x9x24xf32>
    tpu.vector_store %arg36[%c0_253, %c0_254, %c0_255], %541 {strides = array<i32>} : memref<4x9x24xf32, #tpu.memory_space<vmem>>, vector<4x9x24xf32>,
    %c0_256 = arith.constant 0 : index
    %c1_257 = arith.constant 1 : index
    %c0_258 = arith.constant 0 : index
    %543 = vector.load %arg35[%c0_256, %c1_257, %c0_258] : memref<4x10x24xf32, #tpu.memory_space<vmem>>, vector<4x8x24xf32>
    tpu.vector_store %arg35[%c0_256, %c1_257, %c0_258], %465 {strides = array<i32>} : memref<4x10x24xf32, #tpu.memory_space<vmem>>, vector<4x8x24xf32>,
    %c0_259 = arith.constant 0 : index
    %c1_260 = arith.constant 1 : index
    %c0_261 = arith.constant 0 : index
    %544 = vector.load %arg36[%c0_259, %c1_260, %c0_261] : memref<4x9x24xf32, #tpu.memory_space<vmem>>, vector<4x7x24xf32>
    tpu.vector_store %arg36[%c0_259, %c1_260, %c0_261], %538 {strides = array<i32>} : memref<4x9x24xf32, #tpu.memory_space<vmem>>, vector<4x7x24xf32>,
    %c0_262 = arith.constant 0 : index
    %c0_263 = arith.constant 0 : index
    %c0_264 = arith.constant 0 : index
    %545 = vector.load %arg35[%c0_262, %c0_263, %c0_264] : memref<4x10x24xf32, #tpu.memory_space<vmem>>, vector<1x8x24xf32>
    %546 = vector.shape_cast %545 : vector<1x8x24xf32> to vector<8x24xf32>
    %c0_265 = arith.constant 0 : index
    %c0_266 = arith.constant 0 : index
    %c0_267 = arith.constant 0 : index
    %547 = vector.load %arg36[%c0_265, %c0_266, %c0_267] : memref<4x9x24xf32, #tpu.memory_space<vmem>>, vector<1x8x24xf32>
    %548 = vector.shape_cast %547 : vector<1x8x24xf32> to vector<8x24xf32>
    %c1_268 = arith.constant 1 : index
    %c0_269 = arith.constant 0 : index
    %c0_270 = arith.constant 0 : index
    %549 = vector.load %arg35[%c1_268, %c0_269, %c0_270] : memref<4x10x24xf32, #tpu.memory_space<vmem>>, vector<1x8x24xf32>
    %550 = vector.shape_cast %549 : vector<1x8x24xf32> to vector<8x24xf32>
    %c1_271 = arith.constant 1 : index
    %c0_272 = arith.constant 0 : index
    %c0_273 = arith.constant 0 : index
    %551 = vector.load %arg36[%c1_271, %c0_272, %c0_273] : memref<4x9x24xf32, #tpu.memory_space<vmem>>, vector<1x8x24xf32>
    %552 = vector.shape_cast %551 : vector<1x8x24xf32> to vector<8x24xf32>
    %c2_274 = arith.constant 2 : index
    %c0_275 = arith.constant 0 : index
    %c0_276 = arith.constant 0 : index
    %553 = vector.load %arg35[%c2_274, %c0_275, %c0_276] : memref<4x10x24xf32, #tpu.memory_space<vmem>>, vector<1x8x24xf32>
    %554 = vector.shape_cast %553 : vector<1x8x24xf32> to vector<8x24xf32>
    %c2_277 = arith.constant 2 : index
    %c0_278 = arith.constant 0 : index
    %c0_279 = arith.constant 0 : index
    %555 = vector.load %arg36[%c2_277, %c0_278, %c0_279] : memref<4x9x24xf32, #tpu.memory_space<vmem>>, vector<1x8x24xf32>
    %556 = vector.shape_cast %555 : vector<1x8x24xf32> to vector<8x24xf32>
    %c3_280 = arith.constant 3 : index
    %c0_281 = arith.constant 0 : index
    %c0_282 = arith.constant 0 : index
    %557 = vector.load %arg35[%c3_280, %c0_281, %c0_282] : memref<4x10x24xf32, #tpu.memory_space<vmem>>, vector<1x8x24xf32>
    %558 = vector.shape_cast %557 : vector<1x8x24xf32> to vector<8x24xf32>
    %c3_283 = arith.constant 3 : index
    %c0_284 = arith.constant 0 : index
    %c0_285 = arith.constant 0 : index
    %559 = vector.load %arg36[%c3_283, %c0_284, %c0_285] : memref<4x9x24xf32, #tpu.memory_space<vmem>>, vector<1x8x24xf32>
    %560 = vector.shape_cast %559 : vector<1x8x24xf32> to vector<8x24xf32>
    %561 = tpu.concatenate %546, %548, %550, %552, %554, %556, %558, %560 in 0 : vector<8x24xf32>, vector<8x24xf32>, vector<8x24xf32>, vector<8x24xf32>, vector<8x24xf32>, vector<8x24xf32>, vector<8x24xf32>, vector<8x24xf32> -> vector<64x24xf32>
    %c0_286 = arith.constant 0 : index
    %c0_287 = arith.constant 0 : index
    %c0_288 = arith.constant 0 : index
    %562 = vector.load %arg27[%c0_286, %c0_287, %c0_288] : memref<4x24x48xbf16, #tpu.memory_space<vmem>>, vector<1x24x48xbf16>
    %563 = vector.shape_cast %562 : vector<1x24x48xbf16> to vector<24x48xbf16>
    %564 = arith.truncf %561 : vector<64x24xf32> to vector<64x24xbf16>
    %cst_289 = arith.constant dense<0.000000e+00> : vector<64x48xf32>
    %565 = tpu.matmul %564, %563, %cst_289 {dimension_numbers = #tpu.dot_dimension_numbers<[1], [0], [0], [1], [0, 0, 1, 1], [], []>} : vector<64x24xbf16>, vector<24x48xbf16>, vector<64x48xf32> -> vector<64x48xf32>
    %c0_290 = arith.constant 0 : index
    %c0_291 = arith.constant 0 : index
    %c0_292 = arith.constant 0 : index
    %566 = vector.load %arg36[%c0_290, %c0_291, %c0_292] : memref<4x9x24xf32, #tpu.memory_space<vmem>>, vector<1x8x24xf32>
    %567 = vector.shape_cast %566 : vector<1x8x24xf32> to vector<8x24xf32>
    %c0_293 = arith.constant 0 : index
    %c1_294 = arith.constant 1 : index
    %c0_295 = arith.constant 0 : index
    %568 = vector.load %arg35[%c0_293, %c1_294, %c0_295] : memref<4x10x24xf32, #tpu.memory_space<vmem>>, vector<1x8x24xf32>
    %569 = vector.shape_cast %568 : vector<1x8x24xf32> to vector<8x24xf32>
    %c1_296 = arith.constant 1 : index
    %c0_297 = arith.constant 0 : index
    %c0_298 = arith.constant 0 : index
    %570 = vector.load %arg36[%c1_296, %c0_297, %c0_298] : memref<4x9x24xf32, #tpu.memory_space<vmem>>, vector<1x8x24xf32>
    %571 = vector.shape_cast %570 : vector<1x8x24xf32> to vector<8x24xf32>
    %c1_299 = arith.constant 1 : index
    %c1_300 = arith.constant 1 : index
    %c0_301 = arith.constant 0 : index
    %572 = vector.load %arg35[%c1_299, %c1_300, %c0_301] : memref<4x10x24xf32, #tpu.memory_space<vmem>>, vector<1x8x24xf32>
    %573 = vector.shape_cast %572 : vector<1x8x24xf32> to vector<8x24xf32>
    %c2_302 = arith.constant 2 : index
    %c0_303 = arith.constant 0 : index
    %c0_304 = arith.constant 0 : index
    %574 = vector.load %arg36[%c2_302, %c0_303, %c0_304] : memref<4x9x24xf32, #tpu.memory_space<vmem>>, vector<1x8x24xf32>
    %575 = vector.shape_cast %574 : vector<1x8x24xf32> to vector<8x24xf32>
    %c2_305 = arith.constant 2 : index
    %c1_306 = arith.constant 1 : index
    %c0_307 = arith.constant 0 : index
    %576 = vector.load %arg35[%c2_305, %c1_306, %c0_307] : memref<4x10x24xf32, #tpu.memory_space<vmem>>, vector<1x8x24xf32>
    %577 = vector.shape_cast %576 : vector<1x8x24xf32> to vector<8x24xf32>
    %c3_308 = arith.constant 3 : index
    %c0_309 = arith.constant 0 : index
    %c0_310 = arith.constant 0 : index
    %578 = vector.load %arg36[%c3_308, %c0_309, %c0_310] : memref<4x9x24xf32, #tpu.memory_space<vmem>>, vector<1x8x24xf32>
    %579 = vector.shape_cast %578 : vector<1x8x24xf32> to vector<8x24xf32>
    %c3_311 = arith.constant 3 : index
    %c1_312 = arith.constant 1 : index
    %c0_313 = arith.constant 0 : index
    %580 = vector.load %arg35[%c3_311, %c1_312, %c0_313] : memref<4x10x24xf32, #tpu.memory_space<vmem>>, vector<1x8x24xf32>
    %581 = vector.shape_cast %580 : vector<1x8x24xf32> to vector<8x24xf32>
    %582 = tpu.concatenate %567, %569, %571, %573, %575, %577, %579, %581 in 0 : vector<8x24xf32>, vector<8x24xf32>, vector<8x24xf32>, vector<8x24xf32>, vector<8x24xf32>, vector<8x24xf32>, vector<8x24xf32>, vector<8x24xf32> -> vector<64x24xf32>
    %c1_314 = arith.constant 1 : index
    %c0_315 = arith.constant 0 : index
    %c0_316 = arith.constant 0 : index
    %583 = vector.load %arg27[%c1_314, %c0_315, %c0_316] : memref<4x24x48xbf16, #tpu.memory_space<vmem>>, vector<1x24x48xbf16>
    %584 = vector.shape_cast %583 : vector<1x24x48xbf16> to vector<24x48xbf16>
    %585 = arith.truncf %582 : vector<64x24xf32> to vector<64x24xbf16>
    %cst_317 = arith.constant dense<0.000000e+00> : vector<64x48xf32>
    %586 = tpu.matmul %585, %584, %cst_317 {dimension_numbers = #tpu.dot_dimension_numbers<[1], [0], [0], [1], [0, 0, 1, 1], [], []>} : vector<64x24xbf16>, vector<24x48xbf16>, vector<64x48xf32> -> vector<64x48xf32>
    %587 = arith.addf %565, %586 : vector<64x48xf32>
    %c0_318 = arith.constant 0 : index
    %c1_319 = arith.constant 1 : index
    %c0_320 = arith.constant 0 : index
    %588 = vector.load %arg35[%c0_318, %c1_319, %c0_320] : memref<4x10x24xf32, #tpu.memory_space<vmem>>, vector<1x8x24xf32>
    %589 = vector.shape_cast %588 : vector<1x8x24xf32> to vector<8x24xf32>
    %c0_321 = arith.constant 0 : index
    %c1_322 = arith.constant 1 : index
    %c0_323 = arith.constant 0 : index
    %590 = vector.load %arg36[%c0_321, %c1_322, %c0_323] : memref<4x9x24xf32, #tpu.memory_space<vmem>>, vector<1x8x24xf32>
    %591 = vector.shape_cast %590 : vector<1x8x24xf32> to vector<8x24xf32>
    %c1_324 = arith.constant 1 : index
    %c1_325 = arith.constant 1 : index
    %c0_326 = arith.constant 0 : index
    %592 = vector.load %arg35[%c1_324, %c1_325, %c0_326] : memref<4x10x24xf32, #tpu.memory_space<vmem>>, vector<1x8x24xf32>
    %593 = vector.shape_cast %592 : vector<1x8x24xf32> to vector<8x24xf32>
    %c1_327 = arith.constant 1 : index
    %c1_328 = arith.constant 1 : index
    %c0_329 = arith.constant 0 : index
    %594 = vector.load %arg36[%c1_327, %c1_328, %c0_329] : memref<4x9x24xf32, #tpu.memory_space<vmem>>, vector<1x8x24xf32>
    %595 = vector.shape_cast %594 : vector<1x8x24xf32> to vector<8x24xf32>
    %c2_330 = arith.constant 2 : index
    %c1_331 = arith.constant 1 : index
    %c0_332 = arith.constant 0 : index
    %596 = vector.load %arg35[%c2_330, %c1_331, %c0_332] : memref<4x10x24xf32, #tpu.memory_space<vmem>>, vector<1x8x24xf32>
    %597 = vector.shape_cast %596 : vector<1x8x24xf32> to vector<8x24xf32>
    %c2_333 = arith.constant 2 : index
    %c1_334 = arith.constant 1 : index
    %c0_335 = arith.constant 0 : index
    %598 = vector.load %arg36[%c2_333, %c1_334, %c0_335] : memref<4x9x24xf32, #tpu.memory_space<vmem>>, vector<1x8x24xf32>
    %599 = vector.shape_cast %598 : vector<1x8x24xf32> to vector<8x24xf32>
    %c3_336 = arith.constant 3 : index
    %c1_337 = arith.constant 1 : index
    %c0_338 = arith.constant 0 : index
    %600 = vector.load %arg35[%c3_336, %c1_337, %c0_338] : memref<4x10x24xf32, #tpu.memory_space<vmem>>, vector<1x8x24xf32>
    %601 = vector.shape_cast %600 : vector<1x8x24xf32> to vector<8x24xf32>
    %c3_339 = arith.constant 3 : index
    %c1_340 = arith.constant 1 : index
    %c0_341 = arith.constant 0 : index
    %602 = vector.load %arg36[%c3_339, %c1_340, %c0_341] : memref<4x9x24xf32, #tpu.memory_space<vmem>>, vector<1x8x24xf32>
    %603 = vector.shape_cast %602 : vector<1x8x24xf32> to vector<8x24xf32>
    %604 = tpu.concatenate %589, %591, %593, %595, %597, %599, %601, %603 in 0 : vector<8x24xf32>, vector<8x24xf32>, vector<8x24xf32>, vector<8x24xf32>, vector<8x24xf32>, vector<8x24xf32>, vector<8x24xf32>, vector<8x24xf32> -> vector<64x24xf32>
    %c2_342 = arith.constant 2 : index
    %c0_343 = arith.constant 0 : index
    %c0_344 = arith.constant 0 : index
    %605 = vector.load %arg27[%c2_342, %c0_343, %c0_344] : memref<4x24x48xbf16, #tpu.memory_space<vmem>>, vector<1x24x48xbf16>
    %606 = vector.shape_cast %605 : vector<1x24x48xbf16> to vector<24x48xbf16>
    %607 = arith.truncf %604 : vector<64x24xf32> to vector<64x24xbf16>
    %cst_345 = arith.constant dense<0.000000e+00> : vector<64x48xf32>
    %608 = tpu.matmul %607, %606, %cst_345 {dimension_numbers = #tpu.dot_dimension_numbers<[1], [0], [0], [1], [0, 0, 1, 1], [], []>} : vector<64x24xbf16>, vector<24x48xbf16>, vector<64x48xf32> -> vector<64x48xf32>
    %609 = arith.addf %587, %608 : vector<64x48xf32>
    %c0_346 = arith.constant 0 : index
    %c1_347 = arith.constant 1 : index
    %c0_348 = arith.constant 0 : index
    %610 = vector.load %arg36[%c0_346, %c1_347, %c0_348] : memref<4x9x24xf32, #tpu.memory_space<vmem>>, vector<1x8x24xf32>
    %611 = vector.shape_cast %610 : vector<1x8x24xf32> to vector<8x24xf32>
    %c0_349 = arith.constant 0 : index
    %c2_350 = arith.constant 2 : index
    %c0_351 = arith.constant 0 : index
    %612 = vector.load %arg35[%c0_349, %c2_350, %c0_351] : memref<4x10x24xf32, #tpu.memory_space<vmem>>, vector<1x8x24xf32>
    %613 = vector.shape_cast %612 : vector<1x8x24xf32> to vector<8x24xf32>
    %c1_352 = arith.constant 1 : index
    %c1_353 = arith.constant 1 : index
    %c0_354 = arith.constant 0 : index
    %614 = vector.load %arg36[%c1_352, %c1_353, %c0_354] : memref<4x9x24xf32, #tpu.memory_space<vmem>>, vector<1x8x24xf32>
    %615 = vector.shape_cast %614 : vector<1x8x24xf32> to vector<8x24xf32>
    %c1_355 = arith.constant 1 : index
    %c2_356 = arith.constant 2 : index
    %c0_357 = arith.constant 0 : index
    %616 = vector.load %arg35[%c1_355, %c2_356, %c0_357] : memref<4x10x24xf32, #tpu.memory_space<vmem>>, vector<1x8x24xf32>
    %617 = vector.shape_cast %616 : vector<1x8x24xf32> to vector<8x24xf32>
    %c2_358 = arith.constant 2 : index
    %c1_359 = arith.constant 1 : index
    %c0_360 = arith.constant 0 : index
    %618 = vector.load %arg36[%c2_358, %c1_359, %c0_360] : memref<4x9x24xf32, #tpu.memory_space<vmem>>, vector<1x8x24xf32>
    %619 = vector.shape_cast %618 : vector<1x8x24xf32> to vector<8x24xf32>
    %c2_361 = arith.constant 2 : index
    %c2_362 = arith.constant 2 : index
    %c0_363 = arith.constant 0 : index
    %620 = vector.load %arg35[%c2_361, %c2_362, %c0_363] : memref<4x10x24xf32, #tpu.memory_space<vmem>>, vector<1x8x24xf32>
    %621 = vector.shape_cast %620 : vector<1x8x24xf32> to vector<8x24xf32>
    %c3_364 = arith.constant 3 : index
    %c1_365 = arith.constant 1 : index
    %c0_366 = arith.constant 0 : index
    %622 = vector.load %arg36[%c3_364, %c1_365, %c0_366] : memref<4x9x24xf32, #tpu.memory_space<vmem>>, vector<1x8x24xf32>
    %623 = vector.shape_cast %622 : vector<1x8x24xf32> to vector<8x24xf32>
    %c3_367 = arith.constant 3 : index
    %c2_368 = arith.constant 2 : index
    %c0_369 = arith.constant 0 : index
    %624 = vector.load %arg35[%c3_367, %c2_368, %c0_369] : memref<4x10x24xf32, #tpu.memory_space<vmem>>, vector<1x8x24xf32>
    %625 = vector.shape_cast %624 : vector<1x8x24xf32> to vector<8x24xf32>
    %626 = tpu.concatenate %611, %613, %615, %617, %619, %621, %623, %625 in 0 : vector<8x24xf32>, vector<8x24xf32>, vector<8x24xf32>, vector<8x24xf32>, vector<8x24xf32>, vector<8x24xf32>, vector<8x24xf32>, vector<8x24xf32> -> vector<64x24xf32>
    %c3_370 = arith.constant 3 : index
    %c0_371 = arith.constant 0 : index
    %c0_372 = arith.constant 0 : index
    %627 = vector.load %arg27[%c3_370, %c0_371, %c0_372] : memref<4x24x48xbf16, #tpu.memory_space<vmem>>, vector<1x24x48xbf16>
    %628 = vector.shape_cast %627 : vector<1x24x48xbf16> to vector<24x48xbf16>
    %629 = arith.truncf %626 : vector<64x24xf32> to vector<64x24xbf16>
    %cst_373 = arith.constant dense<0.000000e+00> : vector<64x48xf32>
    %630 = tpu.matmul %629, %628, %cst_373 {dimension_numbers = #tpu.dot_dimension_numbers<[1], [0], [0], [1], [0, 0, 1, 1], [], []>} : vector<64x24xbf16>, vector<24x48xbf16>, vector<64x48xf32> -> vector<64x48xf32>
    %631 = arith.addf %609, %630 : vector<64x48xf32>
    %c0_374 = arith.constant 0 : index
    %c0_375 = arith.constant 0 : index
    %632 = vector.load %arg28[%c0_374, %c0_375] : memref<1x48xf32, #tpu.memory_space<vmem>>, vector<1x48xf32>
    %633 = vector.broadcast %632 : vector<1x48xf32> to vector<64x48xf32>
    %634 = arith.mulf %631, %633 : vector<64x48xf32>
    %c0_376 = arith.constant 0 : index
    %c0_377 = arith.constant 0 : index
    %635 = vector.load %arg29[%c0_376, %c0_377] : memref<1x48xf32, #tpu.memory_space<vmem>>, vector<1x48xf32>
    %636 = vector.broadcast %635 : vector<1x48xf32> to vector<64x48xf32>
    %637 = arith.addf %634, %636 : vector<64x48xf32>
    %cst_378 = arith.constant 0.000000e+00 : f32
    %638 = vector.broadcast %cst_378 : f32 to vector<64x48xf32>
    %639 = arith.maximumf %637, %638 : vector<64x48xf32>
    %640 = vector.extract_strided_slice %639 {offsets = [0, 0], sizes = [16, 48], strides = [1, 1]} : vector<64x48xf32> to vector<16x48xf32>
    %641 = vector.extract_strided_slice %640 {offsets = [0, 0], sizes = [8, 48], strides = [1, 1]} : vector<16x48xf32> to vector<8x48xf32>
    %642 = vector.extract_strided_slice %640 {offsets = [8, 0], sizes = [8, 48], strides = [1, 1]} : vector<16x48xf32> to vector<8x48xf32>
    %643 = arith.maximumf %641, %642 : vector<8x48xf32>
    %c16 = arith.constant 16 : index
    %c0_379 = arith.constant 0 : index
    %644 = vector.load %arg30[%c16, %c0_379] : memref<96x48xf32, #tpu.memory_space<vmem>>, vector<8x48xf32>
    tpu.vector_store %arg30[%c16, %c0_379], %643 {strides = array<i32>} : memref<96x48xf32, #tpu.memory_space<vmem>>, vector<8x48xf32>,
    %645 = vector.extract_strided_slice %639 {offsets = [16, 0], sizes = [16, 48], strides = [1, 1]} : vector<64x48xf32> to vector<16x48xf32>
    %646 = vector.extract_strided_slice %645 {offsets = [0, 0], sizes = [8, 48], strides = [1, 1]} : vector<16x48xf32> to vector<8x48xf32>
    %647 = vector.extract_strided_slice %645 {offsets = [8, 0], sizes = [8, 48], strides = [1, 1]} : vector<16x48xf32> to vector<8x48xf32>
    %648 = arith.maximumf %646, %647 : vector<8x48xf32>
    %c40 = arith.constant 40 : index
    %c0_380 = arith.constant 0 : index
    %649 = vector.load %arg30[%c40, %c0_380] : memref<96x48xf32, #tpu.memory_space<vmem>>, vector<8x48xf32>
    tpu.vector_store %arg30[%c40, %c0_380], %648 {strides = array<i32>} : memref<96x48xf32, #tpu.memory_space<vmem>>, vector<8x48xf32>,
    %650 = vector.extract_strided_slice %639 {offsets = [32, 0], sizes = [16, 48], strides = [1, 1]} : vector<64x48xf32> to vector<16x48xf32>
    %651 = vector.extract_strided_slice %650 {offsets = [0, 0], sizes = [8, 48], strides = [1, 1]} : vector<16x48xf32> to vector<8x48xf32>
    %652 = vector.extract_strided_slice %650 {offsets = [8, 0], sizes = [8, 48], strides = [1, 1]} : vector<16x48xf32> to vector<8x48xf32>
    %653 = arith.maximumf %651, %652 : vector<8x48xf32>
    %c64 = arith.constant 64 : index
    %c0_381 = arith.constant 0 : index
    %654 = vector.load %arg30[%c64, %c0_381] : memref<96x48xf32, #tpu.memory_space<vmem>>, vector<8x48xf32>
    tpu.vector_store %arg30[%c64, %c0_381], %653 {strides = array<i32>} : memref<96x48xf32, #tpu.memory_space<vmem>>, vector<8x48xf32>,
    %655 = vector.extract_strided_slice %639 {offsets = [48, 0], sizes = [16, 48], strides = [1, 1]} : vector<64x48xf32> to vector<16x48xf32>
    %656 = vector.extract_strided_slice %655 {offsets = [0, 0], sizes = [8, 48], strides = [1, 1]} : vector<16x48xf32> to vector<8x48xf32>
    %657 = vector.extract_strided_slice %655 {offsets = [8, 0], sizes = [8, 48], strides = [1, 1]} : vector<16x48xf32> to vector<8x48xf32>
    %658 = arith.maximumf %656, %657 : vector<8x48xf32>
    %c88 = arith.constant 88 : index
    %c0_382 = arith.constant 0 : index
    %659 = vector.load %arg30[%c88, %c0_382] : memref<96x48xf32, #tpu.memory_space<vmem>>, vector<8x48xf32>
    tpu.vector_store %arg30[%c88, %c0_382], %658 {strides = array<i32>} : memref<96x48xf32, #tpu.memory_space<vmem>>, vector<8x48xf32>,
    return
  }
}

</mosaic_0001>

<bundles_post_ra>
// kernel: _lambda_.3
= control target key start
LH: loop header
LB: loop body
LE: loop exit
PB: predicated region body
PF: predicated region fallthrough
CT: control target
= control target key end

     0   :  { %vm821_vm0 = vcmask 11264   ;;  %s1543_s1 = inlined_call_operand.vmem [shape: bf16[1152,128], index: 1, kind: input, shape index: {}]   ;;  %s1544_s0 = inlined_call_operand.vmem [shape: f32[4,1152], index: 0, kind: input, shape index: {}]   ;;  %s1545_s2 = inlined_call_operand.vmem [shape: f32[1,128], index: 2, kind: input, shape index: {}]   ;;  %s1546_s3 = inlined_call_operand.vmem [shape: f32[1,128], index: 3, kind: input, shape index: {}]   ;;  %s1547_s5 = inlined_call_operand.vmem [shape: f32[1,2], index: 5, kind: input, shape index: {}]   ;;  %s1548_s4 = inlined_call_operand.vmem [shape: f32[128,2], index: 4, kind: input, shape index: {}]   ;;  %s1549_s6 = inlined_call_operand.vmem [shape: f32[1,2], index: 6, kind: input, shape index: {}]   ;;  %s1550_s7 = inlined_call_operand.vmem [shape: f32[4,2], index: 7, kind: output, shape index: {}]  }
   0x1   :  { %v1133_v0 = vld [vmem:[%s1543_s1 + $0x38] sm:$0xff]  ;;  %v1132_v4 = vld [vmem:[%s1543_s1 + $0x30] sm:$0xff]  ;;  %v1131_v8 = vld [vmem:[%s1543_s1 + $0x28] sm:$0xff] }
   0x2   :  { %v1149_v1 = vld [vmem:[%s1543_s1 + $0xb8] sm:$0xff]  ;;  %647 = vmatpush.bf16.msra.mxu0 %v1133_v0  ;;  %v1148_v5 = vld [vmem:[%s1543_s1 + $0xb0] sm:$0xff]  ;;  %v1147_v9 = vld [vmem:[%s1543_s1 + $0xa8] sm:$0xff] }
   0x3   :  { %v1157_v2 = vld [vmem:[%s1543_s1 + $0xf8] sm:$0xff]  ;;  %673 = vmatpush.bf16.msra.mxu2 %v1149_v1  ;;  %v1156_v6 = vld [vmem:[%s1543_s1 + $0xf0] sm:$0xff]  ;;  %v1155_v10 = vld [vmem:[%s1543_s1 + $0xe8] sm:$0xff] }
   0x4   :  { %v1141_v3 = vld [vmem:[%s1543_s1 + $0x78] sm:$0xff]  ;;  %686 = vmatpush.bf16.msra.mxu3 %v1157_v2  ;;  %v1140_v7 = vld [vmem:[%s1543_s1 + $0x70] sm:$0xff]  ;;  %v1139_v11 = vld [vmem:[%s1543_s1 + $0x68] sm:$0xff] }
   0x5   :  { %660 = vmatpush.bf16.msra.mxu1 %v1141_v3  ;;  %v1130_v12 = vld [vmem:[%s1543_s1 + $0x20] sm:$0xff]  ;;  %v1129_v16 = vld [vmem:[%s1543_s1 + $0x18] sm:$0xff]  ;;  %v27_v20 = vld [vmem:[%s1544_s0 + $0x8] sm:$0xff] }
   0x6   :  { %648 = vmatpush.bf16.msra.mxu0 %v1132_v4  ;;  %v1146_v13 = vld [vmem:[%s1543_s1 + $0xa0] sm:$0xff]  ;;  %v1145_v17 = vld [vmem:[%s1543_s1 + $0x98] sm:$0xff]  ;;  %38 = vst [vmem:[#allocation1 + $0x10] ss:$2 sm:$0xff] %v27_v20  ;;  %v1128_v22 = vld [vmem:[%s1543_s1 + $0x10] sm:$0xff] }
   0x7   :  { %674 = vmatpush.bf16.msra.mxu2 %v1148_v5  ;;  %v1154_v14 = vld [vmem:[%s1543_s1 + $0xe0] sm:$0xff]  ;;  %v1153_v18 = vld [vmem:[%s1543_s1 + $0xd8] sm:$0xff]  ;;  %v1144_v23 = vld [vmem:[%s1543_s1 + $0x90] sm:$0xff] }
   0x8   :  { %687 = vmatpush.bf16.msra.mxu3 %v1156_v6  ;;  %v1138_v15 = vld [vmem:[%s1543_s1 + $0x60] sm:$0xff]  ;;  %v1137_v19 = vld [vmem:[%s1543_s1 + $0x58] sm:$0xff]  ;;  %v1152_v24 = vld [vmem:[%s1543_s1 + $0xd0] sm:$0xff] }
   0x9   :  { %661 = vmatpush.bf16.msra.mxu1 %v1140_v7  ;;  %v26_v21 = vld [vmem:[%s1544_s0] sm:$0xff]  ;;  %v1136_v25 = vld [vmem:[%s1543_s1 + $0x50] sm:$0xff]  ;;  %v29_v26 = vld [vmem:[%s1544_s0 + $0x18] sm:$0xff] }
   0xa   :  { %649 = vmatpush.bf16.msra.mxu0 %v1131_v8  ;;  %36 = vst [vmem:[#allocation1] ss:$2 sm:$0xff] %v26_v21  ;;  %v1127_v27 = vld [vmem:[%s1543_s1 + $0x8] sm:$0xff]  ;;  %v28_v29 = vld [vmem:[%s1544_s0 + $0x10] sm:$0xff]  ;;  %v30_v32 = vld [vmem:[%s1544_s0 + $0x20] sm:$0xf] }
   0xb   :  { %675 = vmatpush.bf16.msra.mxu2 %v1147_v9  ;;  %42 = vst [vmem:[#allocation1 + $0x30] ss:$2 sm:$0xff] %v29_v26  ;;  %v1143_v28 = vld [vmem:[%s1543_s1 + $0x88] sm:$0xff]  ;;  %v1126_v35 = vld [vmem:[%s1543_s1] sm:$0xff]  ;;  %v1165_v37 = vld [vmem:[%s1543_s1 + $0x138] sm:$0xff] }
   0xc   :  { %688 = vmatpush.bf16.msra.mxu3 %v1155_v10  ;;  %v1151_v30 = vld [vmem:[%s1543_s1 + $0xc8] sm:$0xff]  ;;  %40 = vst [vmem:[#allocation1 + $0x20] ss:$2 sm:$0xff] %v28_v29  ;;  %v1142_v36 = vld [vmem:[%s1543_s1 + $0x80] sm:$0xff]  ;;  %v1181_v38 = vld [vmem:[%s1543_s1 + $0x1b8] sm:$0xff] }
   0xd   :  { %662 = vmatpush.bf16.msra.mxu1 %v1139_v11  ;;  %v1135_v31 = vld [vmem:[%s1543_s1 + $0x48] sm:$0xff]  ;;  %v45_v39 = vld.sshfl [vmem:[#allocation1 + $0x10] sm:$0xff pattern:$0x75316420]  ;;  %v1150_v40 = vld [vmem:[%s1543_s1 + $0xc0] sm:$0xff] }
   0xe   :  { %650 = vmatpush.bf16.msra.mxu0 %v1130_v12  ;;  %v1134_v41 = vld [vmem:[%s1543_s1 + $0x40] sm:$0xff]  ;;  %v1189_v42 = vld [vmem:[%s1543_s1 + $0x1f8] sm:$0xff]  ;;  %v64_v45 = vpack.c.bf16 %v45_v39, %v45_v39  ;;  %v1164_v47 = vld [vmem:[%s1543_s1 + $0x130] sm:$0xff] }
   0xf   :  { %676 = vmatpush.bf16.msra.mxu2 %v1146_v13  ;;  %v1173_v43 = vld [vmem:[%s1543_s1 + $0x178] sm:$0xff]  ;;  %v1180_v48 = vld [vmem:[%s1543_s1 + $0x1b0] sm:$0xff]  ;;  %v1163_v53 = vld [vmem:[%s1543_s1 + $0x128] sm:$0xff] }
  0x10   :  { %689 = vmatpush.bf16.msra.mxu3 %v1154_v14  ;;  %v46_v44 = vld.sshfl [vmem:[#allocation1 + $0x18] sm:$0xff pattern:$0x75316420]  ;;  %v1188_v51 = vld [vmem:[%s1543_s1 + $0x1f0] sm:$0xff]  ;;  %v1179_v54 = vld [vmem:[%s1543_s1 + $0x1a8] sm:$0xff] }
  0x11   :  { %663 = vmatpush.bf16.msra.mxu1 %v1138_v15  ;;  %v43_v33 = vld.sshfl [vmem:[#allocation1] sm:$0xff pattern:$0x75316420]  ;;  %v44_v34 = vld.sshfl [vmem:[#allocation1 + $0x8] sm:$0xff pattern:$0x75316420]  ;;  %v65_v49 = vpack.c.bf16 %v46_v44, %v46_v44 }
  0x12   :  { %651 = vmatpush.bf16.msra.mxu0 %v1129_v16  ;;  %51 = vst [vmem:[#allocation1] ss:$2 sm:$0xff] %v30_v32  ;;  %v62_v46 = vpack.c.bf16 %v43_v33, %v43_v33  ;;  %v63_v50 = vpack.c.bf16 %v44_v34, %v44_v34  ;;  %v1172_v52 = vld [vmem:[%s1543_s1 + $0x170] sm:$0xff]  ;;  %v1187_v55 = vld [vmem:[%s1543_s1 + $0x1e8] sm:$0xff]  ;;  %v1162_v57 = vld [vmem:[%s1543_s1 + $0x120] sm:$0xff] }
  0x13   :  { %677 = vmatpush.bf16.msra.mxu2 %v1145_v17  ;;  %v1171_v56 = vld [vmem:[%s1543_s1 + $0x168] sm:$0xff]  ;;  %v1178_v58 = vld [vmem:[%s1543_s1 + $0x1a0] sm:$0xff]  ;;  %v1161_v61 = vld [vmem:[%s1543_s1 + $0x118] sm:$0xff] }
  0x14   :  { %690 = vmatpush.bf16.msra.mxu3 %v1153_v18  ;;  %v1186_v59 = vld [vmem:[%s1543_s1 + $0x1e0] sm:$0xff]  ;;  %v1177_v62 = vld [vmem:[%s1543_s1 + $0x198] sm:$0xff]  ;;  %v1160_v1 = vld [vmem:[%s1543_s1 + $0x110] sm:$0xff] }
  0x15   :  { %664 = vmatpush.bf16.msra.mxu1 %v1137_v19  ;;  %v1170_v60 = vld [vmem:[%s1543_s1 + $0x160] sm:$0xff]  ;;  %v1185_v63 = vld [vmem:[%s1543_s1 + $0x1d8] sm:$0xff]  ;;  %v1176_v2 = vld [vmem:[%s1543_s1 + $0x190] sm:$0xff] }
  0x16   :  { %652 = vmatpush.bf16.msra.mxu0 %v1128_v22  ;;  %v1169_v0 = vld [vmem:[%s1543_s1 + $0x158] sm:$0xff]  ;;  %v1184_v3 = vld [vmem:[%s1543_s1 + $0x1d0] sm:$0xff]  ;;  %v1159_v5 = vld [vmem:[%s1543_s1 + $0x108] sm:$0xff] }
  0x17   :  { %678 = vmatpush.bf16.msra.mxu2 %v1144_v23  ;;  %v1168_v4 = vld [vmem:[%s1543_s1 + $0x150] sm:$0xff]  ;;  %v1175_v6 = vld [vmem:[%s1543_s1 + $0x188] sm:$0xff]  ;;  %v1158_v9 = vld [vmem:[%s1543_s1 + $0x100] sm:$0xff] }
  0x18   :  { %691 = vmatpush.bf16.msra.mxu3 %v1152_v24  ;;  %v1183_v7 = vld [vmem:[%s1543_s1 + $0x1c8] sm:$0xff]  ;;  %v1174_v10 = vld [vmem:[%s1543_s1 + $0x180] sm:$0xff]  ;;  %v49_v11 = vld.sshfl [vmem:[#allocation1 + $0x30] sm:$0xff pattern:$0x75316420] }
  0x19   :  { %665 = vmatpush.bf16.msra.mxu1 %v1136_v25  ;;  %v1167_v8 = vld [vmem:[%s1543_s1 + $0x148] sm:$0xff]  ;;  %v47_v12 = vld.sshfl [vmem:[#allocation1 + $0x20] sm:$0xff pattern:$0x75316420]  ;;  %v1197_v13 = vld [vmem:[%s1543_s1 + $0x238] sm:$0xff]  ;;  %v68_v17 = vpack.c.bf16 %v49_v11, %v49_v11 }
  0x1a   :  { %653 = vmatpush.bf16.msra.mxu0 %v1127_v27  ;;  %v1182_v14 = vld [vmem:[%s1543_s1 + $0x1c0] sm:$0xff]  ;;  %v50_v16 = vld.sshfl [vmem:[#allocation1 + $0x38] sm:$0xff pattern:$0x75316420]  ;;  %v66_v18 = vpack.c.bf16 %v47_v12, %v47_v12  ;;  %v1196_v20 = vld [vmem:[%s1543_s1 + $0x230] sm:$0xff] }
  0x1b   :  { %679 = vmatpush.bf16.msra.mxu2 %v1143_v28  ;;  %v1166_v15 = vld [vmem:[%s1543_s1 + $0x140] sm:$0xff]  ;;  %v48_v19 = vld.sshfl [vmem:[#allocation1 + $0x28] sm:$0xff pattern:$0x75316420]  ;;  %v69_v21 = vpack.c.bf16 %v50_v16, %v50_v16  ;;  %v1193_v25 = vld [vmem:[%s1543_s1 + $0x218] sm:$0xff] }
  0x1c   :  { %692 = vmatpush.bf16.msra.mxu3 %v1151_v30  ;;  %v67_v22 = vpack.c.bf16 %v48_v19, %v48_v19  ;;  %v1195_v23 = vld [vmem:[%s1543_s1 + $0x228] sm:$0xff]  ;;  %v1194_v24 = vld [vmem:[%s1543_s1 + $0x220] sm:$0xff]  ;;  %v1192_v26 = vld [vmem:[%s1543_s1 + $0x210] sm:$0xff] }
  0x1d   :  { %666 = vmatpush.bf16.msra.mxu1 %v1135_v31  ;;  %v1191_v27 = vld [vmem:[%s1543_s1 + $0x208] sm:$0xff]  ;;  %v1190_v28 = vld [vmem:[%s1543_s1 + $0x200] sm:$0xff]  ;;  %v790_v33 = vld [vmem:[%s1548_s4 + $0x78] sm:$0xff] }
  0x1e   :  { %654 = vmatpush.bf16.msra.mxu0 %v1126_v35  ;;  %v52_v29 = vld.sshfl [vmem:[#allocation1] sm:$0xff pattern:$0x75316420]  ;;  %v789_v34 = vld [vmem:[%s1548_s4 + $0x70] sm:$0xff]  ;;  %v788_v35 = vld [vmem:[%s1548_s4 + $0x68] sm:$0xff] }
  0x1f   :  { %680 = vmatpush.bf16.msra.mxu2 %v1142_v36  ;;  %v70_v30 = vpack.c.bf16 %v52_v29, %v52_v29 }
  0x20   :  { %693 = vmatpush.bf16.msra.mxu3 %v1150_v40  ;;  %v786_v40 = vld [vmem:[%s1548_s4 + $0x58] sm:$0xff] }
  0x21   :  { %667 = vmatpush.bf16.msra.mxu1 %v1134_v41  ;;  %655 = vmatmul.bf16.vlgmr.msra.gmra.mxu0 %v62_v46 }
  0x22   :  { %699 = vmatpush.bf16.msrb.mxu0 %v1165_v37  ;;  %681 = vmatmul.bf16.vlgmr.msra.gmra.mxu2 %v64_v45  ;;  %v787_v37 = vld [vmem:[%s1548_s4 + $0x60] sm:$0xff] }
  0x23   :  { %725 = vmatpush.bf16.msrb.mxu2 %v1181_v38  ;;  %694 = vmatmul.bf16.vlgmr.msra.gmra.mxu3 %v65_v49  ;;  %v783_v45 = vld [vmem:[%s1548_s4 + $0x40] sm:$0xff]  ;;  %v780_v49 = vld [vmem:[%s1548_s4 + $0x28] sm:$0xff] }
  0x24   :  { %738 = vmatpush.bf16.msrb.mxu3 %v1189_v42  ;;  %668 = vmatmul.bf16.vlgmr.msra.gmra.mxu1 %v63_v50  ;;  %v785_v42 = vld [vmem:[%s1548_s4 + $0x50] sm:$0xff]  ;;  %v779_v50 = vld [vmem:[%s1548_s4 + $0x20] sm:$0xff] }
  0x25   :  { %712 = vmatpush.bf16.msrb.mxu1 %v1173_v43  ;;  %v784_v43 = vld [vmem:[%s1548_s4 + $0x48] sm:$0xff] }
  0x26   :  { %700 = vmatpush.bf16.msrb.mxu0 %v1164_v47  ;;  %v782_v47 = vld [vmem:[%s1548_s4 + $0x38] sm:$0xff] }
  0x27   :  { %726 = vmatpush.bf16.msrb.mxu2 %v1180_v48  ;;  %v781_v48 = vld [vmem:[%s1548_s4 + $0x30] sm:$0xff] }
  0x28   :  { %739 = vmatpush.bf16.msrb.mxu3 %v1188_v51  ;;  %v778_v51 = vld [vmem:[%s1548_s4 + $0x18] sm:$0xff] }
  0x29   :  { %713 = vmatpush.bf16.msrb.mxu1 %v1172_v52 }
  0x2a   :  { %701 = vmatpush.bf16.msrb.mxu0 %v1163_v53  ;;  %v777_v53 = vld [vmem:[%s1548_s4 + $0x10] sm:$0xff] }
  0x2b   :  { %727 = vmatpush.bf16.msrb.mxu2 %v1179_v54  ;;  %v776_v54 = vld [vmem:[%s1548_s4 + $0x8] sm:$0xff] }
  0x2c   :  { %740 = vmatpush.bf16.msrb.mxu3 %v1187_v55 }
  0x2d   :  { %714 = vmatpush.bf16.msrb.mxu1 %v1171_v56 }
  0x2e   :  { %702 = vmatpush.bf16.msrb.mxu0 %v1162_v57  ;;  %v775_v57 = vld [vmem:[%s1548_s4] sm:$0xff] }
  0x2f   :  { %728 = vmatpush.bf16.msrb.mxu2 %v1178_v58 }
  0x30   :  { %741 = vmatpush.bf16.msrb.mxu3 %v1186_v59 }
  0x31   :  { %715 = vmatpush.bf16.msrb.mxu1 %v1170_v60 }
  0x32   :  { %703 = vmatpush.bf16.msrb.mxu0 %v1161_v61 }
  0x33   :  { %729 = vmatpush.bf16.msrb.mxu2 %v1177_v62 }
  0x34   :  { %742 = vmatpush.bf16.msrb.mxu3 %v1185_v63 }
  0x35   :  { %716 = vmatpush.bf16.msrb.mxu1 %v1169_v0 }
  0x36   :  { %704 = vmatpush.bf16.msrb.mxu0 %v1160_v1 }
  0x37   :  { %730 = vmatpush.bf16.msrb.mxu2 %v1176_v2 }
  0x38   :  { %743 = vmatpush.bf16.msrb.mxu3 %v1184_v3 }
  0x39   :  { %717 = vmatpush.bf16.msrb.mxu1 %v1168_v4 }
  0x3a   :  { %705 = vmatpush.bf16.msrb.mxu0 %v1159_v5 }
  0x3b   :  { %731 = vmatpush.bf16.msrb.mxu2 %v1175_v6  ;;  %v1198_v6 = vld [vmem:[%s1545_s2] ss:$0 sm:$0xff] }
  0x3c   :  { %744 = vmatpush.bf16.msrb.mxu3 %v1183_v7 }
  0x3d   :  { %718 = vmatpush.bf16.msrb.mxu1 %v1167_v8 }
  0x3e   :  { %706 = vmatpush.bf16.msrb.mxu0 %v1158_v9  ;;  %v1199_v9 = vld [vmem:[%s1546_s3] ss:$0 sm:$0xff] }
  0x3f   :  { %732 = vmatpush.bf16.msrb.mxu2 %v1174_v10 }
  0x40   :  { %745 = vmatpush.bf16.msrb.mxu3 %v1182_v14  ;;  %v1200_v14 = vld [vmem:[%s1547_s5] ss:$0 sm:$0xff] }
  0x41   :  { %719 = vmatpush.bf16.msrb.mxu1 %v1166_v15  ;;  %707 = vmatmul.bf16.vlgmr.msrb.gmra.mxu0 %v66_v18  ;;  %v1201_v15 = vld [vmem:[%s1549_s6] ss:$0 sm:$0xff] }
  0x42   :  { %751 = vmatpush.bf16.msra.mxu0 %v1197_v13  ;;  %733 = vmatmul.bf16.vlgmr.msrb.gmra.mxu2 %v68_v17 }
  0x43   :  { %746 = vmatmul.bf16.vlgmr.msrb.gmra.mxu3 %v69_v21 }
  0x44   :  { %720 = vmatmul.bf16.vlgmr.msrb.gmra.mxu1 %v67_v22 }
  0x45   :  { %791 = vmatpush.msra.mxu1 %v790_v33 }
  0x46   :  { %752 = vmatpush.bf16.msra.mxu0 %v1196_v20 }
  0x47   :  { %792 = vmatpush.msra.mxu1 %v789_v34 }
  0x49   :  { %793 = vmatpush.msra.mxu1 %v788_v35 }
  0x4a   :  { %753 = vmatpush.bf16.msra.mxu0 %v1195_v23 }
  0x4b   :  { %794 = vmatpush.msra.mxu1 %v787_v37 }
  0x4d   :  { %795 = vmatpush.msra.mxu1 %v786_v40 }
  0x4e   :  { %754 = vmatpush.bf16.msra.mxu0 %v1194_v24 }
  0x4f   :  { %796 = vmatpush.msra.mxu1 %v785_v42 }
  0x51   :  { %797 = vmatpush.msra.mxu1 %v784_v43 }
  0x52   :  { %755 = vmatpush.bf16.msra.mxu0 %v1193_v25 }
  0x53   :  { %798 = vmatpush.msra.mxu1 %v783_v45 }
  0x55   :  { %799 = vmatpush.msra.mxu1 %v782_v47 }
  0x56   :  { %756 = vmatpush.bf16.msra.mxu0 %v1192_v26 }
  0x57   :  { %800 = vmatpush.msra.mxu1 %v781_v48 }
  0x59   :  { %801 = vmatpush.msra.mxu1 %v780_v49 }
  0x5a   :  { %757 = vmatpush.bf16.msra.mxu0 %v1191_v27 }
  0x5b   :  { %802 = vmatpush.msra.mxu1 %v779_v50 }
  0x5d   :  { %803 = vmatpush.msra.mxu1 %v778_v51 }
  0x5e   :  { %758 = vmatpush.bf16.msra.mxu0 %v1190_v28 }
  0x5f   :  { %804 = vmatpush.msra.mxu1 %v777_v53 }
  0x61   :  { %759 = vmatmul.bf16.vlgmr.msra.gmra.mxu0 %v70_v30  ;;  %805 = vmatpush.msra.mxu1 %v776_v54 }
  0x63   :  { %806 = vmatpush.msra.mxu1 %v775_v57 }
  0x9e   :  { %v656_v31 = vpop.f32.mrf.mxu0 }
  0xa1   :  { %v669_v32 = vpop.f32.mrf.mxu1 }
  0xa2   :  { %v670_v56 = vadd.f32 %v669_v32, %v656_v31 }
  0xa5   :  { %v682_v36 = vpop.f32.mrf.mxu2 }
  0xa6   :  { %v695_v38 = vpop.f32.mrf.mxu3  ;;  %v658_v39 = vpop.f32.mrf.mxu0  ;;  %v683_v59 = vadd.f32 %v682_v36, %v670_v56 }
  0xa8   :  { %v696_v63 = vadd.f32 %v695_v38, %v683_v59 }
  0xa9   :  { %v671_v41 = vpop.f32.mrf.mxu1 }
  0xad   :  { %v684_v44 = vpop.f32.mrf.mxu2 }
  0xae   :  { %v697_v46 = vpop.f32.mrf.mxu3 }
  0xbe   :  { %v708_v52 = vpop.f32.mrf.mxu0 }
  0xbf   :  { %v709_v1 = vadd.f32 %v708_v52, %v696_v63 }
  0xc1   :  { %v721_v55 = vpop.f32.mrf.mxu1 }
  0xc2   :  { %v722_v3 = vadd.f32 %v721_v55, %v709_v1 }
  0xc5   :  { %v734_v58 = vpop.f32.mrf.mxu2 }
  0xc6   :  { %v747_v60 = vpop.f32.mrf.mxu3  ;;  %v710_v61 = vpop.f32.mrf.mxu0  ;;  %v735_v4 = vadd.f32 %v734_v58, %v722_v3 }
  0xc8   :  { %v748_v5 = vadd.f32 %v747_v60, %v735_v4 }
  0xc9   :  { %v723_v62 = vpop.f32.mrf.mxu1 }
  0xcd   :  { %v736_v0 = vpop.f32.mrf.mxu2 }
  0xce   :  { %v749_v2 = vpop.f32.mrf.mxu3 }
  0xde   :  { %v760_v7 = vpop.f32.mrf.mxu0 }
  0xdf   :  { %v761_v8 = vadd.f32 %v760_v7, %v748_v5 }
  0xe1   :  { %v768_v10 = vmul.f32 %v1198_v6, %v761_v8 }
  0xe3   :  { %v773_v11 = vadd.f32 %v1199_v9, %v768_v10 }
  0xe5   :  { %v774_v12 = vmax.f32 %v773_v11, 0.0 }
  0xe6   :  { %v762_v13 = vpop.f32.mrf.mxu0 }
  0xe7   :  { %807 = vmatmul.f32.vlgmr.msra.gmra.mxu1 %v774_v12 }
 0x164   :  { %v808_v16 = vpop.f32.mrf.mxu1 }
 0x165   :  { %v815_v17 = vmul.f32 %v1200_v14, %v808_v16 }
 0x167   :  { %v820_v18 = vadd.f32 %v1201_v15, %v815_v17 }
 0x169   :  { %v822_v19 = vsel %vm821_vm0, %v820_v18, -inf }
 0x16a   :  { %823 = vmax.xlane.f32.xlu0 %v822_v19 }
 0x1dd   :  { %v824_v20 = vpop.xlane.xlu0 %823 }
 0x1de   :  { %v825_v21 = vsub.f32 %v820_v18, %v824_v20 }
 0x1e0   :  { %v826_v22 = vmul.f32 1.442695, %v825_v21 }
 0x1e2   :  { %1202 = vpow2.f32 %v826_v22 }
 0x1e8   :  { %v1203_v23 = vpop.eup %1202 }
 0x1e9   :  { %v828_v24 = vsel %vm821_vm0, %v1203_v23, 0.0 }
 0x1ea   :  { %829 = vadd.xlane.f32.xlu0 %v828_v24 }
 0x25d   :  { %v830_v25 = vpop.xlane.xlu0 %829 }
 0x25e   :  { %1204 = vrcp.f32 %v830_v25 }
 0x264   :  { %v1205_v26 = vpop.eup %1204 }
 0x265   :  { %v832_v27 = vmul.f32 %v1205_v26, %v1203_v23 }
 0x267   :  { %833 = vst.msk [vmem:[%s1550_s7] sm:$0xf] %vm821_vm0, %v832_v27 }

// kernel: _lambda_.2
= control target key start
LH: loop header
LB: loop body
LE: loop exit
PB: predicated region body
PF: predicated region fallthrough
CT: control target
= control target key end

     0   :  { %v2342_v0 = vmov 1   ;;  %v2343_v1 = vmov 0   ;;  %s2344_s6 = smov 2   ;;  %s2345_s10 = smov 5   ;;  %v2356_v33 = vmov 2   ;;  %vm402_vm0 = vcmask 195584   ;;  %s3570_s0 = inlined_call_operand.smem [shape: u32[31], index: -1, kind: input, shape index: {}] }
   0x1   :  { %2249 = vset.pattern.permute.xlu0 %v2342_v0  ;;  %2248 = vset.pattern.permute.xlu2 %v2342_v0  ;;  %s1_s5 = sld [smem:[%s3570_s0]]   ;;  %s2346_s14 = smov 6   ;;  %v2358_v38 = vmov 0.0   ;;  %vm408_vm1 = vcmask 188416   ;;  %vm478_vm2 = vcmask 1043456   ;;  %vm597_vm3 = vcmask 392192  }
   0x2   :  { %2247 = vset.pattern.permute.xlu1 %v2343_v1  ;;  %s2391_s9 = sld [smem:[%s3570_s0 + %s2344_s6]]   ;;  %s2347_s18 = smov 10   ;;  %405 = vst.msk [vmem:[#allocation2 + $0x10] sm:$0xff] %vm402_vm0, %v2358_v38  ;;  %vm1723_vm4 = vcmask 189440   ;;  %vm1743_vm5 = vcmask 194560  }
   0x3   :  { %s2396_s13 = sld [smem:[%s3570_s0 + %s2345_s10]]   ;;  %s2348_s22 = smov 1   ;;  %403 = vst.msk [vmem:[#allocation2] sm:$0xff] %vm402_vm0, %v2358_v38 }
   0x4   :  { %s2401_s17 = sld [smem:[%s3570_s0 + %s2346_s14]]   ;;  %s2349_s26 = smov 11   ;;  %404 = vst.msk [vmem:[#allocation2 + $0x8] sm:$0xff] %vm402_vm0, %v2358_v38 }
   0x5   :  { %s2407_s21 = sld [smem:[%s3570_s0 + %s2347_s18]]   ;;  %s2350_s30 = smov 12   ;;  %406 = vst.msk [vmem:[#allocation2 + $0x18] sm:$0xff] %vm402_vm0, %v2358_v38 }
   0x6   :  { %s2412_s25 = sld [smem:[%s3570_s0 + %s2348_s22]]   ;;  %s2351_s4 = smov 13   ;;  %407 = vst.msk [vmem:[#allocation3] sm:$0xff] %vm402_vm0, %v2358_v38 }
   0x7   :  { %v132_v2 = vld [vmem:[%s1_s5 + $0x10] sm:$0xff]  ;;  %v130_v3 = vld [vmem:[%s1_s5] sm:$0xff]  ;;  %v133_v5 = vld [vmem:[%s1_s5 + $0x18] sm:$0xff]  ;;  %s2420_s29 = sld [smem:[%s3570_s0 + %s2349_s26]]   ;;  %s2352_s8 = smov 3   ;;  %410 = vst.msk [vmem:[#allocation3 + $0x10] sm:$0xff] %vm402_vm0, %v2358_v38 }
   0x8   :  { %168 = vperm.xlu0 %2249, %v132_v2   ;;  %146 = vperm.xlu1 %2247, %v132_v2   ;;  %v272_v4 = vld [vmem:[%s2391_s9 + $0x10] sm:$0xff]  ;;  %v131_v6 = vld [vmem:[%s1_s5 + $0x8] sm:$0xff]  ;;  %s2432_s3 = sld [smem:[%s3570_s0 + %s2350_s30]]   ;;  %v270_v16 = vld [vmem:[%s2391_s9] sm:$0xff]  ;;  %s2354_s18 = smov 16   ;;  %412 = vst.msk [vmem:[#allocation3 + $0x20] sm:$0xff] %vm402_vm0, %v2358_v38 }
   0x9   :  { %160 = vperm.xlu2 %2248, %v130_v3   ;;  %s2444_s7 = sld [smem:[%s3570_s0 + %s2351_s4]]   ;;  %v271_v15 = vld [vmem:[%s2391_s9 + $0x8] sm:$0xff]  ;;  %v273_v17 = vld [vmem:[%s2391_s9 + $0x18] sm:$0xff]  ;;  %s2353_s9 = smov 15   ;;  %414 = vst.msk [vmem:[#allocation3 + $0x30] sm:$0xff] %vm402_vm0, %v2358_v38  ;;  %v2630_v58 = vld [vmem:[%s2396_s13] ss:$0 sm:$0xff] }
   0xa   :  { %s2079_s12 = sld [smem:[%s3570_s0 + %s2352_s8]]   ;;  %s2357_s26 = smov 21   ;;  %977 = vst.msk [vmem:[#allocation4] sm:$0xff] %vm402_vm0, %v2358_v38  ;;  %v2641_v63 = vld [vmem:[%s2401_s17] ss:$0 sm:$0xff] }
   0xb   :  { %v2415_v7 = vld [vmem:[%s2407_s21 + $0x10] sm:$0xff]  ;;  %s2474_s16 = sld [smem:[%s3570_s0 + %s2353_s9]]   ;;  %v608_v23 = vld [vmem:[%s2407_s21] sm:$0xff]  ;;  %v609_v25 = vld [vmem:[%s2407_s21 + $0x8] sm:$0xff]  ;;  %s2359_s1 = smov 4   ;;  %979 = vst.msk [vmem:[#allocation4 + $0x10] sm:$0xff] %vm402_vm0, %v2358_v38 }
   0xc   :  { %v202_v8 = vld [vmem:[%s2412_s25] sm:$0xff]  ;;  %v204_v10 = vld [vmem:[%s2412_s25 + $0x10] sm:$0xff]  ;;  %v203_v11 = vld [vmem:[%s2412_s25 + $0x8] sm:$0xff]  ;;  %s2479_s22 = sld [smem:[%s3570_s0 + %s2354_s18]]   ;;  %s2360_s6 = smov 23   ;;  %981 = vst.msk [vmem:[#allocation4 + $0x20] sm:$0xff] %vm402_vm0, %v2358_v38 }
   0xd   :  { %v2427_v9 = vld [vmem:[%s2420_s29] sm:$0xff]  ;;  %v205_v14 = vld [vmem:[%s2412_s25 + $0x18] sm:$0xff]  ;;  %s2529_s30 = sld [smem:[%s3570_s0 + %s2357_s26]]   ;;  %v706_v43 = vld [vmem:[%s2420_s29 + $0x8] sm:$0xff]  ;;  %983 = vst.msk [vmem:[#allocation4 + $0x30] sm:$0xff] %vm402_vm0, %v2358_v38  ;;  %s2361_s13 = smov 7  }
   0xe   :  { %v2439_v12 = vld [vmem:[%s2432_s3 + $0x18] sm:$0xff]  ;;  %v2495_v28 = vld [vmem:[%s2432_s3 + $0x10] sm:$0xff]  ;;  %s2080_s5 = sld [smem:[%s3570_s0 + %s2359_s1]]   ;;  %985 = vst.msk [vmem:[#allocation5] sm:$0xff] %vm402_vm0, %v2358_v38  ;;  %s2362_s9 = smov 14  }
   0xf   :  { %v2450_v13 = vld [vmem:[%s2444_s7 + $0x8] sm:$0xff]  ;;  %v2486_v26 = vld [vmem:[%s2407_s21 + $0x18] sm:$0xff]  ;;  %v2507_v32 = vld [vmem:[%s2444_s7] sm:$0xff]  ;;  %s2355_s21 = smov 20   ;;  %s2563_s11 = sld [smem:[%s3570_s0 + %s2360_s6]]   ;;  %987 = vst.msk [vmem:[#allocation5 + $0x10] sm:$0xff] %vm402_vm0, %v2358_v38 }
  0x10   :  { %307 = vperm.xlu0 %2249, %v272_v4   ;;  %151 = vperm.xlu1 %2247, %v133_v5   ;;  %v334_v18 = vld [vmem:[%s2079_s12] sm:$0xff]  ;;  %v336_v19 = vld [vmem:[%s2079_s12 + $0x10] sm:$0xff]  ;;  %v335_v20 = vld [vmem:[%s2079_s12 + $0x8] sm:$0xff]  ;;  %s2512_s25 = sld [smem:[%s3570_s0 + %s2355_s21]]   ;;  %989 = vst.msk [vmem:[#allocation5 + $0x20] sm:$0xff] %vm402_vm0, %v2358_v38  ;;  %s2364_s23 = smov 8  }
  0x11   :  { %164 = vperm.xlu2 %2248, %v131_v6   ;;  %v337_v21 = vld [vmem:[%s2079_s12 + $0x18] sm:$0xff]  ;;  %991 = vst.msk [vmem:[#allocation5 + $0x30] sm:$0xff] %vm402_vm0, %v2358_v38  ;;  %v2600_v50 = vld [vmem:[%s2420_s29 + $0x10] sm:$0xff]  ;;  %s2661_s12 = sld [smem:[%s3570_s0 + %s2361_s13]]   ;;  %s2365_s28 = smov 9  }
  0x12   :  { %1722 = vst.msk [vmem:[#allocation6] sm:$0xff] %vm402_vm0, %v2358_v38  ;;  %v2595_v49 = vld [vmem:[%s2420_s29 + $0x18] sm:$0xff]  ;;  %s2720_s18 = sld [smem:[%s3570_s0 + %s2362_s9]]   ;;  %s2369_s13 = smov 17  }
  0x13   :  { %v1380_v42 = vld [vmem:[%s2529_s30 + $0x10] sm:$0xff]  ;;  %1725 = vst.msk [vmem:[#allocation6 + $0x10] sm:$0xff] %vm402_vm0, %v2358_v38  ;;  %s2867_s27 = sld [smem:[%s3570_s0 + %s2364_s23]]   ;;  %s2370_s9 = smov 24  }
  0x14   :  { %v127_v47 = vld [vmem:[%s2080_s5] sm:$0x3]  ;;  %1727 = vst.msk [vmem:[#allocation6 + $0x20] sm:$0xff] %vm402_vm0, %v2358_v38  ;;  %s2876_s4 = sld [smem:[%s3570_s0 + %s2365_s28]]   ;;  %s2372_s24 = smov 18  }
  0x15   :  { %v2590_v48 = vld [vmem:[%s2563_s11] sm:$0x7f]  ;;  %v2604_v51 = vperm.slane %v127_v47, 1  ;;  %v2606_v52 = vperm.slane %v127_v47, 0  ;;  %1729 = vst.msk [vmem:[#allocation6 + $0x30] sm:$0xff] %vm402_vm0, %v2358_v38  ;;  %s3218_s28 = sld [smem:[%s3570_s0 + %s2372_s24]]   ;;  %s2373_s1 = smov 19  }
  0x16   :  { %v2524_v37 = vld [vmem:[%s2512_s25 + $0x18] sm:$0xff]  ;;  %1731 = vst.msk [vmem:[#allocation7] sm:$0xff] %vm402_vm0, %v2358_v38  ;;  %s2376_s8 = smov 29  }
  0x17   :  { %1733 = vst.msk [vmem:[#allocation7 + $0x10] sm:$0xff] %vm402_vm0, %v2358_v38  ;;  %v2109_v47 = vld [vmem:[%s2661_s12 + $0x14] sm:$0xf]  ;;  %s3419_s17 = sld [smem:[%s3570_s0 + %s2376_s8]]  }
  0x18   :  { %646 = vperm.xlu0 %2249, %v2415_v7   ;;  %2250 = vset.pattern.permute.xlu1 %v2342_v0  ;;  %1735 = vst.msk [vmem:[#allocation7 + $0x20] sm:$0xff] %vm402_vm0, %v2358_v38 }
  0x19   :  { %2251 = vset.pattern.permute.xlu2 %v2343_v1  ;;  %172 = vperm.xlu1 %2250, %v133_v5   ;;  %1737 = vst.msk [vmem:[#allocation7 + $0x30] sm:$0xff] %vm402_vm0, %v2358_v38 }
  0x1a   :  { %208 = vperm.xlu2 %2251, %v202_v8   ;;  %411 = vst.msk [vmem:[#allocation3 + $0x18] sm:$0x1] %vm408_vm1, %v2358_v38 }
  0x1b   :  { %409 = vst.msk [vmem:[#allocation3 + $0x8] sm:$0x1] %vm408_vm1, %v2358_v38 }
  0x1c   :  { %413 = vst.msk [vmem:[#allocation3 + $0x28] sm:$0x1] %vm408_vm1, %v2358_v38 }
  0x1d   :  { %415 = vst.msk [vmem:[#allocation3 + $0x38] sm:$0x1] %vm408_vm1, %v2358_v38 }
  0x1e   :  { %978 = vst.msk [vmem:[#allocation4 + $0x8] sm:$0x1] %vm408_vm1, %v2358_v38 }
  0x1f   :  { %980 = vst.msk [vmem:[#allocation4 + $0x18] sm:$0x1] %vm408_vm1, %v2358_v38 }
  0x20   :  { %734 = vperm.xlu0 %2249, %v2427_v9   ;;  %982 = vst.msk [vmem:[#allocation4 + $0x28] sm:$0x1] %vm408_vm1, %v2358_v38 }
  0x21   :  { %2252 = vset.pattern.permute.xlu1 %v2343_v1  ;;  %984 = vst.msk [vmem:[#allocation4 + $0x38] sm:$0x1] %vm408_vm1, %v2358_v38 }
  0x22   :  { %218 = vperm.xlu2 %2251, %v204_v10   ;;  %213 = vperm.xlu1 %2252, %v203_v11   ;;  %986 = vst.msk [vmem:[#allocation5 + $0x8] sm:$0x1] %vm408_vm1, %v2358_v38 }
  0x23   :  { %988 = vst.msk [vmem:[#allocation5 + $0x18] sm:$0x1] %vm408_vm1, %v2358_v38 }
  0x24   :  { %990 = vst.msk [vmem:[#allocation5 + $0x28] sm:$0x1] %vm408_vm1, %v2358_v38 }
  0x25   :  { %992 = vst.msk [vmem:[#allocation5 + $0x38] sm:$0x1] %vm408_vm1, %v2358_v38 }
  0x26   :  { %1732 = vst.msk [vmem:[#allocation7 + $0x8] sm:$0x1] %vm408_vm1, %v2358_v38 }
  0x27   :  { %1734 = vst.msk [vmem:[#allocation7 + $0x18] sm:$0x1] %vm408_vm1, %v2358_v38 }
  0x28   :  { %838 = vperm.xlu0 %2249, %v2439_v12   ;;  %1736 = vst.msk [vmem:[#allocation7 + $0x28] sm:$0x1] %vm408_vm1, %v2358_v38 }
  0x29   :  { %1738 = vst.msk [vmem:[#allocation7 + $0x38] sm:$0x1] %vm408_vm1, %v2358_v38 }
  0x2a   :  { %2254 = vset.pattern.permute.xlu2 %v2342_v0  ;;  %2253 = vset.pattern.permute.xlu1 %v2342_v0  ;;  %1724 = vst.msk [vmem:[#allocation6 + $0x8] sm:$0x3] %vm1723_vm4, %v2358_v38 }
  0x2b   :  { %235 = vperm.xlu2 %2254, %v203_v11   ;;  %231 = vperm.xlu1 %2253, %v202_v8   ;;  %1726 = vst.msk [vmem:[#allocation6 + $0x18] sm:$0x3] %vm1723_vm4, %v2358_v38 }
  0x2c   :  { %1728 = vst.msk [vmem:[#allocation6 + $0x28] sm:$0x3] %vm1723_vm4, %v2358_v38 }
  0x2d   :  { %1730 = vst.msk [vmem:[#allocation6 + $0x38] sm:$0x3] %vm1723_vm4, %v2358_v38 }
  0x30   :  { %918 = vperm.xlu0 %2249, %v2450_v13  }
  0x33   :  { %243 = vperm.xlu2 %2254, %v205_v14   ;;  %239 = vperm.xlu1 %2253, %v204_v10  }
  0x38   :  { %2284 = vset.pattern.permute.xlu0 %v2343_v1 }
  0x39   :  { %136 = vperm.xlu0 %2284, %v130_v3  }
  0x3b   :  { %2256 = vset.pattern.permute.xlu2 %v2343_v1  ;;  %2255 = vset.pattern.permute.xlu1 %v2343_v1 }
  0x3c   :  { %286 = vperm.xlu2 %2256, %v272_v4   ;;  %281 = vperm.xlu1 %2255, %v271_v15  }
  0x41   :  { %141 = vperm.xlu0 %2284, %v131_v6  }
  0x44   :  { %2258 = vset.pattern.permute.xlu2 %v2342_v0  ;;  %2257 = vset.pattern.permute.xlu1 %v2342_v0 }
  0x45   :  { %303 = vperm.xlu2 %2258, %v271_v15   ;;  %299 = vperm.xlu1 %2257, %v270_v16  }
  0x49   :  { %223 = vperm.xlu0 %2284, %v205_v14  }
  0x4d   :  { %2259 = vset.pattern.permute.xlu2 %v2343_v1  ;;  %311 = vperm.xlu1 %2257, %v273_v17  }
  0x4e   :  { %340 = vperm.xlu2 %2259, %v334_v18  }
  0x51   :  { %276 = vperm.xlu0 %2284, %v270_v16  }
  0x55   :  { %2260 = vset.pattern.permute.xlu1 %v2343_v1 }
  0x56   :  { %350 = vperm.xlu2 %2259, %v336_v19   ;;  %345 = vperm.xlu1 %2260, %v335_v20  }
  0x59   :  { %291 = vperm.xlu0 %2284, %v273_v17  }
  0x5e   :  { %2262 = vset.pattern.permute.xlu2 %v2342_v0  ;;  %2261 = vset.pattern.permute.xlu1 %v2342_v0 }
  0x5f   :  { %367 = vperm.xlu2 %2262, %v335_v20   ;;  %363 = vperm.xlu1 %2261, %v334_v18  }
  0x61   :  { %355 = vperm.xlu0 %2284, %v337_v21  }
  0x63   :  { %v2469_v22 = vpop.permute.xlu2 %160 }
  0x64   :  { %v176_v14 = vmul.f32 %v2604_v51, %v2469_v22 }
  0x67   :  { %375 = vperm.xlu2 %2262, %v337_v21   ;;  %371 = vperm.xlu1 %2261, %v336_v19  }
  0x69   :  { %614 = vperm.xlu0 %2284, %v608_v23  }
  0x6b   :  { %v2482_v24 = vpop.permute.xlu2 %164 }
  0x6f   :  { %2264 = vset.pattern.permute.xlu2 %v2343_v1  ;;  %2263 = vset.pattern.permute.xlu1 %v2343_v1 }
  0x70   :  { %624 = vperm.xlu2 %2264, %v2415_v7   ;;  %619 = vperm.xlu1 %2263, %v609_v25  }
  0x71   :  { %629 = vperm.xlu0 %2284, %v2486_v26  }
  0x74   :  { %v2492_v27 = vpop.permute.xlu2 %208 }
  0x75   :  { %v226_v3 = vmul.f32 %v2492_v27, %v2606_v52 }
  0x78   :  { %2266 = vset.pattern.permute.xlu2 %v2342_v0  ;;  %2265 = vset.pattern.permute.xlu1 %v2342_v0 }
  0x79   :  { %642 = vperm.xlu2 %2266, %v609_v25   ;;  %638 = vperm.xlu1 %2265, %v608_v23  }
  0x7a   :  { %813 = vperm.xlu0 %2284, %v2495_v28   ;;  %v2500_v29 = vpop.permute.xlu0 %168  ;;  %v2502_v30 = vpop.permute.xlu1 %146 }
  0x7b   :  { %v178_v55 = vmul.f32 %v2604_v51, %v2500_v29  ;;  %v157_v56 = vmul.f32 %v2606_v52, %v2502_v30 }
  0x7c   :  { %v2504_v31 = vpop.permute.xlu2 %218 }
  0x7d   :  { %v182_v59 = vadd.f32 %v178_v55, %v157_v56  ;;  %v228_v4 = vmul.f32 %v2504_v31, %v2606_v52 }
  0x7f   :  { %v189_v2 = vmul.f32 %v2630_v58, %v182_v59  ;;  %v462_v59 = vunpack.c.l.b16 %v2109_v47 }
  0x81   :  { %2267 = vset.pattern.permute.xlu2 %v2356_v33  ;;  %650 = vperm.xlu1 %2265, %v2486_v26   ;;  %v196_v10 = vadd.f32 %v2641_v63, %v189_v2 }
  0x82   :  { %891 = vperm.xlu0 %2284, %v2507_v32   ;;  %663 = vperm.xlu2 %2267, %v608_v23   ;;  %v2517_v34 = vpop.permute.xlu1 %151  ;;  %v2519_v35 = vpop.permute.xlu0 %307 }
  0x83   :  { %v200_v21 = vmax.f32 %v196_v10, 0.0  ;;  %v2728_v10 = vld [vmem:[%s2432_s3 + $0x8] sm:$0xff] }
  0x85   :  { %v2521_v36 = vpop.permute.xlu2 %235 }
  0x86   :  { %v247_v15 = vmul.f32 %v2521_v36, %v2604_v51  ;;  %v177_v36 = vmul.f32 %v2604_v51, %v2482_v24  ;;  %v158_v24 = vmul.f32 %v2606_v52, %v2517_v34 }
  0x89   :  { %2268 = vset.pattern.permute.xlu1 %v2356_v33 }
  0x8a   :  { %1277 = vperm.xlu0 %2284, %v2524_v37   ;;  %671 = vperm.xlu2 %2267, %v2415_v7   ;;  %v2540_v39 = vpop.permute.xlu0 %646 }
  0x8b   :  { %667 = vperm.xlu1 %2268, %v609_v25   ;;  %v2544_v40 = vpop.permute.xlu1 %172 }
  0x8d   :  { %v2550_v41 = vpop.permute.xlu2 %243 }
  0x92   :  { %1394 = vperm.xlu0 %2284, %v1380_v42   ;;  %2270 = vset.pattern.permute.xlu2 %v2343_v1  ;;  %v2573_v44 = vpop.permute.xlu0 %734  ;;  %v179_v42 = vmul.f32 %v2604_v51, %v2544_v40 }
  0x93   :  { %2269 = vset.pattern.permute.xlu1 %v2343_v1  ;;  %716 = vperm.xlu2 %2270, %v706_v43  }
  0x94   :  { %711 = vperm.xlu1 %2269, %v2427_v9   ;;  %v214_v45 = vpop.permute.xlu1 %213  ;;  %v183_v34 = vadd.f32 %v179_v42, %v158_v24 }
  0x95   :  { %v227_v16 = vmul.f32 %v214_v45, %v2606_v52 }
  0x96   :  { %v2585_v46 = vpop.permute.xlu2 %286 }
  0x9a   :  { %1612 = vperm.xlu0 %2284, %v2590_v48   ;;  %v2609_v53 = vpop.permute.xlu0 %838 }
  0x9b   :  { %726 = vperm.xlu2 %2270, %v2595_v49  }
  0x9c   :  { %721 = vperm.xlu1 %2269, %v2600_v50  }
  0x9d   :  { %v232_v54 = vpop.permute.xlu1 %231 }
  0x9e   :  { %v246_v61 = vmul.f32 %v232_v54, %v2604_v51 }
  0x9f   :  { %v2627_v57 = vpop.permute.xlu2 %303 }
  0xa0   :  { %v250_v6 = vadd.f32 %v246_v61, %v226_v3 }
  0xa2   :  { %2299 = vset.pattern.permute.xlu0 %v2356_v33  ;;  %v2633_v60 = vpop.permute.xlu0 %918  ;;  %v254_v18 = vmul.f32 %v2630_v58, %v250_v6  ;;  %v249_v6 = vmul.f32 %v2550_v41, %v2604_v51 }
  0xa3   :  { %675 = vperm.xlu0 %2299, %v2486_v26   ;;  %2272 = vset.pattern.permute.xlu2 %v2342_v0  ;;  %v251_v26 = vadd.f32 %v247_v15, %v227_v16 }
  0xa4   :  { %2271 = vset.pattern.permute.xlu1 %v2342_v0  ;;  %742 = vperm.xlu2 %2272, %v2600_v50   ;;  %v258_v27 = vadd.f32 %v2641_v63, %v254_v18  ;;  %v2736_v18 = vld [vmem:[%s2432_s3] sm:$0xff]  ;;  %s2363_s3 = smov 22  }
  0xa5   :  { %738 = vperm.xlu1 %2271, %v706_v43   ;;  %v240_v62 = vpop.permute.xlu1 %239  ;;  %s2853_s21 = sld [smem:[%s3570_s0 + %s2363_s3]]   ;;  %s2371_s3 = smov 30  }
  0xa6   :  { %v248_v5 = vmul.f32 %v240_v62, %v2604_v51  ;;  %v262_v54 = vmax.f32 %v258_v27, 0.0  ;;  %v464_v62 = vpack.c.b16 %v462_v59, %v462_v59  ;;  %s3146_s23 = sld [smem:[%s3570_s0 + %s2371_s3]]  }
  0xa8   :  { %v252_v7 = vadd.f32 %v248_v5, %v228_v4  ;;  %v2649_v8 = vpop.permute.xlu2 %340 }
  0xaa   :  { %v256_v11 = vmul.f32 %v2630_v58, %v252_v7 }
  0xab   :  { %762 = vperm.xlu0 %2299, %v706_v43   ;;  %v137_v17 = vpop.permute.xlu0 %136  ;;  %v255_v43 = vmul.f32 %v2630_v58, %v251_v26 }
  0xac   :  { %v260_v19 = vadd.f32 %v2641_v63, %v256_v11  ;;  %v155_v20 = vmul.f32 %v2606_v52, %v137_v17  ;;  %2273 = vset.pattern.permute.xlu2 %v2356_v33  ;;  %v2198_v11 = vld [vmem:[%s2661_s12 + $0xc] sm:$0xff] }
  0xad   :  { %746 = vperm.xlu1 %2271, %v2595_v49   ;;  %758 = vperm.xlu2 %2273, %v2427_v9  }
  0xae   :  { %v264_v22 = vmax.f32 %v260_v19, 0.0  ;;  %v180_v23 = vadd.f32 %v176_v14, %v155_v20  ;;  %v2671_v25 = vpop.permute.xlu1 %281  ;;  %v190_v14 = vmul.f32 %v2630_v58, %v183_v34 }
  0xaf   :  { %v295_v26 = vmul.f32 %v2671_v25, %v2606_v52 }
  0xb0   :  { %v268_v29 = vmax.f32 %v200_v21, %v264_v22  ;;  %v187_v9 = vmul.f32 %v2630_v58, %v180_v23  ;;  %v2679_v30 = vpop.permute.xlu2 %350  ;;  %v197_v21 = vadd.f32 %v2641_v63, %v190_v14  ;;  %v315_v23 = vmul.f32 %v2627_v57, %v2604_v51 }
  0xb2   :  { %418 = vst.msk [vmem:[#allocation2 + $0x10] sm:$0xff] %vm402_vm0, %v268_v29  ;;  %v194_v31 = vadd.f32 %v2641_v63, %v187_v9  ;;  %v2756_v29 = vld [vmem:[%s2720_s18] sm:$0x7]  ;;  %v201_v42 = vmax.f32 %v197_v21, 0.0  ;;  %v296_v21 = vmul.f32 %v2585_v46, %v2606_v52  ;;  %s2100_s18 = sld [smem:[%s3570_s0 + %s2370_s9]]  }
  0xb3   :  { %v142_v45 = vpop.permute.xlu0 %141  ;;  %v2761_v47 = vperm.slane %v2756_v29, 1 }
  0xb4   :  { %v198_v55 = vmax.f32 %v194_v31, 0.0  ;;  %v156_v56 = vmul.f32 %v2606_v52, %v142_v45 }
  0xb5   :  { %2274 = vset.pattern.permute.xlu1 %v2356_v33  ;;  %770 = vperm.xlu2 %2273, %v2595_v49   ;;  %v259_v49 = vadd.f32 %v2641_v63, %v255_v43 }
  0xb6   :  { %v266_v40 = vmax.f32 %v198_v55, %v262_v54  ;;  %v181_v61 = vadd.f32 %v177_v36, %v156_v56  ;;  %766 = vperm.xlu1 %2274, %v2600_v50   ;;  %v480_v50 = vsel %vm478_vm2, %v464_v62, 0  ;;  %v440_v36 = vld [vmem:[%s2661_s12 + $0x8] sm:$0xf]  ;;  %v319_v54 = vadd.f32 %v315_v23, %v295_v26 }
  0xb7   :  { %v2707_v2 = vpop.permute.xlu1 %299  ;;  %2206 = vmatpush.bf16.msra.mxu1 %v480_v50  ;;  %488 = vmatpush.bf16.msra.mxu0 %v480_v50  ;;  %v263_v15 = vmax.f32 %v259_v49, 0.0  ;;  %v516_v45 = vunpack.c.l.b16 %v440_v36  ;;  %v2768_v56 = vperm.slane %v2756_v29, 0 }
  0xb8   :  { %416 = vst.msk [vmem:[#allocation2] sm:$0xff] %vm402_vm0, %v266_v40  ;;  %v188_v3 = vmul.f32 %v2630_v58, %v181_v61  ;;  %2208 = vmatpush.bf16.msra.mxu3 %v480_v50  ;;  %2207 = vmatpush.bf16.msra.mxu2 %v480_v50  ;;  %v2773_v40 = vld [vmem:[%s2444_s7 + $0x10] sm:$0xff]  ;;  %v656_v61 = vmul.f32 %v2761_v47, %v2540_v39 }
  0xb9   :  { %v368_v4 = vpop.permute.xlu2 %367  ;;  %v518_v57 = vpack.c.b16 %v516_v45, %v516_v45  ;;  %v323_v62 = vmul.f32 %v2630_v58, %v319_v54  ;;  %946 = vperm.xlu0 %2299, %v2773_v40  }
  0xba   :  { %v195_v5 = vadd.f32 %v2641_v63, %v188_v3  ;;  %v379_v25 = vmul.f32 %v368_v4, %v2604_v51 }
  0xbb   :  { %v224_v7 = vpop.permute.xlu0 %223  ;;  %2209 = vmatpush.bf16.msra.mxu1 %v2198_v11  ;;  %489 = vmatpush.bf16.msra.mxu0 %v2198_v11  ;;  %v533_v24 = vsel %vm478_vm2, %v518_v57, 0 }
  0xbc   :  { %v199_v16 = vmax.f32 %v195_v5, 0.0  ;;  %v229_v17 = vmul.f32 %v224_v7, %v2606_v52  ;;  %2211 = vmatpush.bf16.msra.mxu3 %v2198_v11  ;;  %2210 = vmatpush.bf16.msra.mxu2 %v2198_v11  ;;  %v314_v7 = vmul.f32 %v2707_v2, %v2604_v51  ;;  %v327_v11 = vadd.f32 %v2641_v63, %v323_v62 }
  0xbd   :  { %2276 = vset.pattern.permute.xlu2 %v2343_v1  ;;  %v316_v2 = vmul.f32 %v2519_v35, %v2604_v51  ;;  %v360_v62 = vmul.f32 %v2679_v30, %v2606_v52 }
  0xbe   :  { %v267_v41 = vmax.f32 %v199_v16, %v263_v15  ;;  %v253_v19 = vadd.f32 %v249_v6, %v229_v17  ;;  %2275 = vset.pattern.permute.xlu1 %v2343_v1  ;;  %808 = vperm.xlu2 %2276, %v2728_v10   ;;  %v2197_v6 = vld [vmem:[%s2661_s12] sm:$0xff]  ;;  %s3065_s12 = sld [smem:[%s3570_s0 + %s2369_s13]]  }
  0xbf   :  { %803 = vperm.xlu1 %2275, %v2736_v18   ;;  %v312_v20 = vpop.permute.xlu1 %311  ;;  %541 = vmatpush.bf16.msrb.mxu1 %v533_v24 }
  0xc0   :  { %417 = vst.msk [vmem:[#allocation2 + $0x8] sm:$0xff] %vm402_vm0, %v267_v41  ;;  %v257_v22 = vmul.f32 %v2630_v58, %v253_v19  ;;  %v317_v16 = vmul.f32 %v312_v20, %v2604_v51  ;;  %v358_v20 = vmul.f32 %v2649_v8, %v2606_v52 }
  0xc1   :  { %v376_v27 = vpop.permute.xlu2 %375 }
  0xc2   :  { %v261_v9 = vadd.f32 %v2641_v63, %v257_v22  ;;  %v331_v22 = vmax.f32 %v327_v11, 0.0 }
  0xc3   :  { %v277_v31 = vpop.permute.xlu0 %276  ;;  %542 = vmatpush.bf16.msrb.mxu1 %v2197_v6 }
  0xc4   :  { %v265_v43 = vmax.f32 %v261_v9, 0.0  ;;  %v294_v49 = vmul.f32 %v277_v31, %v2606_v52  ;;  %v381_v31 = vmul.f32 %v376_v27, %v2604_v51 }
  0xc6   :  { %v269_v55 = vmax.f32 %v201_v42, %v265_v43  ;;  %2277 = vset.pattern.permute.xlu2 %v2342_v0  ;;  %v318_v17 = vadd.f32 %v314_v7, %v294_v49 }
  0xc7   :  { %818 = vperm.xlu1 %2275, %v2439_v12   ;;  %826 = vperm.xlu2 %2277, %v2736_v18  }
  0xc8   :  { %419 = vst.msk [vmem:[#allocation2 + $0x18] sm:$0xff] %vm402_vm0, %v269_v55  ;;  %v346_v59 = vpop.permute.xlu1 %345  ;;  %v322_v9 = vmul.f32 %v2630_v58, %v318_v17  ;;  %v320_v55 = vadd.f32 %v316_v2, %v296_v21 }
  0xc9   :  { %v359_v34 = vmul.f32 %v346_v59, %v2606_v52 }
  0xca   :  { %v625_v3 = vpop.permute.xlu2 %624  ;;  %v326_v8 = vadd.f32 %v2641_v63, %v322_v9 }
  0xcb   :  { %v383_v50 = vadd.f32 %v379_v25, %v359_v34  ;;  %v292_v4 = vpop.permute.xlu0 %291  ;;  %v635_v5 = vmul.f32 %v2768_v56, %v625_v3 }
  0xcc   :  { %v297_v39 = vmul.f32 %v292_v4, %v2606_v52  ;;  %v330_v49 = vmax.f32 %v326_v8, 0.0 }
  0xcd   :  { %v387_v14 = vmul.f32 %v2630_v58, %v383_v50  ;;  %v2788_v15 = vadd.f32 %v656_v61, %v635_v5  ;;  %v324_v61 = vmul.f32 %v2630_v58, %v320_v55 }
  0xce   :  { %v321_v19 = vadd.f32 %v317_v16, %v297_v39 }
  0xcf   :  { %v391_v41 = vadd.f32 %v2641_v63, %v387_v14  ;;  %2278 = vset.pattern.permute.xlu1 %v2342_v0  ;;  %834 = vperm.xlu2 %2277, %v2495_v28   ;;  %v2827_v14 = vld [vmem:[#allocation2 + $0x8] sm:$0xff] }
  0xd0   :  { %830 = vperm.xlu1 %2278, %v2728_v10   ;;  %v325_v35 = vmul.f32 %v2630_v58, %v321_v19 }
  0xd1   :  { %v395_v23 = vmax.f32 %v391_v41, 0.0  ;;  %v364_v26 = vpop.permute.xlu1 %363  ;;  %v2838_v41 = vperm.slane %v2756_v29, 2  ;;  %v2858_v29 = vld [vmem:[#allocation2 + $0x18] sm:$0xff] }
  0xd2   :  { %v378_v36 = vmul.f32 %v364_v26, %v2604_v51  ;;  %v329_v27 = vadd.f32 %v2641_v63, %v325_v35 }
  0xd3   :  { %v399_v42 = vmax.f32 %v331_v22, %v395_v23  ;;  %v356_v43 = vpop.permute.xlu0 %355  ;;  %v2804_v45 = vpop.permute.xlu2 %642 }
  0xd4   :  { %v382_v54 = vadd.f32 %v378_v36, %v358_v20  ;;  %v361_v46 = vmul.f32 %v356_v43, %v2606_v52  ;;  %v333_v6 = vmax.f32 %v329_v27, 0.0  ;;  %v425_v20 = vld [vmem:[#allocation2] sm:$0xff] }
  0xd5   :  { %421 = vst.msk [vmem:[#allocation3 + $0x11] sm:$0xff] %vm402_vm0, %v399_v42 }
  0xd6   :  { %v386_v57 = vmul.f32 %v2630_v58, %v382_v54  ;;  %v385_v25 = vadd.f32 %v381_v31, %v361_v46  ;;  %v433_v46 = vld [vmem:[#allocation2 + $0x10] sm:$0xff] }
  0xd7   :  { %2280 = vset.pattern.permute.xlu2 %v2356_v33 }
  0xd8   :  { %v390_v59 = vadd.f32 %v2641_v63, %v386_v57  ;;  %v389_v24 = vmul.f32 %v2630_v58, %v385_v25  ;;  %2279 = vset.pattern.permute.xlu1 %v2356_v33  ;;  %854 = vperm.xlu2 %2280, %v2728_v10   ;;  %v2883_v57 = vld [vmem:[%s2853_s21] sm:$0x7f]  ;;  %v888_v25 = vld [vmem:[%s2444_s7 + $0x18] sm:$0xff]  ;;  %s2367_s7 = smov 25  }
  0xd9   :  { %850 = vperm.xlu1 %2279, %v2736_v18   ;;  %v372_v34 = vpop.permute.xlu1 %371  ;;  %v328_v18 = vadd.f32 %v2641_v63, %v324_v61  ;;  %v2898_v61 = vld [vmem:[%s2529_s30 + $0x8] sm:$0xff]  ;;  %s2956_s5 = sld [smem:[%s3570_s0 + %s2367_s7]]  }
  0xda   :  { %v394_v3 = vmax.f32 %v390_v59, 0.0  ;;  %v393_v50 = vadd.f32 %v2641_v63, %v389_v24  ;;  %v380_v4 = vmul.f32 %v372_v34, %v2604_v51  ;;  %s3227_s7 = sld [smem:[%s3570_s0 + %s2373_s1]]  }
  0xdb   :  { %v2823_v5 = vpop.permute.xlu0 %614  ;;  %v332_v19 = vmax.f32 %v328_v18, 0.0  ;;  %v2929_v18 = vld [vmem:[%s2563_s11 + $0x10] sm:$0x7f] }
  0xdc   :  { %v398_v7 = vmax.f32 %v330_v49, %v394_v3  ;;  %v397_v39 = vmax.f32 %v393_v50, 0.0  ;;  %v384_v10 = vadd.f32 %v380_v4, %v360_v62  ;;  %v2825_v11 = vpop.permute.xlu2 %663  ;;  %v446_v52 = vld [vmem:[#allocation3 + $0x11] sm:$0xff]  ;;  %v633_v49 = vmul.f32 %v2768_v56, %v2823_v5 }
  0xdd   :  { %v454_v30 = vpack.c.bf16 %v446_v52, %v2827_v14  ;;  %v427_v62 = vld [vmem:[#allocation3 + $0x10] sm:$0xff]  ;;  %v2925_v52 = vld [vmem:[%s2474_s16] ss:$0 sm:$0xff] }
  0xde   :  { %420 = vst.msk [vmem:[#allocation3 + $0x1] sm:$0xff] %vm402_vm0, %v398_v7  ;;  %v401_v16 = vmax.f32 %v333_v6, %v397_v39  ;;  %v388_v51 = vmul.f32 %v2630_v58, %v384_v10  ;;  %v442_v4 = vpack.c.bf16 %v2827_v14, %v427_v62  ;;  %v749_v39 = vmul.f32 %v2573_v44, %v2761_v47 }
  0xdf   :  { %2115 = vmatmul.msk.bf16.vlgmr.msra.gmra.mxu1 %vm402_vm0, %v454_v30 }
  0xe0   :  { %423 = vst.msk [vmem:[#allocation3 + $0x31] sm:$0xff] %vm402_vm0, %v401_v16  ;;  %v392_v17 = vadd.f32 %v2641_v63, %v388_v51  ;;  %862 = vperm.xlu2 %2280, %v2439_v12   ;;  %v2848_v63 = vld [vmem:[%s2512_s25] sm:$0xff] }
  0xe1   :  { %858 = vperm.xlu1 %2279, %v2495_v28   ;;  %1311 = vperm.xlu0 %2299, %v2848_v63  }
  0xe2   :  { %v396_v2 = vmax.f32 %v392_v17, 0.0  ;;  %v2841_v21 = vpop.permute.xlu1 %619  ;;  %v2935_v17 = vld [vmem:[%s2479_s22] ss:$0 sm:$0xff] }
  0xe3   :  { %v2843_v22 = vpop.permute.xlu0 %629 }
  0xe4   :  { %v400_v58 = vmax.f32 %v332_v19, %v396_v2  ;;  %v672_v23 = vpop.permute.xlu2 %671 }
  0xe5   :  { %v681_v26 = vmul.f32 %v2838_v41, %v672_v23  ;;  %v445_v9 = vld [vmem:[#allocation3 + $0x1] sm:$0xff] }
  0xe6   :  { %422 = vst.msk [vmem:[#allocation3 + $0x21] sm:$0xff] %vm402_vm0, %v400_v58  ;;  %v453_v12 = vpack.c.bf16 %v445_v9, %v425_v20 }
  0xe7   :  { %v2856_v28 = vadd.f32 %v681_v26, %v2788_v15  ;;  %v448_v31 = vld [vmem:[#allocation3 + $0x31] sm:$0xff]  ;;  %v424_v15 = vld [vmem:[#allocation3] sm:$0xff] }
  0xe8   :  { %2282 = vset.pattern.permute.xlu2 %v2343_v1  ;;  %2114 = vmatmul.msk.bf16.vlgmr.msra.gmra.mxu0 %vm402_vm0, %v453_v12  ;;  %v456_v36 = vpack.c.bf16 %v448_v31, %v2858_v29  ;;  %v441_v35 = vpack.c.bf16 %v425_v20, %v424_v15  ;;  %v2946_v12 = vld [vmem:[%s2512_s25 + $0x8] sm:$0xff]  ;;  %v2366_v31 = vmov 3  }
  0xe9   :  { %2281 = vset.pattern.permute.xlu1 %v2343_v1  ;;  %901 = vperm.xlu2 %2282, %v2773_v40  }
  0xea   :  { %896 = vperm.xlu1 %2281, %v2450_v13   ;;  %2117 = vmatmul.msk.bf16.vlgmr.msra.gmra.mxu3 %vm402_vm0, %v456_v36 }
  0xeb   :  { %v639_v42 = vpop.permute.xlu1 %638  ;;  %1547 = vperm.xlu0 %2299, %v2883_v57  }
  0xec   :  { %v2878_v43 = vpop.permute.xlu0 %813  ;;  %v654_v3 = vmul.f32 %v2761_v47, %v639_v42  ;;  %v2950_v42 = vld [vmem:[%s2512_s25 + $0x10] sm:$0xff]  ;;  %s2368_s25 = smov 26  }
  0xed   :  { %v2880_v54 = vpop.permute.xlu2 %716  ;;  %v447_v55 = vld [vmem:[#allocation3 + $0x21] sm:$0xff]  ;;  %s2967_s10 = sld [smem:[%s3570_s0 + %s2368_s25]]  }
  0xee   :  { %v455_v8 = vpack.c.bf16 %v447_v55, %v433_v46  ;;  %v658_v7 = vadd.f32 %v654_v3, %v633_v49  ;;  %v431_v51 = vld [vmem:[#allocation3 + $0x20] sm:$0xff]  ;;  %v634_v55 = vmul.f32 %v2768_v56, %v2841_v21  ;;  %v636_v21 = vmul.f32 %v2768_v56, %v2843_v22 }
  0xef   :  { %2122 = vmatmul.msk.bf16.vlgmr.msrb.gmra.mxu1 %vm402_vm0, %v441_v35  ;;  %v443_v23 = vpack.c.bf16 %v433_v46, %v431_v51  ;;  %v655_v46 = vmul.f32 %v2761_v47, %v2804_v45 }
  0xf0   :  { %2116 = vmatmul.msk.bf16.vlgmr.msra.gmra.mxu2 %vm402_vm0, %v455_v8 }
  0xf1   :  { %2283 = vset.pattern.permute.xlu2 %v2342_v0  ;;  %v659_v62 = vadd.f32 %v655_v46, %v634_v55 }
  0xf2   :  { %906 = vperm.xlu1 %2281, %v888_v25   ;;  %914 = vperm.xlu2 %2283, %v2507_v32  }
  0xf3   :  { %v2891_v27 = vpop.permute.xlu1 %650  ;;  %1435 = vperm.xlu0 %2299, %v2898_v61  }
  0xf4   :  { %v2893_v59 = vpop.permute.xlu0 %891  ;;  %v657_v49 = vmul.f32 %v2761_v47, %v2891_v27 }
  0xf5   :  { %v2895_v24 = vpop.permute.xlu2 %726 }
  0xfa   :  { %2285 = vset.pattern.permute.xlu1 %v2342_v0  ;;  %926 = vperm.xlu2 %2283, %v888_v25  }
  0xfb   :  { %922 = vperm.xlu1 %2285, %v2773_v40   ;;  %2307 = vset.pattern.permute.xlu0 %v2342_v0  ;;  %v679_v40 = vmul.f32 %v2838_v41, %v2825_v11 }
  0xfc   :  { %v2903_v34 = vpop.permute.xlu0 %1277  ;;  %1411 = vperm.xlu0 %2307, %v2898_v61  }
  0xfd   :  { %v668_v50 = vpop.permute.xlu1 %667  ;;  %v683_v10 = vadd.f32 %v679_v40, %v658_v7 }
  0xfe   :  { %v2909_v6 = vpop.permute.xlu2 %742  ;;  %v680_v45 = vmul.f32 %v2838_v41, %v668_v50  ;;  %v661_v50 = vadd.f32 %v657_v49, %v636_v21  ;;  %v692_v21 = vmul.f32 %v2925_v52, %v2856_v28 }
  0xff   :  { %2123 = vmatmul.msk.bf16.gmra.mxu1 %vm402_vm0, %v442_v4 }
 0x100   :  { %v684_v4 = vadd.f32 %v680_v45, %v659_v62 }
 0x102   :  { %2287 = vset.pattern.permute.xlu2 %v2356_v33 }
 0x103   :  { %2286 = vset.pattern.permute.xlu1 %v2356_v33  ;;  %942 = vperm.xlu2 %2287, %v2450_v13   ;;  %v690_v13 = vmul.f32 %v2925_v52, %v683_v10  ;;  %v730_v10 = vmul.f32 %v2880_v54, %v2768_v56  ;;  %v732_v54 = vmul.f32 %v2895_v24, %v2768_v56 }
 0x104   :  { %938 = vperm.xlu1 %2286, %v2507_v32   ;;  %v2920_v5 = vpop.permute.xlu0 %1394  ;;  %1643 = vperm.xlu0 %2307, %v2929_v18  }
 0x105   :  { %v697_v2 = vadd.f32 %v2935_v17, %v690_v13 }
 0x106   :  { %v712_v14 = vpop.permute.xlu1 %711 }
 0x107   :  { %v729_v11 = vmul.f32 %v712_v14, %v2768_v56  ;;  %v759_v30 = vpop.permute.xlu2 %758  ;;  %v701_v36 = vmax.f32 %v697_v2, 0.0  ;;  %v691_v14 = vmul.f32 %v2925_v52, %v684_v4 }
 0x108   :  { %v773_v16 = vmul.f32 %v759_v30, %v2838_v41 }
 0x109   :  { %v753_v32 = vadd.f32 %v749_v39, %v729_v11  ;;  %v435_v39 = vld [vmem:[#allocation3 + $0x30] sm:$0xff]  ;;  %v698_v2 = vadd.f32 %v2935_v17, %v691_v14 }
 0x10a   :  { %v444_v27 = vpack.c.bf16 %v2858_v29, %v435_v39 }
 0x10b   :  { %v777_v44 = vadd.f32 %v773_v16, %v753_v32  ;;  %2288 = vset.pattern.permute.xlu2 %v2343_v1 }
 0x10c   :  { %950 = vperm.xlu1 %2286, %v888_v25   ;;  %1262 = vperm.xlu2 %2288, %v2848_v63   ;;  %v2939_v19 = vpop.permute.xlu0 %1612 }
 0x10d   :  { %v781_v58 = vmul.f32 %v2925_v52, %v777_v44  ;;  %2314 = vset.pattern.permute.xlu0 %v2366_v31 }
 0x10e   :  { %v722_v26 = vpop.permute.xlu1 %721  ;;  %1340 = vperm.xlu0 %2314, %v2946_v12  }
 0x10f   :  { %v785_v20 = vadd.f32 %v2935_v17, %v781_v58  ;;  %2124 = vmatmul.msk.bf16.gmra.mxu1 %vm402_vm0, %v443_v23  ;;  %v771_v9 = vpop.permute.xlu2 %770  ;;  %v731_v24 = vmul.f32 %v722_v26, %v2768_v56 }
 0x110   :  { %v776_v32 = vmul.f32 %v771_v9, %v2838_v41  ;;  %v702_v9 = vmax.f32 %v698_v2, 0.0 }
 0x111   :  { %v789_v15 = vmax.f32 %v785_v20, 0.0 }
 0x113   :  { %v793_v35 = vmax.f32 %v701_v36, %v789_v15 }
 0x114   :  { %2289 = vset.pattern.permute.xlu1 %v2343_v1  ;;  %1272 = vperm.xlu2 %2288, %v2950_v42  }
 0x115   :  { %993 = vst.msk [vmem:[#allocation4] sm:$0xff] %vm402_vm0, %v793_v35  ;;  %1267 = vperm.xlu1 %2289, %v2946_v12   ;;  %v676_v8 = vpop.permute.xlu0 %675  ;;  %v751_v35 = vmul.f32 %v2909_v6, %v2761_v47 }
 0x116   :  { %v682_v40 = vmul.f32 %v2838_v41, %v676_v8 }
 0x117   :  { %v739_v25 = vpop.permute.xlu1 %738  ;;  %v755_v6 = vadd.f32 %v751_v35, %v731_v24 }
 0x118   :  { %v2976_v3 = vpop.permute.xlu2 %808  ;;  %v750_v7 = vmul.f32 %v739_v25, %v2761_v47  ;;  %v686_v11 = vadd.f32 %v682_v40, %v661_v50 }
 0x119   :  { %v822_v24 = vmul.f32 %v2976_v3, %v2768_v56  ;;  %v930_v3 = vmul.f32 %v2633_v60, %v2761_v47 }
 0x11a   :  { %v754_v30 = vadd.f32 %v750_v7, %v730_v10  ;;  %v693_v58 = vmul.f32 %v2925_v52, %v686_v11  ;;  %v699_v10 = vadd.f32 %v2935_v17, %v692_v21 }
 0x11c   :  { %2291 = vset.pattern.permute.xlu2 %v2342_v0  ;;  %v700_v46 = vadd.f32 %v2935_v17, %v693_v58 }
 0x11d   :  { %2290 = vset.pattern.permute.xlu1 %v2342_v0  ;;  %v763_v22 = vpop.permute.xlu0 %762  ;;  %1290 = vperm.xlu2 %2291, %v2946_v12  }
 0x11e   :  { %v774_v16 = vmul.f32 %v763_v22, %v2838_v41  ;;  %1286 = vperm.xlu1 %2290, %v2848_v63   ;;  %v704_v4 = vmax.f32 %v700_v46, 0.0 }
 0x11f   :  { %v747_v13 = vpop.permute.xlu1 %746  ;;  %2125 = vmatmul.msk.bf16.gmra.mxu1 %vm402_vm0, %v444_v27  ;;  %v703_v27 = vmax.f32 %v699_v10, 0.0 }
 0x120   :  { %v778_v51 = vadd.f32 %v774_v16, %v754_v30  ;;  %v752_v44 = vmul.f32 %v747_v13, %v2761_v47 }
 0x121   :  { %v827_v29 = vpop.permute.xlu2 %826 }
 0x122   :  { %v782_v23 = vmul.f32 %v2925_v52, %v778_v51  ;;  %v756_v20 = vadd.f32 %v752_v44, %v732_v54  ;;  %v841_v22 = vmul.f32 %v827_v29, %v2761_v47 }
 0x124   :  { %v786_v36 = vadd.f32 %v2935_v17, %v782_v23  ;;  %v780_v15 = vadd.f32 %v776_v32, %v756_v20 }
 0x125   :  { %1298 = vperm.xlu2 %2291, %v2524_v37  }
 0x126   :  { %v790_v55 = vmax.f32 %v786_v36, 0.0  ;;  %v784_v8 = vmul.f32 %v2925_v52, %v780_v15  ;;  %1294 = vperm.xlu1 %2290, %v2950_v42  }
 0x128   :  { %v794_v45 = vmax.f32 %v702_v9, %v790_v55  ;;  %v788_v25 = vadd.f32 %v2935_v17, %v784_v8  ;;  %v767_v62 = vpop.permute.xlu1 %766 }
 0x129   :  { %v775_v26 = vmul.f32 %v767_v62, %v2838_v41  ;;  %v3009_v49 = vpop.permute.xlu2 %834 }
 0x12a   :  { %994 = vst.msk [vmem:[#allocation4 + $0x10] sm:$0xff] %vm402_vm0, %v794_v45  ;;  %v792_v40 = vmax.f32 %v788_v25, 0.0 }
 0x12b   :  { %v779_v7 = vadd.f32 %v775_v26, %v755_v6 }
 0x12c   :  { %v796_v39 = vmax.f32 %v704_v4, %v792_v40  ;;  %v2128_v4 = vld [vmem:[%s3065_s12 + $0x14] sm:$0xf]  ;;  %v1017_v40 = vld [vmem:[%s3065_s12 + $0x8] sm:$0xf] }
 0x12d   :  { %v783_v50 = vmul.f32 %v2925_v52, %v779_v7  ;;  %2293 = vset.pattern.permute.xlu2 %v2356_v33  ;;  %v2147_v7 = vld [vmem:[%s3065_s12 + $0x20] sm:$0xf]  ;;  %v1039_v10 = vunpack.c.l.b16 %v2128_v4 }
 0x12e   :  { %996 = vst.msk [vmem:[#allocation4 + $0x30] sm:$0xff] %vm402_vm0, %v796_v39  ;;  %2292 = vset.pattern.permute.xlu1 %v2356_v33  ;;  %1319 = vperm.xlu2 %2293, %v2950_v42   ;;  %v1157_v60 = vunpack.c.l.b16 %v2147_v7 }
 0x12f   :  { %v787_v28 = vadd.f32 %v2935_v17, %v783_v50  ;;  %1315 = vperm.xlu1 %2292, %v2946_v12   ;;  %v844_v12 = vmul.f32 %v2609_v53, %v2761_v47  ;;  %v3040_v53 = vld [vmem:[%s2529_s30] sm:$0xff]  ;;  %v1092_v50 = vunpack.c.l.b16 %v1017_v40 }
 0x131   :  { %v791_v14 = vmax.f32 %v787_v28, 0.0  ;;  %v804_v11 = vpop.permute.xlu1 %803 }
 0x132   :  { %v821_v30 = vmul.f32 %v804_v11, %v2768_v56  ;;  %v855_v16 = vpop.permute.xlu2 %854 }
 0x133   :  { %v795_v13 = vmax.f32 %v703_v27, %v791_v14  ;;  %v866_v9 = vmul.f32 %v855_v16, %v2838_v41  ;;  %v3086_v27 = vld [vmem:[%s2563_s11 + $0x8] sm:$0x7f]  ;;  %v1041_v14 = vpack.c.b16 %v1039_v10, %v1039_v10  ;;  %v1094_v16 = vpack.c.b16 %v1092_v50, %v1092_v50 }
 0x134   :  { %v3022_v54 = vadd.f32 %v841_v22, %v821_v30  ;;  %1687 = vperm.xlu0 %2314, %v3086_v27  }
 0x135   :  { %995 = vst.msk [vmem:[#allocation4 + $0x20] sm:$0xff] %vm402_vm0, %v795_v13  ;;  %v1159_v13 = vpack.c.b16 %v1157_v60, %v1157_v60  ;;  %v909_v60 = vmul.f32 %v2893_v59, %v2768_v56 }
 0x136   :  { %2294 = vset.pattern.permute.xlu2 %v2366_v31 }
 0x137   :  { %1323 = vperm.xlu1 %2292, %v2524_v37   ;;  %1336 = vperm.xlu2 %2294, %v2848_v63  }
 0x139   :  { %v819_v32 = vpop.permute.xlu1 %818 }
 0x13a   :  { %v824_v51 = vmul.f32 %v819_v32, %v2768_v56  ;;  %v863_v44 = vpop.permute.xlu2 %862  ;;  %v823_v32 = vmul.f32 %v2878_v43, %v2768_v56 }
 0x13b   :  { %v868_v29 = vmul.f32 %v863_v44, %v2838_v41 }
 0x13c   :  { %v848_v2 = vadd.f32 %v844_v12, %v824_v51  ;;  %v1056_v12 = vsel %vm478_vm2, %v1041_v14, 0  ;;  %v843_v51 = vmul.f32 %v3009_v49, %v2761_v47  ;;  %v3134_v14 = vld [vmem:[%s2876_s4] ss:$0 sm:$0xff] }
 0x13d   :  { %1064 = vmatpush.bf16.msrb.mxu2 %v1056_v12 }
 0x13e   :  { %v3032_v58 = vadd.f32 %v868_v29, %v848_v2  ;;  %v1109_v29 = vsel %vm478_vm2, %v1094_v16, 0  ;;  %v1174_v2 = vsel %vm478_vm2, %v1159_v13, 0 }
 0x13f   :  { %2295 = vset.pattern.permute.xlu1 %v2366_v31  ;;  %1348 = vperm.xlu2 %2294, %v2524_v37   ;;  %v3051_v37 = vld [vmem:[%s2529_s30 + $0x18] sm:$0xff] }
 0x140   :  { %1344 = vperm.xlu1 %2295, %v2950_v42   ;;  %1117 = vmatpush.bf16.msrb.mxu3 %v1109_v29 }
 0x141   :  { %1182 = vmatpush.bf16.msrb.mxu0 %v1174_v2 }
 0x142   :  { %v831_v63 = vpop.permute.xlu1 %830 }
 0x143   :  { %v3037_v23 = vpop.permute.xlu2 %901  ;;  %v842_v42 = vmul.f32 %v831_v63, %v2761_v47 }
 0x145   :  { %v846_v46 = vadd.f32 %v842_v42, %v822_v24 }
 0x147   :  { %2297 = vset.pattern.permute.xlu2 %v2343_v1  ;;  %v870_v55 = vadd.f32 %v866_v9, %v846_v46  ;;  %v2200_v9 = vld [vmem:[%s3065_s12 + $0xc] sm:$0xff]  ;;  %v2199_v46 = vld [vmem:[%s3065_s12] sm:$0xff] }
 0x148   :  { %2296 = vset.pattern.permute.xlu1 %v2343_v1  ;;  %1389 = vperm.xlu2 %2297, %v2898_v61  }
 0x149   :  { %1384 = vperm.xlu1 %2296, %v3040_v53   ;;  %v874_v6 = vmul.f32 %v2925_v52, %v870_v55  ;;  %v2201_v55 = vld [vmem:[%s3065_s12 + $0x18] sm:$0xff]  ;;  %1065 = vmatpush.bf16.msrb.mxu2 %v2200_v9  ;;  %v3150_v9 = vld [vmem:[%s2100_s18] sm:$0xf] }
 0x14a   :  { %1118 = vmatpush.bf16.msrb.mxu3 %v2199_v46  ;;  %1183 = vmatpush.bf16.msrb.mxu0 %v2201_v55  ;;  %v3154_v55 = vld [vmem:[%s2853_s21 + $0x8] sm:$0x7f] }
 0x14b   :  { %v3046_v20 = vpop.permute.xlu1 %850  ;;  %v878_v28 = vadd.f32 %v2935_v17, %v874_v6  ;;  %v911_v6 = vmul.f32 %v3037_v23, %v2768_v56 }
 0x14c   :  { %v3048_v36 = vpop.permute.xlu2 %914 }
 0x14d   :  { %v882_v63 = vmax.f32 %v878_v28, 0.0  ;;  %v929_v28 = vmul.f32 %v3048_v36, %v2761_v47 }
 0x150   :  { %2298 = vset.pattern.permute.xlu2 %v2342_v0 }
 0x151   :  { %1399 = vperm.xlu1 %2296, %v3051_v37   ;;  %1407 = vperm.xlu2 %2298, %v3040_v53  }
 0x153   :  { %v859_v15 = vpop.permute.xlu1 %858 }
 0x154   :  { %v3057_v35 = vpop.permute.xlu2 %926  ;;  %v867_v24 = vmul.f32 %v859_v15, %v2838_v41 }
 0x159   :  { %1500 = vperm.xlu1 %2296, %v2883_v57   ;;  %1523 = vperm.xlu2 %2298, %v2883_v57  }
 0x15c   :  { %v897_v8 = vpop.permute.xlu1 %896  ;;  %v3069_v45 = vpop.f32.mrf.mxu1 }
 0x15d   :  { %v910_v25 = vmul.f32 %v897_v8, %v2768_v56  ;;  %v943_v62 = vpop.permute.xlu2 %942  ;;  %v847_v8 = vadd.f32 %v843_v51, %v823_v32  ;;  %v933_v51 = vadd.f32 %v929_v28, %v909_v60 }
 0x15e   :  { %v954_v21 = vmul.f32 %v943_v62, %v2838_v41 }
 0x15f   :  { %v934_v26 = vadd.f32 %v930_v3, %v910_v25  ;;  %v2340_v3 = vld [vmem:[%s2563_s11] sm:$0x7f]  ;;  %v947_v25 = vpop.permute.xlu0 %946  ;;  %v871_v62 = vadd.f32 %v867_v24, %v847_v8 }
 0x160   :  { %v955_v40 = vmul.f32 %v947_v25, %v2838_v41 }
 0x161   :  { %v958_v39 = vadd.f32 %v954_v21, %v934_v26  ;;  %2300 = vset.pattern.permute.xlu1 %v2342_v0  ;;  %2301 = vset.pattern.permute.xlu2 %v2356_v33  ;;  %v865_v26 = vmul.f32 %v3046_v20, %v2838_v41  ;;  %v875_v10 = vmul.f32 %v2925_v52, %v871_v62 }
 0x162   :  { %1635 = vperm.xlu1 %2300, %v2590_v48   ;;  %1431 = vperm.xlu2 %2301, %v3040_v53  }
 0x163   :  { %v962_v22 = vmul.f32 %v2925_v52, %v958_v39  ;;  %v3121_v39 = vld [vmem:[%s2867_s27] ss:$0 sm:$0xff]  ;;  %v869_v23 = vadd.f32 %v865_v26, %v3022_v54  ;;  %v879_v16 = vadd.f32 %v2935_v17, %v875_v10 }
 0x164   :  { %v3088_v11 = vpop.permute.xlu1 %906  ;;  %v3090_v30 = vpop.f32.mrf.mxu1 }
 0x165   :  { %v966_v48 = vadd.f32 %v2935_v17, %v962_v22  ;;  %v491_v49 = vpop.f32.mrf.mxu0  ;;  %v873_v59 = vmul.f32 %v2925_v52, %v869_v23  ;;  %v912_v25 = vmul.f32 %v3088_v11, %v2768_v56 }
 0x166   :  { %v3099_v44 = vpop.permute.xlu2 %1262 }
 0x167   :  { %v970_v42 = vmax.f32 %v966_v48, 0.0  ;;  %v877_v8 = vadd.f32 %v2935_v17, %v873_v59 }
 0x169   :  { %v974_v43 = vmax.f32 %v882_v63, %v970_v42  ;;  %v883_v42 = vmax.f32 %v879_v16, 0.0  ;;  %v881_v10 = vmax.f32 %v877_v8, 0.0 }
 0x16a   :  { %2302 = vset.pattern.permute.xlu1 %v2356_v33  ;;  %2303 = vset.pattern.permute.xlu2 %v2366_v31 }
 0x16b   :  { %998 = vst.msk [vmem:[#allocation5 + $0x11] sm:$0xff] %vm402_vm0, %v974_v43  ;;  %1659 = vperm.xlu1 %2302, %v2340_v3   ;;  %1455 = vperm.xlu2 %2303, %v3040_v53  }
 0x16c   :  { %v544_v15 = vpop.f32.mrf.mxu1 }
 0x16d   :  { %v923_v21 = vpop.permute.xlu1 %922  ;;  %v545_v53 = vadd.f32 %v544_v15, %v491_v49  ;;  %v493_v13 = vpop.f32.mrf.mxu0  ;;  %v932_v49 = vmul.f32 %v3057_v35, %v2761_v47 }
 0x16e   :  { %v931_v4 = vmul.f32 %v923_v21, %v2761_v47  ;;  %v3118_v7 = vpop.permute.xlu2 %1272  ;;  %v3170_v47 = vperm.slane %v3150_v9, 1 }
 0x16f   :  { %v568_v22 = vmul.f32 %v3121_v39, %v545_v53 }
 0x170   :  { %v935_v50 = vadd.f32 %v931_v4, %v911_v6  ;;  %v3164_v6 = vperm.slane %v3150_v9, 0  ;;  %v876_v4 = vmul.f32 %v2925_v52, %v3032_v58 }
 0x171   :  { %v580_v29 = vadd.f32 %v3134_v14, %v568_v22  ;;  %v3184_v22 = vld [vmem:[%s2853_s21 + $0x10] sm:$0x7f] }
 0x172   :  { %v959_v20 = vadd.f32 %v955_v40, %v935_v50  ;;  %v1284_v26 = vmul.f32 %v3164_v6, %v2903_v34  ;;  %v936_v50 = vadd.f32 %v932_v49, %v912_v25  ;;  %1579 = vperm.xlu0 %2314, %v3184_v22   ;;  %v1140_v49 = vld [vmem:[#allocation4 + $0x1] sm:$0xff] }
 0x173   :  { %2304 = vset.pattern.permute.xlu1 %v2366_v31  ;;  %1683 = vperm.xlu2 %2303, %v2340_v3   ;;  %v588_v62 = vmax.f32 %v580_v29, 0.0 }
 0x174   :  { %v963_v48 = vmul.f32 %v2925_v52, %v959_v20  ;;  %1571 = vperm.xlu1 %2304, %v2883_v57   ;;  %v546_v54 = vpop.f32.mrf.mxu1 }
 0x175   :  { %v547_v12 = vadd.f32 %v546_v54, %v493_v13  ;;  %v880_v13 = vadd.f32 %v2935_v17, %v876_v4 }
 0x176   :  { %v967_v36 = vadd.f32 %v2935_v17, %v963_v48  ;;  %v939_v32 = vpop.permute.xlu1 %938 }
 0x177   :  { %v569_v2 = vmul.f32 %v3121_v39, %v547_v12  ;;  %v953_v57 = vmul.f32 %v939_v32, %v2838_v41  ;;  %v1291_v63 = vpop.permute.xlu2 %1290  ;;  %v884_v32 = vmax.f32 %v880_v13, 0.0  ;;  %v1004_v13 = vld [vmem:[#allocation5 + $0x10] sm:$0xff] }
 0x178   :  { %v971_v24 = vmax.f32 %v967_v36, 0.0  ;;  %v1303_v59 = vmul.f32 %v3170_v47, %v1291_v63 }
 0x179   :  { %v581_v46 = vadd.f32 %v3134_v14, %v569_v2  ;;  %v957_v43 = vadd.f32 %v953_v57, %v933_v51 }
 0x17a   :  { %v975_v3 = vmax.f32 %v883_v42, %v971_v24  ;;  %2321 = vset.pattern.permute.xlu0 %v2343_v1 }
 0x17b   :  { %v589_v15 = vmax.f32 %v581_v46, 0.0  ;;  %v961_v21 = vmul.f32 %v2925_v52, %v957_v43  ;;  %2306 = vset.pattern.permute.xlu2 %v2342_v0  ;;  %v501_v46 = vpop.f32.mrf.mxu2 }
 0x17c   :  { %999 = vst.msk [vmem:[#allocation5 + $0x21] sm:$0xff] %vm402_vm0, %v975_v3  ;;  %2305 = vset.pattern.permute.xlu1 %v2343_v1  ;;  %1527 = vperm.xlu2 %2306, %v3154_v55   ;;  %v549_v56 = vpop.f32.mrf.mxu1 }
 0x17d   :  { %v596_v35 = vmax.f32 %v588_v62, %v589_v15  ;;  %v965_v11 = vadd.f32 %v2935_v17, %v961_v21  ;;  %1505 = vperm.xlu1 %2305, %v3154_v55   ;;  %v550_v40 = vadd.f32 %v549_v56, %v3069_v45 }
 0x17e   :  { %v951_v53 = vpop.permute.xlu1 %950 }
 0x17f   :  { %598 = vst.msk [vmem:[%s3146_s23] sm:$0xff] %vm597_vm3, %v596_v35  ;;  %v969_v23 = vmax.f32 %v965_v11, 0.0  ;;  %v956_v20 = vmul.f32 %v951_v53, %v2838_v41  ;;  %v1299_v60 = vpop.permute.xlu2 %1298  ;;  %v570_v58 = vmul.f32 %v3121_v39, %v550_v40 }
 0x180   :  { %v1305_v28 = vmul.f32 %v3170_v47, %v1299_v60 }
 0x181   :  { %v973_v16 = vmax.f32 %v881_v10, %v969_v23  ;;  %v960_v34 = vadd.f32 %v956_v20, %v936_v50  ;;  %v582_v36 = vadd.f32 %v3134_v14, %v570_v58  ;;  %v3232_v10 = vld [vmem:[%s2563_s11 + $0x18] sm:$0x7f]  ;;  %v3237_v50 = vperm.slane %v3150_v9, 2 }
 0x182   :  { %v3188_v45 = vadd.f32 %v1305_v28, %v1284_v26  ;;  %1627 = vperm.xlu0 %2321, %v3232_v10   ;;  %v1283_v28 = vmul.f32 %v3164_v6, %v3118_v7  ;;  %v1023_v58 = vld [vmem:[#allocation5 + $0x11] sm:$0xff] }
 0x183   :  { %997 = vst.msk [vmem:[#allocation5 + $0x1] sm:$0xff] %vm402_vm0, %v973_v16  ;;  %v964_v48 = vmul.f32 %v2925_v52, %v960_v34  ;;  %v503_v4 = vpop.f32.mrf.mxu2  ;;  %v1141_v7 = vld [vmem:[#allocation4 + $0x11] sm:$0xff] }
 0x184   :  { %1639 = vperm.xlu2 %2306, %v3086_v27   ;;  %v551_v41 = vpop.f32.mrf.mxu1 }
 0x185   :  { %v968_v54 = vadd.f32 %v2935_v17, %v964_v48  ;;  %1617 = vperm.xlu1 %2305, %v3086_v27   ;;  %v552_v12 = vadd.f32 %v551_v41, %v3090_v30  ;;  %v1002_v17 = vld [vmem:[#allocation4] sm:$0xff]  ;;  %v590_v30 = vmax.f32 %v582_v36, 0.0  ;;  %v506_v41 = vpop.f32.mrf.mxu3  ;;  %v1006_v36 = vld [vmem:[#allocation4 + $0x10] sm:$0xff] }
 0x187   :  { %v972_v51 = vmax.f32 %v968_v54, 0.0  ;;  %v571_v29 = vmul.f32 %v3121_v39, %v552_v12  ;;  %v1268_v2 = vpop.permute.xlu1 %1267 }
 0x188   :  { %v1282_v52 = vmul.f32 %v3164_v6, %v1268_v2  ;;  %v1320_v57 = vpop.permute.xlu2 %1319  ;;  %v1149_v2 = vpack.c.bf16 %v1141_v7, %v1023_v58 }
 0x189   :  { %v976_v42 = vmax.f32 %v884_v32, %v972_v51  ;;  %v583_v24 = vadd.f32 %v3134_v14, %v571_v29  ;;  %v1329_v16 = vmul.f32 %v3237_v50, %v1320_v57  ;;  %v1031_v32 = vpack.c.bf16 %v1023_v58, %v1006_v36 }
 0x18a   :  { %v3203_v43 = vadd.f32 %v1303_v59, %v1282_v52  ;;  %v1022_v63 = vld [vmem:[#allocation5 + $0x1] sm:$0xff]  ;;  %v1019_v51 = vpack.c.bf16 %v1006_v36, %v1004_v13  ;;  %2325 = vset.pattern.permute.xlu0 %v2366_v31 }
 0x18b   :  { %v1001_v8 = vld [vmem:[#allocation5] sm:$0xff]  ;;  %1000 = vst.msk [vmem:[#allocation5 + $0x31] sm:$0xff] %vm402_vm0, %v976_v42  ;;  %v591_v3 = vmax.f32 %v583_v24, 0.0  ;;  %v1030_v25 = vpack.c.bf16 %v1022_v63, %v1002_v17  ;;  %v1148_v15 = vpack.c.bf16 %v1140_v49, %v1022_v63  ;;  %v2341_v42 = vld [vmem:[%s2529_s30 + $0x10] sm:$0xff]  ;;  %1467 = vperm.xlu0 %2325, %v3051_v37   ;;  %s2374_s30 = smov 27  }
 0x18c   :  { %v1018_v62 = vpack.c.bf16 %v1002_v17, %v1001_v8  ;;  %2309 = vset.pattern.permute.xlu2 %v2356_v33  ;;  %v554_v21 = vpop.f32.mrf.mxu1  ;;  %s3335_s22 = sld [smem:[%s3570_s0 + %s2374_s30]]  }
 0x18d   :  { %v599_v56 = vmax.f32 %v590_v30, %v591_v3  ;;  %2308 = vset.pattern.permute.xlu1 %v2356_v33  ;;  %1663 = vperm.xlu2 %2309, %v3086_v27   ;;  %v555_v35 = vadd.f32 %v554_v21, %v501_v46  ;;  %v508_v63 = vpop.f32.mrf.mxu3 }
 0x18e   :  { %2133 = vmatmul.msk.bf16.vlgmr.msrb.gmra.mxu2 %vm402_vm0, %v1030_v25  ;;  %2141 = vmatmul.msk.bf16.vlgmr.msrb.gmra.mxu3 %vm402_vm0, %v1018_v62 }
 0x18f   :  { %600 = vst.msk [vmem:[%s3146_s23 + $0x18] sm:$0xff] %vm597_vm3, %v599_v56  ;;  %2152 = vmatmul.msk.bf16.vlgmr.msrb.gmra.mxu0 %vm402_vm0, %v1148_v15  ;;  %1551 = vperm.xlu1 %2308, %v3154_v55   ;;  %v572_v26 = vmul.f32 %v3121_v39, %v555_v35  ;;  %v3272_v15 = vperm.slane %v3150_v9, 3  ;;  %v1024_v56 = vld [vmem:[#allocation5 + $0x21] sm:$0xff] }
 0x190   :  { %v3220_v11 = vpop.permute.xlu1 %1286  ;;  %v1008_v35 = vld [vmem:[#allocation5 + $0x20] sm:$0xff] }
 0x191   :  { %v3222_v27 = vpop.permute.xlu2 %1336  ;;  %v584_v23 = vadd.f32 %v3134_v14, %v572_v26  ;;  %v1010_v9 = vld [vmem:[#allocation4 + $0x20] sm:$0xff]  ;;  %v1302_v13 = vmul.f32 %v3170_v47, %v3220_v11  ;;  %v1143_v11 = vld [vmem:[#allocation4 + $0x31] sm:$0xff] }
 0x192   :  { %v1020_v38 = vpack.c.bf16 %v1010_v9, %v1008_v35 }
 0x193   :  { %v592_v54 = vmax.f32 %v584_v23, 0.0 }
 0x194   :  { %v556_v40 = vpop.f32.mrf.mxu1 }
 0x195   :  { %2311 = vset.pattern.permute.xlu2 %v2366_v31  ;;  %v557_v53 = vadd.f32 %v556_v40, %v503_v4 }
 0x196   :  { %1575 = vperm.xlu2 %2311, %v3154_v55  }
 0x197   :  { %v573_v20 = vmul.f32 %v3121_v39, %v557_v53  ;;  %2310 = vset.pattern.permute.xlu1 %v2366_v31 }
 0x198   :  { %1459 = vperm.xlu1 %2310, %v2898_v61   ;;  %v1295_v60 = vpop.permute.xlu1 %1294 }
 0x199   :  { %v585_v55 = vadd.f32 %v3134_v14, %v573_v20  ;;  %v1304_v34 = vmul.f32 %v3170_v47, %v1295_v60  ;;  %v1349_v48 = vpop.permute.xlu2 %1348  ;;  %v1032_v20 = vpack.c.bf16 %v1024_v56, %v1010_v9  ;;  %v1142_v60 = vld [vmem:[#allocation4 + $0x21] sm:$0xff] }
 0x19a   :  { %v1355_v26 = vmul.f32 %v3272_v15, %v1349_v48  ;;  %v1281_v48 = vmul.f32 %v3164_v6, %v3099_v44  ;;  %v1352_v44 = vmul.f32 %v3272_v15, %v3222_v27 }
 0x19b   :  { %v593_v12 = vmax.f32 %v585_v55, 0.0  ;;  %v1308_v59 = vadd.f32 %v1304_v34, %v1283_v28  ;;  %v1150_v28 = vpack.c.bf16 %v1142_v60, %v1024_v56 }
 0x19c   :  { %v559_v61 = vpop.f32.mrf.mxu1 }
 0x19d   :  { %v601_v29 = vmax.f32 %v592_v54, %v593_v12  ;;  %v1333_v52 = vadd.f32 %v1329_v16, %v1308_v59  ;;  %v560_v57 = vadd.f32 %v559_v61, %v506_v41  ;;  %v1312_v41 = vpop.permute.xlu0 %1311  ;;  %v1025_v54 = vld [vmem:[#allocation5 + $0x31] sm:$0xff]  ;;  %v1306_v59 = vadd.f32 %v1302_v13, %v1281_v48 }
 0x19e   :  { %2134 = vmatmul.msk.bf16.gmra.mxu2 %vm402_vm0, %v1031_v32  ;;  %2142 = vmatmul.msk.bf16.gmra.mxu3 %vm402_vm0, %v1019_v51  ;;  %v1012_v12 = vld [vmem:[#allocation5 + $0x30] sm:$0xff] }
 0x19f   :  { %602 = vst.msk [vmem:[%s3146_s23 + $0x30] sm:$0xff] %vm597_vm3, %v601_v29  ;;  %2153 = vmatmul.msk.bf16.gmra.mxu0 %vm402_vm0, %v1149_v2  ;;  %2313 = vset.pattern.permute.xlu2 %v2343_v1  ;;  %v574_v30 = vmul.f32 %v3121_v39, %v560_v57  ;;  %v1014_v61 = vld [vmem:[#allocation4 + $0x30] sm:$0xff]  ;;  %v1151_v29 = vpack.c.bf16 %v1143_v11, %v1025_v54  ;;  %v2204_v11 = vld [vmem:[%s3335_s22 + $0x18] sm:$0xff] }
 0x1a0   :  { %2312 = vset.pattern.permute.xlu1 %v2342_v0  ;;  %1510 = vperm.xlu2 %2313, %v3184_v22   ;;  %v1033_v32 = vpack.c.bf16 %v1025_v54, %v1014_v61  ;;  %v1021_v51 = vpack.c.bf16 %v1014_v61, %v1012_v12 }
 0x1a1   :  { %1415 = vperm.xlu1 %2312, %v2341_v42   ;;  %v1316_v24 = vpop.permute.xlu1 %1315  ;;  %v586_v25 = vadd.f32 %v3134_v14, %v574_v30 }
 0x1a2   :  { %v1328_v17 = vmul.f32 %v3237_v50, %v1316_v24  ;;  %v3259_v46 = vpop.permute.xlu2 %1389 }
 0x1a3   :  { %v594_v4 = vmax.f32 %v586_v25, 0.0 }
 0x1a4   :  { %v3264_v8 = vadd.f32 %v1328_v17, %v3203_v43  ;;  %v561_v49 = vpop.f32.mrf.mxu1 }
 0x1a5   :  { %v562_v3 = vadd.f32 %v561_v49, %v508_v63  ;;  %v3321_v49 = vld [vmem:[%s2967_s10] ss:$0 sm:$0xff]  ;;  %v3328_v56 = vpop.permute.xlu0 %1547 }
 0x1a7   :  { %v575_v62 = vmul.f32 %v3121_v39, %v562_v3 }
 0x1a8   :  { %1622 = vperm.xlu2 %2313, %v2929_v18  }
 0x1a9   :  { %v587_v43 = vadd.f32 %v3134_v14, %v575_v62  ;;  %1531 = vperm.xlu1 %2312, %v3184_v22   ;;  %v1324_v21 = vpop.permute.xlu1 %1323 }
 0x1aa   :  { %v1330_v39 = vmul.f32 %v3237_v50, %v1324_v21  ;;  %v3326_v21 = vld [vmem:[%s2853_s21 + $0x18] sm:$0x7f]  ;;  %s2375_s21 = smov 28  }
 0x1ab   :  { %v595_v40 = vmax.f32 %v587_v43, 0.0  ;;  %v1408_v53 = vpop.permute.xlu2 %1407  ;;  %s3409_s6 = sld [smem:[%s3570_s0 + %s2375_s21]]  }
 0x1ac   :  { %v1334_v23 = vadd.f32 %v1330_v39, %v3188_v45 }
 0x1ad   :  { %v603_v14 = vmax.f32 %v594_v4, %v595_v40 }
 0x1ae   :  { %v3281_v16 = vadd.f32 %v1355_v26, %v1334_v23  ;;  %2135 = vmatmul.msk.bf16.gmra.mxu2 %vm402_vm0, %v1032_v20  ;;  %2143 = vmatmul.msk.bf16.gmra.mxu3 %vm402_vm0, %v1020_v38  ;;  %v2158_v23 = vld [vmem:[%s3335_s22 + $0x14] sm:$0xf]  ;;  %v1764_v20 = vld [vmem:[%s3335_s22 + $0x8] sm:$0xf]  ;;  %v3344_v38 = vpop.permute.xlu0 %1435 }
 0x1af   :  { %604 = vst.msk [vmem:[%s3146_s23 + $0x48] sm:$0xff] %vm597_vm3, %v603_v14  ;;  %2154 = vmatmul.msk.bf16.gmra.mxu0 %vm402_vm0, %v1150_v28  ;;  %v1839_v60 = vunpack.c.l.b16 %v1764_v20  ;;  %v2177_v14 = vld [vmem:[%s3335_s22 + $0x20] sm:$0xf]  ;;  %v2188_v28 = vld [vmem:[%s3335_s22 + $0x2c] sm:$0xf] }
 0x1b0   :  { %2316 = vset.pattern.permute.xlu2 %v2356_v33  ;;  %v1977_v13 = vunpack.c.l.b16 %v2188_v28 }
 0x1b1   :  { %2315 = vset.pattern.permute.xlu1 %v2356_v33  ;;  %1555 = vperm.xlu2 %2316, %v3184_v22   ;;  %v1327_v22 = vmul.f32 %v3237_v50, %v1312_v41  ;;  %v1841_v41 = vpack.c.b16 %v1839_v60, %v1839_v60 }
 0x1b2   :  { %1439 = vperm.xlu1 %2315, %v2341_v42   ;;  %v1345_v45 = vpop.permute.xlu1 %1344 }
 0x1b3   :  { %v1354_v55 = vmul.f32 %v3272_v15, %v1345_v45  ;;  %v3292_v34 = vpop.permute.xlu2 %1523  ;;  %v1331_v2 = vadd.f32 %v1327_v22, %v1306_v59  ;;  %v1979_v22 = vpack.c.b16 %v1977_v13, %v1977_v13 }
 0x1b5   :  { %v3294_v58 = vadd.f32 %v1354_v55, %v1333_v52  ;;  %v1422_v52 = vmul.f32 %v1408_v53, %v3170_v47  ;;  %v1356_v24 = vadd.f32 %v1352_v44, %v1331_v2  ;;  %v1904_v55 = vunpack.c.l.b16 %v2177_v14 }
 0x1b6   :  { %v1630_v44 = vmul.f32 %v2939_v19, %v3164_v6 }
 0x1b7   :  { %v1906_v12 = vpack.c.b16 %v1904_v55, %v1904_v55 }
 0x1b9   :  { %2317 = vset.pattern.permute.xlu2 %v2366_v31 }
 0x1ba   :  { %1667 = vperm.xlu1 %2315, %v2929_v18   ;;  %1463 = vperm.xlu2 %2317, %v2341_v42   ;;  %v3311_v42 = vld [vmem:[%s2956_s5] ss:$0 sm:$0xff] }
 0x1bb   :  { %v1385_v36 = vpop.permute.xlu1 %1384  ;;  %v1363_v3 = vmul.f32 %v3311_v42, %v1356_v24 }
 0x1bc   :  { %v1432_v7 = vpop.permute.xlu2 %1431  ;;  %v1402_v57 = vmul.f32 %v1385_v36, %v3164_v6  ;;  %v1994_v36 = vsel %vm478_vm2, %v1979_v22, 0 }
 0x1bd   :  { %v1446_v27 = vmul.f32 %v1432_v7, %v3237_v50  ;;  %v1370_v35 = vadd.f32 %v3321_v49, %v1363_v3  ;;  %2002 = vmatpush.bf16.msra.mxu0 %v1994_v36  ;;  %v2205_v7 = vld [vmem:[%s3335_s22 + $0x24] sm:$0xff] }
 0x1be   :  { %2136 = vmatmul.msk.bf16.gmra.mxu2 %vm402_vm0, %v1033_v32  ;;  %2144 = vmatmul.msk.bf16.gmra.mxu3 %vm402_vm0, %v1021_v51  ;;  %v1426_v17 = vadd.f32 %v1422_v52, %v1402_v57  ;;  %v2203_v32 = vld [vmem:[%s3335_s22 + $0xc] sm:$0xff]  ;;  %v2202_v51 = vld [vmem:[%s3335_s22] sm:$0xff] }
 0x1bf   :  { %2155 = vmatmul.msk.bf16.gmra.mxu0 %vm402_vm0, %v1151_v29  ;;  %v1374_v40 = vmax.f32 %v1370_v35, 0.0  ;;  %v3366_v29 = vpop.permute.xlu0 %1411 }
 0x1c0   :  { %v1450_v25 = vadd.f32 %v1446_v27, %v1426_v17 }
 0x1c1   :  { %2003 = vmatpush.bf16.msra.mxu0 %v2205_v7 }
 0x1c2   :  { %2318 = vset.pattern.permute.xlu1 %v2366_v31  ;;  %2319 = vset.pattern.permute.xlu2 %v2342_v0 }
 0x1c3   :  { %1691 = vperm.xlu1 %2318, %v2929_v18   ;;  %1419 = vperm.xlu2 %2319, %v3051_v37   ;;  %v3318_v30 = vpop.permute.xlu1 %1399 }
 0x1c5   :  { %v1456_v63 = vpop.permute.xlu2 %1455 }
 0x1c6   :  { %v1470_v62 = vmul.f32 %v1456_v63, %v3272_v15  ;;  %v1538_v63 = vmul.f32 %v3292_v34, %v3170_v47 }
 0x1c8   :  { %v1474_v43 = vadd.f32 %v1470_v62, %v1450_v25 }
 0x1ca   :  { %v1478_v18 = vmul.f32 %v3311_v42, %v1474_v43  ;;  %v3380_v43 = vpop.permute.xlu0 %1643 }
 0x1cb   :  { %2320 = vset.pattern.permute.xlu1 %v2343_v1  ;;  %1535 = vperm.xlu2 %2319, %v3326_v21   ;;  %v1501_v26 = vpop.permute.xlu1 %1500  ;;  %v1786_v1 = vunpack.c.l.b16 %v2158_v23 }
 0x1cc   :  { %v1482_v39 = vadd.f32 %v3321_v49, %v1478_v18  ;;  %1515 = vperm.xlu1 %2320, %v3326_v21   ;;  %v1518_v17 = vmul.f32 %v1501_v26, %v3164_v6 }
 0x1cd   :  { %v1684_v4 = vpop.permute.xlu2 %1683  ;;  %v1788_v48 = vpack.c.b16 %v1786_v1, %v1786_v1 }
 0x1ce   :  { %v1486_v9 = vmax.f32 %v1482_v39, 0.0  ;;  %v1698_v19 = vmul.f32 %v1684_v4, %v3272_v15  ;;  %v1542_v3 = vadd.f32 %v1538_v63, %v1518_v17 }
 0x1cf   :  { %v1803_v59 = vsel %vm478_vm2, %v1788_v48, 0 }
 0x1d0   :  { %v1490_v53 = vmax.f32 %v1374_v40, %v1486_v9  ;;  %1811 = vmatpush.bf16.msra.mxu1 %v1803_v59 }
 0x1d2   :  { %1739 = vst.msk [vmem:[#allocation6 + $0x1] sm:$0xff] %vm402_vm0, %v1490_v53  ;;  %v1341_v23 = vpop.permute.xlu0 %1340 }
 0x1d3   :  { %2323 = vset.pattern.permute.xlu2 %v2356_v33  ;;  %v1353_v17 = vmul.f32 %v3272_v15, %v1341_v23 }
 0x1d4   :  { %2322 = vset.pattern.permute.xlu1 %v2342_v0  ;;  %1443 = vperm.xlu2 %2323, %v3051_v37   ;;  %v1636_v45 = vpop.permute.xlu1 %1635  ;;  %v1856_v0 = vsel %vm478_vm2, %v1841_v41, 0  ;;  %v1921_v37 = vsel %vm478_vm2, %v1906_v12, 0 }
 0x1d5   :  { %1647 = vperm.xlu1 %2322, %v3232_v10   ;;  %1864 = vmatpush.bf16.msra.mxu2 %v1856_v0  ;;  %v1650_v61 = vmul.f32 %v1636_v45, %v3170_v47 }
 0x1d6   :  { %v3352_v54 = vpop.permute.xlu2 %1527  ;;  %1929 = vmatpush.bf16.msra.mxu3 %v1921_v37  ;;  %1812 = vmatpush.bf16.msra.mxu1 %v2203_v32 }
 0x1d7   :  { %v1654_v52 = vadd.f32 %v1650_v61, %v1630_v44 }
 0x1d9   :  { %1865 = vmatpush.bf16.msra.mxu2 %v2202_v51  ;;  %v1769_v45 = vld [vmem:[#allocation6 + $0x1] sm:$0xff]  ;;  %v1539_v51 = vmul.f32 %v3352_v54, %v3170_v47  ;;  %v1423_v54 = vmul.f32 %v3366_v29, %v3170_v47  ;;  %v1357_v29 = vadd.f32 %v1353_v17, %v3264_v8 }
 0x1da   :  { %1930 = vmatpush.bf16.msra.mxu3 %v2204_v11  ;;  %v1688_v28 = vpop.permute.xlu0 %1687  ;;  %v1748_v41 = vld [vmem:[#allocation6] sm:$0xff] }
 0x1db   :  { %v1960_v37 = vld [vmem:[#allocation6 + $0x2] sm:$0xff]  ;;  %v1699_v61 = vmul.f32 %v1688_v28, %v3272_v15 }
 0x1dc   :  { %1671 = vperm.xlu2 %2323, %v3232_v10  }
 0x1dd   :  { %2324 = vset.pattern.permute.xlu1 %v2356_v33  ;;  %v1660_v2 = vpop.permute.xlu1 %1659  ;;  %v1562_v33 = vmul.f32 %v3328_v56, %v3237_v50 }
 0x1de   :  { %1559 = vperm.xlu1 %2324, %v3326_v21   ;;  %v1674_v57 = vmul.f32 %v1660_v2, %v3237_v50  ;;  %v1640_v24 = vpop.permute.xlu2 %1639 }
 0x1df   :  { %v1566_v18 = vadd.f32 %v1562_v33, %v1542_v3  ;;  %v1651_v1 = vmul.f32 %v1640_v24, %v3170_v47  ;;  %v1447_v3 = vmul.f32 %v3344_v38, %v3237_v50 }
 0x1e0   :  { %v1678_v27 = vadd.f32 %v1674_v57, %v1654_v52 }
 0x1e2   :  { %v1702_v25 = vadd.f32 %v1698_v19, %v1678_v27  ;;  %v1403_v19 = vmul.f32 %v3259_v46, %v3164_v6 }
 0x1e4   :  { %2327 = vset.pattern.permute.xlu2 %v2366_v31  ;;  %v1706_v35 = vmul.f32 %v3311_v42, %v1702_v25  ;;  %v1427_v25 = vadd.f32 %v1423_v54, %v1403_v19 }
 0x1e5   :  { %1695 = vperm.xlu2 %2327, %v3232_v10  }
 0x1e6   :  { %2326 = vset.pattern.permute.xlu1 %v2366_v31  ;;  %v1572_v62 = vpop.permute.xlu1 %1571  ;;  %v1710_v39 = vadd.f32 %v3321_v49, %v1706_v35 }
 0x1e7   :  { %1583 = vperm.xlu1 %2326, %v3326_v21   ;;  %v1586_v34 = vmul.f32 %v1572_v62, %v3272_v15  ;;  %v1664_v26 = vpop.permute.xlu2 %1663 }
 0x1e8   :  { %v1714_v40 = vmax.f32 %v1710_v39, 0.0  ;;  %v1675_v60 = vmul.f32 %v1664_v26, %v3237_v50  ;;  %v1451_v26 = vadd.f32 %v1447_v3, %v1427_v25 }
 0x1e9   :  { %v1590_v56 = vadd.f32 %v1586_v34, %v1566_v18  ;;  %v1364_v34 = vmul.f32 %v3311_v42, %v1357_v29 }
 0x1eb   :  { %v1594_v4 = vmul.f32 %v3311_v42, %v1590_v56 }
 0x1ed   :  { %v1598_v10 = vadd.f32 %v3321_v49, %v1594_v4 }
 0x1ef   :  { %v1602_v31 = vmax.f32 %v1598_v10, 0.0  ;;  %v1506_v9 = vpop.permute.xlu1 %1505 }
 0x1f0   :  { %v1576_v53 = vpop.permute.xlu2 %1575  ;;  %v1519_v11 = vmul.f32 %v1506_v9, %v3164_v6 }
 0x1f1   :  { %v1718_v20 = vmax.f32 %v1602_v31, %v1714_v40  ;;  %v1587_v52 = vmul.f32 %v1576_v53, %v3272_v15  ;;  %v1371_v31 = vadd.f32 %v3321_v49, %v1364_v34 }
 0x1f2   :  { %v1543_v2 = vadd.f32 %v1539_v51, %v1519_v11 }
 0x1f3   :  { %1744 = vst.msk [vmem:[#allocation7 + $0x1] sm:$0x7f] %vm1743_vm5, %v1718_v20 }
 0x1f7   :  { %v1618_v21 = vpop.permute.xlu1 %1617 }
 0x1f8   :  { %v1631_v14 = vmul.f32 %v1618_v21, %v3164_v6 }
 0x1fa   :  { %v1655_v55 = vadd.f32 %v1651_v1, %v1631_v14  ;;  %v3392_v13 = vpop.permute.xlu2 %1510  ;;  %v1749_v48 = vld [vmem:[#allocation7] sm:$0xff]  ;;  %v1375_v1 = vmax.f32 %v1371_v31, 0.0 }
 0x1fb   :  { %v1887_v12 = vld [vmem:[#allocation7 + $0x1] sm:$0xff]  ;;  %v1777_v22 = vpack.c.bf16 %v1769_v45, %v1749_v48  ;;  %v1765_v59 = vpack.c.bf16 %v1749_v48, %v1748_v41  ;;  %v3437_v41 = vld [vmem:[%s3218_s28] ss:$0 sm:$0xff] }
 0x1fc   :  { %v1895_v0 = vpack.c.bf16 %v1887_v12, %v1769_v45  ;;  %v1679_v36 = vadd.f32 %v1675_v60, %v1655_v55  ;;  %v1968_v32 = vpack.c.bf16 %v1960_v37, %v1887_v12  ;;  %v3439_v12 = vpop.permute.xlu0 %1579  ;;  %v3444_v37 = vld [vmem:[%s3227_s7] ss:$0 sm:$0xff] }
 0x1fd   :  { %2163 = vmatmul.msk.bf16.vlgmr.msra.gmra.mxu1 %vm402_vm0, %v1777_v22  ;;  %2171 = vmatmul.msk.bf16.vlgmr.msra.gmra.mxu2 %vm402_vm0, %v1765_v59 }
 0x1fe   :  { %2182 = vmatmul.msk.bf16.vlgmr.msra.gmra.mxu3 %vm402_vm0, %v1895_v0  ;;  %2193 = vmatmul.msk.bf16.vlgmr.msra.gmra.mxu0 %vm402_vm0, %v1968_v32  ;;  %v1703_v7 = vadd.f32 %v1699_v61, %v1679_v36 }
 0x200   :  { %v1707_v27 = vmul.f32 %v3311_v42, %v1703_v7 }
 0x201   :  { %v1552_v44 = vpop.permute.xlu1 %1551 }
 0x202   :  { %v1563_v57 = vmul.f32 %v1552_v44, %v3237_v50  ;;  %v3404_v24 = vpop.permute.xlu2 %1622  ;;  %v1711_v62 = vadd.f32 %v3321_v49, %v1707_v27 }
 0x204   :  { %v1567_v63 = vadd.f32 %v1563_v57, %v1543_v2  ;;  %v1715_v4 = vmax.f32 %v1711_v62, 0.0  ;;  %v3449_v29 = vpop.permute.xlu0 %1627 }
 0x206   :  { %v1591_v33 = vadd.f32 %v1587_v52, %v1567_v63 }
 0x208   :  { %v1595_v46 = vmul.f32 %v3311_v42, %v1591_v33 }
 0x20a   :  { %v1599_v35 = vadd.f32 %v3321_v49, %v1595_v46  ;;  %v1460_v18 = vpop.permute.xlu1 %1459 }
 0x20b   :  { %v1471_v56 = vmul.f32 %v1460_v18, %v3272_v15  ;;  %v3430_v39 = vpop.permute.xlu2 %1555 }
 0x20c   :  { %v1603_v10 = vmax.f32 %v1599_v35, 0.0  ;;  %v1185_v38 = vpop.f32.mrf.mxu0 }
 0x20d   :  { %v1475_v40 = vadd.f32 %v1471_v56, %v1451_v26  ;;  %v1404_v26 = vmul.f32 %v2920_v5, %v3164_v6  ;;  %v1520_v5 = vmul.f32 %v3392_v13, %v3164_v6 }
 0x20e   :  { %v1719_v8 = vmax.f32 %v1603_v10, %v1715_v4 }
 0x20f   :  { %v1479_v9 = vmul.f32 %v3311_v42, %v1475_v40 }
 0x210   :  { %1745 = vst.msk [vmem:[#allocation7 + $0x11] sm:$0x7f] %vm1743_vm5, %v1719_v8 }
 0x211   :  { %v1483_v53 = vadd.f32 %v3321_v49, %v1479_v9  ;;  %v1067_v23 = vpop.f32.mrf.mxu2  ;;  %v1120_v20 = vpop.f32.mrf.mxu3 }
 0x212   :  { %v1121_v21 = vadd.f32 %v1120_v20, %v1067_v23 }
 0x213   :  { %v1487_v60 = vmax.f32 %v1483_v53, 0.0  ;;  %v1416_v14 = vpop.permute.xlu1 %1415  ;;  %v1365_v53 = vmul.f32 %v3311_v42, %v3294_v58 }
 0x214   :  { %v1187_v28 = vpop.f32.mrf.mxu0  ;;  %v1464_v45 = vpop.permute.xlu2 %1463  ;;  %v1205_v48 = vadd.f32 %v1185_v38, %v1121_v21  ;;  %v1424_v25 = vmul.f32 %v1416_v14, %v3170_v47  ;;  %v1564_v21 = vmul.f32 %v3430_v39, %v3237_v50  ;;  %v1405_v39 = vmul.f32 %v3318_v30, %v3164_v6 }
 0x215   :  { %v1491_v55 = vmax.f32 %v1375_v1, %v1487_v60  ;;  %v1472_v40 = vmul.f32 %v1464_v45, %v3272_v15  ;;  %v1372_v45 = vadd.f32 %v3321_v49, %v1365_v53  ;;  %v1652_v30 = vmul.f32 %v3380_v43, %v3170_v47 }
 0x216   :  { %v1217_v0 = vmul.f32 %v3437_v41, %v1205_v48  ;;  %v1428_v38 = vadd.f32 %v1424_v25, %v1404_v26 }
 0x217   :  { %1740 = vst.msk [vmem:[#allocation6 + $0x11] sm:$0xff] %vm402_vm0, %v1491_v55  ;;  %v1753_v7 = vld [vmem:[#allocation7 + $0x10] sm:$0xff] }
 0x218   :  { %v1888_v44 = vld [vmem:[#allocation7 + $0x11] sm:$0xff]  ;;  %v1229_v2 = vadd.f32 %v3444_v37, %v1217_v0 }
 0x219   :  { %v1069_v22 = vpop.f32.mrf.mxu2  ;;  %v1122_v59 = vpop.f32.mrf.mxu3 }
 0x21a   :  { %v1123_v36 = vadd.f32 %v1122_v59, %v1069_v22  ;;  %v1237_v35 = vmax.f32 %v1229_v2, 0.0  ;;  %v1468_v59 = vpop.permute.xlu0 %1467 }
 0x21b   :  { %v1532_v61 = vpop.permute.xlu1 %1531 }
 0x21c   :  { %v1206_v32 = vadd.f32 %v1187_v28, %v1123_v36  ;;  %v1190_v51 = vpop.f32.mrf.mxu0  ;;  %v1540_v8 = vmul.f32 %v1532_v61, %v3170_v47 }
 0x21d   :  { %v1420_v11 = vpop.permute.xlu2 %1419 }
 0x21e   :  { %v1218_v52 = vmul.f32 %v3437_v41, %v1206_v32  ;;  %v1770_v57 = vld [vmem:[#allocation6 + $0x11] sm:$0xff]  ;;  %v1544_v1 = vadd.f32 %v1540_v8, %v1520_v5  ;;  %v1425_v58 = vmul.f32 %v1420_v11, %v3170_v47  ;;  %v1588_v32 = vmul.f32 %v3439_v12, %v3272_v15 }
 0x21f   :  { %v1751_v54 = vld [vmem:[#allocation6 + $0x10] sm:$0xff]  ;;  %v1778_v19 = vpack.c.bf16 %v1770_v57, %v1753_v7  ;;  %v1896_v63 = vpack.c.bf16 %v1888_v44, %v1770_v57  ;;  %v1632_v12 = vmul.f32 %v3404_v24, %v3164_v6 }
 0x220   :  { %v1961_v17 = vld [vmem:[#allocation6 + $0x12] sm:$0xff]  ;;  %v1766_v27 = vpack.c.bf16 %v1753_v7, %v1751_v54  ;;  %v1230_v3 = vadd.f32 %v3444_v37, %v1218_v52  ;;  %v1568_v61 = vadd.f32 %v1564_v21, %v1544_v1  ;;  %v1376_v7 = vmax.f32 %v1372_v45, 0.0 }
 0x221   :  { %v1969_v33 = vpack.c.bf16 %v1961_v17, %v1888_v44  ;;  %v1072_v62 = vpop.f32.mrf.mxu2  ;;  %v1125_v46 = vpop.f32.mrf.mxu3  ;;  %2164 = vmatmul.msk.bf16.gmra.mxu1 %vm402_vm0, %v1778_v19  ;;  %2183 = vmatmul.msk.bf16.gmra.mxu3 %vm402_vm0, %v1896_v63  ;;  %v1429_v52 = vadd.f32 %v1425_v58, %v1405_v39  ;;  %v1473_v17 = vmul.f32 %v1468_v59, %v3272_v15 }
 0x222   :  { %2172 = vmatmul.msk.bf16.gmra.mxu2 %vm402_vm0, %v1766_v27  ;;  %v1238_v18 = vmax.f32 %v1230_v3, 0.0  ;;  %v1126_v34 = vadd.f32 %v1125_v46, %v1072_v62  ;;  %v1366_v27 = vmul.f32 %v3311_v42, %v3281_v16  ;;  %v1592_v63 = vadd.f32 %v1588_v32, %v1568_v61 }
 0x223   :  { %2194 = vmatmul.msk.bf16.gmra.mxu0 %vm402_vm0, %v1969_v33  ;;  %v1656_v24 = vadd.f32 %v1652_v30, %v1632_v12  ;;  %v1633_v30 = vmul.f32 %v3449_v29, %v3164_v6 }
 0x224   :  { %v1245_v56 = vmax.f32 %v1237_v35, %v1238_v18  ;;  %v1192_v4 = vpop.f32.mrf.mxu0  ;;  %v1440_v10 = vpop.permute.xlu1 %1439  ;;  %v1207_v23 = vadd.f32 %v1190_v51, %v1126_v34 }
 0x225   :  { %v1448_v31 = vmul.f32 %v1440_v10, %v3237_v50  ;;  %v3461_v9 = vpop.permute.xlu2 %1535  ;;  %v1596_v10 = vmul.f32 %v3311_v42, %v1592_v63 }
 0x226   :  { %1246 = vst.msk [vmem:[%s3146_s23 + $0x8] sm:$0xff] %vm597_vm3, %v1245_v56  ;;  %v1219_v55 = vmul.f32 %v3437_v41, %v1207_v23  ;;  %v1373_v56 = vadd.f32 %v3321_v49, %v1366_v27 }
 0x227   :  { %v1452_v20 = vadd.f32 %v1448_v31, %v1428_v38 }
 0x228   :  { %v1231_v44 = vadd.f32 %v3444_v37, %v1219_v55  ;;  %v1377_v5 = vmax.f32 %v1373_v56, 0.0 }
 0x229   :  { %v1476_v60 = vadd.f32 %v1472_v40, %v1452_v20  ;;  %v1074_v14 = vpop.f32.mrf.mxu2  ;;  %v1127_v28 = vpop.f32.mrf.mxu3 }
 0x22a   :  { %v1128_v48 = vadd.f32 %v1127_v28, %v1074_v14  ;;  %v1239_v46 = vmax.f32 %v1231_v44, 0.0 }
 0x22b   :  { %v1480_v22 = vmul.f32 %v3311_v42, %v1476_v60  ;;  %v1600_v60 = vadd.f32 %v3321_v49, %v1596_v10 }
 0x22c   :  { %v1208_v0 = vadd.f32 %v1192_v4, %v1128_v48  ;;  %v1195_v13 = vpop.f32.mrf.mxu0  ;;  %v1668_v36 = vpop.permute.xlu1 %1667 }
 0x22d   :  { %v1484_v51 = vadd.f32 %v3321_v49, %v1480_v22  ;;  %v1676_v18 = vmul.f32 %v1668_v36, %v3237_v50  ;;  %v1604_v22 = vmax.f32 %v1600_v60, 0.0 }
 0x22e   :  { %v1220_v11 = vmul.f32 %v3437_v41, %v1208_v0  ;;  %v1444_v2 = vpop.permute.xlu2 %1443 }
 0x22f   :  { %v1488_v57 = vmax.f32 %v1484_v51, 0.0  ;;  %v1449_v54 = vmul.f32 %v1444_v2, %v3237_v50  ;;  %v1680_v38 = vadd.f32 %v1676_v18, %v1656_v24 }
 0x230   :  { %v1232_v19 = vadd.f32 %v3444_v37, %v1220_v11 }
 0x231   :  { %v1492_v33 = vmax.f32 %v1376_v7, %v1488_v57  ;;  %v1453_v3 = vadd.f32 %v1449_v54, %v1429_v52  ;;  %v1077_v25 = vpop.f32.mrf.mxu2  ;;  %v1130_v62 = vpop.f32.mrf.mxu3 }
 0x232   :  { %v1240_v35 = vmax.f32 %v1232_v19, 0.0  ;;  %v1131_v34 = vadd.f32 %v1130_v62, %v1077_v25 }
 0x233   :  { %1741 = vst.msk [vmem:[#allocation6 + $0x21] sm:$0xff] %vm402_vm0, %v1492_v33  ;;  %v1477_v43 = vadd.f32 %v1473_v17, %v1453_v3 }
 0x234   :  { %v1247_v26 = vmax.f32 %v1239_v46, %v1240_v35  ;;  %v1209_v40 = vadd.f32 %v1195_v13, %v1131_v34  ;;  %v1197_v8 = vpop.f32.mrf.mxu0 }
 0x235   :  { %v1481_v16 = vmul.f32 %v3311_v42, %v1477_v43  ;;  %v1692_v4 = vpop.permute.xlu1 %1691 }
 0x236   :  { %1248 = vst.msk [vmem:[%s3146_s23 + $0x20] sm:$0xff] %vm597_vm3, %v1247_v26  ;;  %v1700_v31 = vmul.f32 %v1692_v4, %v3272_v15  ;;  %v1221_v14 = vmul.f32 %v3437_v41, %v1209_v40  ;;  %v1672_v57 = vpop.permute.xlu2 %1671 }
 0x237   :  { %v1485_v53 = vadd.f32 %v3321_v49, %v1481_v16  ;;  %v1677_v16 = vmul.f32 %v1672_v57, %v3237_v50  ;;  %v3541_v57 = vld [vmem:[%s3409_s6] ss:$0 sm:$0xff] }
 0x238   :  { %v1704_v23 = vadd.f32 %v1700_v31, %v1680_v38  ;;  %v1233_v59 = vadd.f32 %v3444_v37, %v1221_v14 }
 0x239   :  { %v1489_v20 = vmax.f32 %v1485_v53, 0.0  ;;  %v1079_v21 = vpop.f32.mrf.mxu2  ;;  %v1132_v1 = vpop.f32.mrf.mxu3 }
 0x23a   :  { %v1708_v28 = vmul.f32 %v3311_v42, %v1704_v23  ;;  %v1133_v45 = vadd.f32 %v1132_v1, %v1079_v21  ;;  %v1241_v44 = vmax.f32 %v1233_v59, 0.0  ;;  %v1771_v63 = vld [vmem:[#allocation6 + $0x21] sm:$0xff]  ;;  %v1541_v1 = vmul.f32 %v3461_v9, %v3170_v47 }
 0x23b   :  { %v1493_v55 = vmax.f32 %v1377_v5, %v1489_v20  ;;  %v1755_v35 = vld [vmem:[#allocation6 + $0x20] sm:$0xff] }
 0x23c   :  { %v1712_v48 = vadd.f32 %v3321_v49, %v1708_v28  ;;  %v1210_v58 = vadd.f32 %v1197_v8, %v1133_v45  ;;  %v1200_v32 = vpop.f32.mrf.mxu0  ;;  %v1962_v18 = vld [vmem:[#allocation6 + $0x22] sm:$0xff] }
 0x23d   :  { %1742 = vst.msk [vmem:[#allocation6 + $0x31] sm:$0xff] %vm402_vm0, %v1493_v55 }
 0x23e   :  { %v1716_v0 = vmax.f32 %v1712_v48, 0.0  ;;  %v1222_v13 = vmul.f32 %v3437_v41, %v1210_v58  ;;  %v1516_v36 = vpop.permute.xlu1 %1515 }
 0x23f   :  { %v1696_v38 = vpop.permute.xlu2 %1695  ;;  %v1521_v20 = vmul.f32 %v1516_v36, %v3164_v6 }
 0x240   :  { %v1720_v39 = vmax.f32 %v1604_v22, %v1716_v0  ;;  %v1234_v61 = vadd.f32 %v3444_v37, %v1222_v13  ;;  %v1701_v5 = vmul.f32 %v1696_v38, %v3272_v15 }
 0x241   :  { %v1082_v51 = vpop.f32.mrf.mxu2  ;;  %v1135_v7 = vpop.f32.mrf.mxu3  ;;  %v1545_v14 = vadd.f32 %v1541_v1, %v1521_v20 }
 0x242   :  { %1746 = vst.msk [vmem:[#allocation7 + $0x21] sm:$0x7f] %vm1743_vm5, %v1720_v39  ;;  %v1242_v11 = vmax.f32 %v1234_v61, 0.0  ;;  %v1136_v2 = vadd.f32 %v1135_v7, %v1082_v51 }
 0x244   :  { %v1249_v52 = vmax.f32 %v1241_v44, %v1242_v11  ;;  %v1211_v54 = vadd.f32 %v1200_v32, %v1136_v2  ;;  %v1202_v34 = vpop.f32.mrf.mxu0  ;;  %v1759_v0 = vld [vmem:[#allocation6 + $0x30] sm:$0xff] }
 0x245   :  { %v1963_v39 = vld [vmem:[#allocation6 + $0x32] sm:$0xff] }
 0x246   :  { %1250 = vst.msk [vmem:[%s3146_s23 + $0x38] sm:$0xff] %vm597_vm3, %v1249_v52  ;;  %v1223_v3 = vmul.f32 %v3437_v41, %v1211_v54 }
 0x247   :  { %v1648_v17 = vpop.permute.xlu1 %1647 }
 0x248   :  { %v1653_v25 = vmul.f32 %v1648_v17, %v3170_v47  ;;  %v1235_v29 = vadd.f32 %v3444_v37, %v1223_v3 }
 0x249   :  { %v1084_v12 = vpop.f32.mrf.mxu2  ;;  %v1137_v19 = vpop.f32.mrf.mxu3  ;;  %v1757_v27 = vld [vmem:[#allocation7 + $0x20] sm:$0xff] }
 0x24a   :  { %v1889_v33 = vld [vmem:[#allocation7 + $0x21] sm:$0xff]  ;;  %v1138_v62 = vadd.f32 %v1137_v19, %v1084_v12  ;;  %v1779_v46 = vpack.c.bf16 %v1771_v63, %v1757_v27  ;;  %v1767_v43 = vpack.c.bf16 %v1757_v27, %v1755_v35  ;;  %v1657_v4 = vadd.f32 %v1653_v25, %v1633_v30  ;;  %v3545_v27 = vld [vmem:[%s3419_s17] ss:$0 sm:$0xff] }
 0x24b   :  { %v1897_v24 = vpack.c.bf16 %v1889_v33, %v1771_v63  ;;  %v1970_v26 = vpack.c.bf16 %v1962_v18, %v1889_v33  ;;  %v1243_v31 = vmax.f32 %v1235_v29, 0.0 }
 0x24c   :  { %v1212_v56 = vadd.f32 %v1202_v34, %v1138_v62  ;;  %2165 = vmatmul.msk.bf16.gmra.mxu1 %vm402_vm0, %v1779_v46  ;;  %2173 = vmatmul.msk.bf16.gmra.mxu2 %vm402_vm0, %v1767_v43  ;;  %v1681_v23 = vadd.f32 %v1677_v16, %v1657_v4 }
 0x24d   :  { %2184 = vmatmul.msk.bf16.gmra.mxu3 %vm402_vm0, %v1897_v24  ;;  %2195 = vmatmul.msk.bf16.gmra.mxu0 %vm402_vm0, %v1970_v26 }
 0x24e   :  { %v1224_v10 = vmul.f32 %v3437_v41, %v1212_v56  ;;  %v1705_v41 = vadd.f32 %v1701_v5, %v1681_v23 }
 0x250   :  { %v1236_v40 = vadd.f32 %v3444_v37, %v1224_v10  ;;  %v1560_v8 = vpop.permute.xlu1 %1559  ;;  %v1709_v37 = vmul.f32 %v3311_v42, %v1705_v41 }
 0x251   :  { %v1565_v60 = vmul.f32 %v1560_v8, %v3237_v50  ;;  %v1772_v50 = vld [vmem:[#allocation6 + $0x31] sm:$0xff] }
 0x252   :  { %v1244_v53 = vmax.f32 %v1236_v40, 0.0  ;;  %v1713_v58 = vadd.f32 %v3321_v49, %v1709_v37 }
 0x253   :  { %v1569_v45 = vadd.f32 %v1565_v60, %v1545_v14 }
 0x254   :  { %v1251_v21 = vmax.f32 %v1243_v31, %v1244_v53  ;;  %v1717_v47 = vmax.f32 %v1713_v58, 0.0 }
 0x256   :  { %1252 = vst.msk [vmem:[%s3146_s23 + $0x50] sm:$0xff] %vm597_vm3, %v1251_v21 }
 0x259   :  { %v1584_v28 = vpop.permute.xlu1 %1583 }
 0x25a   :  { %v1589_v55 = vmul.f32 %v1584_v28, %v3272_v15 }
 0x25c   :  { %v1593_v48 = vadd.f32 %v1589_v55, %v1569_v45 }
 0x25e   :  { %v1597_v6 = vmul.f32 %v3311_v42, %v1593_v48 }
 0x260   :  { %v1601_v22 = vadd.f32 %v3321_v49, %v1597_v6 }
 0x262   :  { %v1605_v9 = vmax.f32 %v1601_v22, 0.0 }
 0x264   :  { %v1721_v59 = vmax.f32 %v1605_v9, %v1717_v47 }
 0x266   :  { %1747 = vst.msk [vmem:[#allocation7 + $0x31] sm:$0x7f] %vm1743_vm5, %v1721_v59 }
 0x26d   :  { %v1761_v13 = vld [vmem:[#allocation7 + $0x30] sm:$0xff] }
 0x26e   :  { %v1890_v36 = vld [vmem:[#allocation7 + $0x31] sm:$0xff]  ;;  %v1780_v61 = vpack.c.bf16 %v1772_v50, %v1761_v13  ;;  %v1768_v15 = vpack.c.bf16 %v1761_v13, %v1759_v0 }
 0x26f   :  { %v1898_v32 = vpack.c.bf16 %v1890_v36, %v1772_v50  ;;  %v1971_v51 = vpack.c.bf16 %v1963_v39, %v1890_v36 }
 0x270   :  { %2166 = vmatmul.msk.bf16.gmra.mxu1 %vm402_vm0, %v1780_v61  ;;  %2174 = vmatmul.msk.bf16.gmra.mxu2 %vm402_vm0, %v1768_v15 }
 0x271   :  { %2185 = vmatmul.msk.bf16.gmra.mxu3 %vm402_vm0, %v1898_v32  ;;  %2196 = vmatmul.msk.bf16.gmra.mxu0 %vm402_vm0, %v1971_v51 }
 0x27a   :  { %v1814_v42 = vpop.f32.mrf.mxu1 }
 0x27b   :  { %v2005_v11 = vpop.f32.mrf.mxu0 }
 0x280   :  { %v1867_v49 = vpop.f32.mrf.mxu2 }
 0x281   :  { %v1868_v7 = vadd.f32 %v1867_v49, %v1814_v42  ;;  %v1932_v44 = vpop.f32.mrf.mxu3 }
 0x282   :  { %v1816_v54 = vpop.f32.mrf.mxu1 }
 0x283   :  { %v1952_v2 = vadd.f32 %v1932_v44, %v1868_v7  ;;  %v2007_v33 = vpop.f32.mrf.mxu0 }
 0x285   :  { %v2025_v52 = vadd.f32 %v2005_v11, %v1952_v2 }
 0x287   :  { %v2037_v19 = vmul.f32 %v3541_v57, %v2025_v52 }
 0x288   :  { %v1869_v17 = vpop.f32.mrf.mxu2 }
 0x289   :  { %v1870_v30 = vadd.f32 %v1869_v17, %v1816_v54  ;;  %v1934_v12 = vpop.f32.mrf.mxu3  ;;  %v2049_v25 = vadd.f32 %v3545_v27, %v2037_v19 }
 0x28b   :  { %v1953_v63 = vadd.f32 %v1934_v12, %v1870_v30  ;;  %v2057_v35 = vmax.f32 %v2049_v25, 0.0 }
 0x28d   :  { %v2026_v3 = vadd.f32 %v2007_v33, %v1953_v63 }
 0x28f   :  { %v2038_v62 = vmul.f32 %v3541_v57, %v2026_v3 }
 0x291   :  { %v2050_v46 = vadd.f32 %v3545_v27, %v2038_v62 }
 0x293   :  { %v2058_v18 = vmax.f32 %v2050_v46, 0.0 }
 0x295   :  { %v2065_v34 = vmax.f32 %v2057_v35, %v2058_v18 }
 0x297   :  { %2066 = vst.msk [vmem:[%s3146_s23 + $0x10] sm:$0xff] %vm597_vm3, %v2065_v34 }
 0x29e   :  { %v1819_v43 = vpop.f32.mrf.mxu1 }
 0x2a0   :  { %v2010_v29 = vpop.f32.mrf.mxu0 }
 0x2a4   :  { %v1937_v56 = vpop.f32.mrf.mxu3 }
 0x2a5   :  { %v1872_v24 = vpop.f32.mrf.mxu2 }
 0x2a6   :  { %v1873_v26 = vadd.f32 %v1872_v24, %v1819_v43  ;;  %v1821_v10 = vpop.f32.mrf.mxu1 }
 0x2a8   :  { %v1954_v16 = vadd.f32 %v1937_v56, %v1873_v26  ;;  %v2012_v23 = vpop.f32.mrf.mxu0 }
 0x2aa   :  { %v2027_v4 = vadd.f32 %v2010_v29, %v1954_v16 }
 0x2ac   :  { %v1939_v8 = vpop.f32.mrf.mxu3  ;;  %v2039_v31 = vmul.f32 %v3541_v57, %v2027_v4 }
 0x2ad   :  { %v1874_v38 = vpop.f32.mrf.mxu2 }
 0x2ae   :  { %v1875_v40 = vadd.f32 %v1874_v38, %v1821_v10  ;;  %v2051_v20 = vadd.f32 %v3545_v27, %v2039_v31 }
 0x2b0   :  { %v1955_v53 = vadd.f32 %v1939_v8, %v1875_v40  ;;  %v2059_v41 = vmax.f32 %v2051_v20, 0.0 }
 0x2b2   :  { %v2028_v5 = vadd.f32 %v2012_v23, %v1955_v53 }
 0x2b4   :  { %v2040_v21 = vmul.f32 %v3541_v57, %v2028_v5 }
 0x2b6   :  { %v2052_v1 = vadd.f32 %v3545_v27, %v2040_v21 }
 0x2b8   :  { %v2060_v60 = vmax.f32 %v2052_v1, 0.0 }
 0x2ba   :  { %v2067_v14 = vmax.f32 %v2059_v41, %v2060_v60 }
 0x2bc   :  { %2068 = vst.msk [vmem:[%s3146_s23 + $0x28] sm:$0xff] %vm597_vm3, %v2067_v14 }
 0x2c9   :  { %v1824_v28 = vpop.f32.mrf.mxu1 }
 0x2ca   :  { %v2015_v48 = vpop.f32.mrf.mxu0 }
 0x2cf   :  { %v1877_v37 = vpop.f32.mrf.mxu2 }
 0x2d0   :  { %v1942_v45 = vpop.f32.mrf.mxu3  ;;  %v1878_v55 = vadd.f32 %v1877_v37, %v1824_v28 }
 0x2d1   :  { %v1826_v22 = vpop.f32.mrf.mxu1 }
 0x2d2   :  { %v1956_v58 = vadd.f32 %v1942_v45, %v1878_v55  ;;  %v2017_v13 = vpop.f32.mrf.mxu0 }
 0x2d4   :  { %v2029_v6 = vadd.f32 %v2015_v48, %v1956_v58 }
 0x2d6   :  { %v2041_v50 = vmul.f32 %v3541_v57, %v2029_v6 }
 0x2d7   :  { %v1879_v47 = vpop.f32.mrf.mxu2 }
 0x2d8   :  { %v1880_v9 = vadd.f32 %v1879_v47, %v1826_v22  ;;  %v1944_v59 = vpop.f32.mrf.mxu3  ;;  %v2053_v39 = vadd.f32 %v3545_v27, %v2041_v50 }
 0x2da   :  { %v1957_v0 = vadd.f32 %v1944_v59, %v1880_v9  ;;  %v2061_v32 = vmax.f32 %v2053_v39, 0.0 }
 0x2dc   :  { %v2030_v36 = vadd.f32 %v2017_v13, %v1957_v0 }
 0x2de   :  { %v2042_v61 = vmul.f32 %v3541_v57, %v2030_v36 }
 0x2e0   :  { %v2054_v15 = vadd.f32 %v3545_v27, %v2042_v61 }
 0x2e2   :  { %v2062_v51 = vmax.f32 %v2054_v15, 0.0 }
 0x2e4   :  { %v2069_v42 = vmax.f32 %v2061_v32, %v2062_v51 }
 0x2e6   :  { %2070 = vst.msk [vmem:[%s3146_s23 + $0x40] sm:$0xff] %vm597_vm3, %v2069_v42 }
 0x2ed   :  { %v1829_v49 = vpop.f32.mrf.mxu1 }
 0x2ee   :  { %v2020_v2 = vpop.f32.mrf.mxu0 }
 0x2f3   :  { %v1882_v7 = vpop.f32.mrf.mxu2 }
 0x2f4   :  { %v1883_v44 = vadd.f32 %v1882_v7, %v1829_v49  ;;  %v1947_v11 = vpop.f32.mrf.mxu3 }
 0x2f5   :  { %v1831_v17 = vpop.f32.mrf.mxu1 }
 0x2f6   :  { %v1958_v52 = vadd.f32 %v1947_v11, %v1883_v44  ;;  %v2022_v3 = vpop.f32.mrf.mxu0 }
 0x2f8   :  { %v2031_v54 = vadd.f32 %v2020_v2, %v1958_v52 }
 0x2fa   :  { %v2043_v63 = vmul.f32 %v3541_v57, %v2031_v54 }
 0x2fb   :  { %v1884_v30 = vpop.f32.mrf.mxu2 }
 0x2fc   :  { %v1885_v12 = vadd.f32 %v1884_v30, %v1831_v17  ;;  %v1949_v19 = vpop.f32.mrf.mxu3  ;;  %v2055_v62 = vadd.f32 %v3545_v27, %v2043_v63 }
 0x2fe   :  { %v1959_v33 = vadd.f32 %v1949_v19, %v1885_v12  ;;  %v2063_v18 = vmax.f32 %v2055_v62, 0.0 }
 0x300   :  { %v2032_v25 = vadd.f32 %v2022_v3, %v1959_v33 }
 0x302   :  { %v2044_v46 = vmul.f32 %v3541_v57, %v2032_v25 }
 0x304   :  { %v2056_v35 = vadd.f32 %v3545_v27, %v2044_v46 }
 0x306   :  { %v2064_v34 = vmax.f32 %v2056_v35, 0.0 }
 0x308   :  { %v2071_v43 = vmax.f32 %v2063_v18, %v2064_v34 }
 0x30a   :  { %2072 = vst.msk [vmem:[%s3146_s23 + $0x58] sm:$0xff] %vm597_vm3, %v2071_v43 }

</bundles_post_ra>
